<compile_context>
chip_gen: v5e
topology: v5e:2x2
jax: 0.10.0
libtpu: 0.0.40
codegen_flags: <defaults>
</compile_context>

<pallas_src>
import functools
import jax
import jax.numpy as jnp
from jax.experimental import pallas as pl
from jax.experimental.pallas import tpu as pltpu

# ---------------------------------------------------------------- config ---
B = 1                # batch
N_CAM = 2            # number of cameras (real model uses 6)
IMG_C, IMG_H, IMG_W = 3, 32, 32
STRIDE = 4           # total backbone stride (2 * 2)
C1 = 16              # backbone mid channels
C_FEAT = 32          # backbone out channels
EMBED = 32           # head embed dims (real model: 256)
FFN_DIM = 2 * EMBED  # packing below relies on FFN_DIM == 2*EMBED
NUM_QUERY = 16
NUM_MEM = 8
NUM_CLS = 10
CODE_SIZE = 10
MAX_NUM = 16
FEAT_H, FEAT_W = IMG_H // STRIDE, IMG_W // STRIDE          # 8, 8
H1, W1 = IMG_H // 2, IMG_W // 2                            # conv1 out: 16, 16
H2, W2 = FEAT_H, FEAT_W                                    # conv2/neck out: 8, 8
PC_RANGE = (-51.2, -51.2, -5.0, 51.2, 51.2, 3.0)

assert FFN_DIM == 2 * EMBED
assert NUM_CLS <= EMBED and CODE_SIZE <= EMBED
assert C_FEAT == EMBED  # lets conv/neck biases share one (8, EMBED) table


# --------------------------------------------------------- fused backbone ---
def _backbone_kernel(a_ref, loc_ref, w1_ref, w2_ref, wp_ref, b_ref,
                     k_ref, v_ref):
    """One camera per grid step.

    conv1(3x3,s2)+ReLU (evaluated at every conv2 tap position, one matmul)
    -> conv2(3x3,s2)+ReLU (per-tap K=C1 matmuls, exact-FLOP, no gather const)
    -> neck(1x1) fused with the head's input_proj
    -> location->pos MLP and cross-attention K / V projections (per token),
    so the serial head no longer touches the 128 image tokens.
    """
    E = EMBED
    NT = H2 * W2                                             # 64 rows per tap

    # conv1 at every (tap, ho, wo) position: one (576, 27) @ (27, C1) matmul.
    y1 = jnp.dot(a_ref[...], w1_ref[...], preferred_element_type=jnp.float32)
    y1 = jnp.maximum(y1 + b_ref[0:1, 0:C1], 0.0)             # (9*64, C1)
    y1b = y1.astype(jnp.bfloat16)

    # conv2: taps that fall inside conv2's zero padding must contribute exact
    # zeros (conv1 of a zero patch is relu(bias) != 0 in general), so mask
    # them with an iota-derived predicate before the per-tap matmuls.
    row = jax.lax.broadcasted_iota(jnp.int32, (NT, 1), 0)    # row = ho*W2 + wo
    ho0 = row < W2                                           # ho == 0
    wo0 = (row % W2) == 0                                    # wo == 0

    acc = jnp.zeros((NT, C_FEAT), jnp.float32)
    for di in range(3):
        for dj in range(3):
            t = di * 3 + dj
            xt = y1b[t * NT:(t + 1) * NT, :]                 # (64, C1)
            if di == 0 and dj == 0:
                xt = jnp.where(ho0 | wo0, 0.0, xt).astype(jnp.bfloat16)
            elif di == 0:
                xt = jnp.where(ho0, 0.0, xt).astype(jnp.bfloat16)
            elif dj == 0:
                xt = jnp.where(wo0, 0.0, xt).astype(jnp.bfloat16)
            acc = acc + jnp.dot(xt, w2_ref[t * C1:(t + 1) * C1, :],
                                preferred_element_type=jnp.float32)
    y2 = jnp.maximum(acc + b_ref[1:2, :], 0.0)               # (64, C_FEAT)
    y2b = y2.astype(jnp.bfloat16)

    # neck(1x1) ∘ input_proj, fused into one weight at init (exact).
    mem = jnp.dot(y2b, wp_ref[:, 0:E],
                  preferred_element_type=jnp.float32) + b_ref[2:3, :]

    # location -> positional embedding MLP (camera-parallel).
    ph = jnp.maximum(
        jnp.dot(loc_ref[...].astype(jnp.bfloat16), wp_ref[:, E:2 * E],
                preferred_element_type=jnp.float32) + b_ref[3:4, :], 0.0)
    pos = jnp.dot(ph.astype(jnp.bfloat16), wp_ref[:, 2 * E:3 * E],
                  preferred_element_type=jnp.float32) + b_ref[4:5, :]

    # cross-attention K / V projections, also camera-parallel.
    k_ref[...] = jnp.dot((mem + pos).astype(jnp.bfloat16), wp_ref[:, 3 * E:4 * E],
                         preferred_element_type=jnp.float32) + b_ref[5:6, :]
    v_ref[...] = jnp.dot(mem.astype(jnp.bfloat16), wp_ref[:, 4 * E:5 * E],
                         preferred_element_type=jnp.float32) + b_ref[6:7, :]


def run_backbone(params, im2col1, loc_pad):
    """im2col1: (N_CAM*9*H2*W2, 27) bf16 -> cross-attn K / V, each (N*64, E)."""
    tok_spec = pl.BlockSpec((H2 * W2, EMBED), lambda n: (n, 0))
    return pl.pallas_call(
        _backbone_kernel,
        out_shape=(jax.ShapeDtypeStruct((N_CAM * H2 * W2, EMBED), jnp.float32),
                   jax.ShapeDtypeStruct((N_CAM * H2 * W2, EMBED), jnp.float32)),
        grid=(N_CAM,),
        in_specs=[
            pl.BlockSpec((9 * H2 * W2, 9 * IMG_C), lambda n: (n, 0)),
            pl.BlockSpec((H2 * W2, EMBED), lambda n: (n, 0)),
            pl.BlockSpec((9 * IMG_C, C1), lambda n: (0, 0)),
            pl.BlockSpec((9 * C1, C_FEAT), lambda n: (0, 0)),
            pl.BlockSpec((EMBED, 5 * EMBED), lambda n: (0, 0)),
            pl.BlockSpec((8, EMBED), lambda n: (0, 0)),
        ],
        out_specs=(tok_spec, pl.BlockSpec((H2 * W2, EMBED), lambda n: (n, 0))),
        compiler_params=pltpu.CompilerParams(
            dimension_semantics=("parallel",)),   # both TCs on v7x / 6-cam
    )(im2col1, loc_pad, params["w1f"], params["w2f"],
      params["bb_proj"], params["bb_bias"])


# --------------------------------------------------------------- fused head -
def _head_kernel(kimg_ref, vimg_ref, ref_ref, memE_ref, memP_ref,
                 w_ref, w2_ref, c_ref, out_ref):
    E = EMBED

    def wblk(i, n=1):                     # lane-dense (E, n*E) weight slice
        return w_ref[:, i * E:(i + n) * E]

    def w2blk(i, n=1):                    # (2E, n*E) weight slice
        return w2_ref[:, i * E:(i + n) * E]

    def crow(i, n=EMBED):                 # bias / LN row (f32)
        return c_ref[i:i + 1, 0:n]

    def mm(x, w, b):
        return jnp.dot(x.astype(jnp.bfloat16), w,
                       preferred_element_type=jnp.float32) + b

    def layernorm(x, gi, bi):
        mean = jnp.sum(x, axis=-1, keepdims=True) * (1.0 / E)
        d = x - mean
        var = jnp.sum(d * d, axis=-1, keepdims=True) * (1.0 / E)
        return d * jax.lax.rsqrt(var + 1e-5) * crow(gi) + crow(bi)

    def attend(q, k, v):
        # 1/sqrt(E) was folded into the q-projection weights at init time.
        s = jax.lax.dot_general(q.astype(jnp.bfloat16), k.astype(jnp.bfloat16),
                                (((1,), (1,)), ((), ())),
                                preferred_element_type=jnp.float32)
        m = jnp.max(s, axis=-1, keepdims=True)
        p = jnp.exp(s - m)
        den = jnp.sum(p, axis=-1, keepdims=True)
        o = jnp.dot(p.astype(jnp.bfloat16), v.astype(jnp.bfloat16),
                    preferred_element_type=jnp.float32)
        return o * pl.reciprocal(den, approx=True)

    ref_s = jax.nn.sigmoid(ref_ref[...])                     # (NQ, E)
    memE = memE_ref[...]                                     # (NM, E)

    # query + memory positional MLP in ONE pass over the concatenated rows.
    # (padded lanes >=3 of ref/memory are harmless: qpos1 rows >=3 are zero)
    pin = jnp.concatenate([ref_s, memP_ref[...]], axis=0)    # (NQ+NM, E)
    ph = jnp.maximum(mm(pin, wblk(0), crow(0)), 0.0)
    pall = mm(ph, wblk(1), crow(1))
    qpos = pall[0:NUM_QUERY, :]
    mpos = pall[NUM_QUERY:, :]

    # hybrid self-attention over (queries ++ propagated memory); tgt == 0 so
    # q_in == qpos and the query half of V is just the sa_v bias broadcast.
    q = mm(qpos, wblk(2), crow(2))
    kin = jnp.concatenate([qpos, memE + mpos], axis=0)       # (NQ+NM, E)
    k = mm(kin, wblk(3), crow(3))
    v_mem = mm(memE, wblk(4), crow(4))
    v = jnp.concatenate([jnp.broadcast_to(crow(4), (NUM_QUERY, E)), v_mem],
                        axis=0)
    tgt = layernorm(mm(attend(q, k, v), wblk(5), crow(5)), 8, 9)

    # cross-attention to image tokens; K / V were projected in the backbone.
    q = mm(tgt + qpos, wblk(6), crow(6))
    ca = mm(attend(q, kimg_ref[...], vimg_ref[...]), wblk(7), crow(7))
    tgt = layernorm(tgt + ca, 10, 11)

    # FFN (hidden = 2E lanes, one matmul each way).
    h = jnp.maximum(mm(tgt, wblk(10, 2), c_ref[14:15, :]), 0.0)   # (NQ, 2E)
    tgt = layernorm(tgt + mm(h, w2blk(0), crow(15)), 12, 13)

    # prediction branches: cls1|reg1 packed along N, cls2/reg2 block-diagonal
    # -> 2 matmuls total and a lane-dense packed (NQ, 2E) output.
    h2 = jnp.maximum(mm(tgt, wblk(8, 2), c_ref[16:17, :]), 0.0)   # (NQ, 2E)
    out = mm(h2, w2blk(1, 2), c_ref[17:18, :])                    # (NQ, 2E)

    # NMS-free reference-point decode on the reg half: lanes E+{0,1,4} get
    # +inv_sigmoid(ref) then sigmoid.
    ref_c = jnp.clip(ref_s, 1e-5, 1.0 - 1e-5)
    ref_logit = jnp.log(ref_c / (1.0 - ref_c))
    lane = jax.lax.broadcasted_iota(jnp.int32, out.shape, 1)
    add = (jnp.where(lane == E + 0, ref_logit[:, 0:1], 0.0)
           + jnp.where(lane == E + 1, ref_logit[:, 1:2], 0.0)
           + jnp.where(lane == E + 4, ref_logit[:, 2:3], 0.0))
    out = out + add
    sig = (lane == E + 0) | (lane == E + 1) | (lane == E + 4)
    out_ref[...] = jnp.where(sig, jax.nn.sigmoid(out), out)


def run_head(params, k_img, v_img, mem_emb, mem_aligned):
    def full(a):
        return pl.BlockSpec(a.shape, lambda i: (0, 0))

    # TODO(synk): at real dims (EMBED=256, ~900 queries) set vmem_limit_bytes
    # and single-buffer the static weight BlockSpecs (grid=(1,) gains nothing
    # from double buffering) to stay inside v7x's 64 MiB VMEM.
    return pl.pallas_call(
        _head_kernel,
        out_shape=jax.ShapeDtypeStruct((NUM_QUERY, 2 * EMBED), jnp.float32),
        grid=(1,),
        in_specs=[full(k_img), full(v_img), full(params["ref_points"]),
                  full(mem_emb), full(mem_aligned),
                  full(params["head_w"]), full(params["head_w2"]),
                  full(params["head_v"])],
        out_specs=pl.BlockSpec((NUM_QUERY, 2 * EMBED), lambda i: (0, 0)),
        compiler_params=pltpu.CompilerParams(
            dimension_semantics=("arbitrary",)),
    )(k_img, v_img, params["ref_points"], mem_emb, mem_aligned,
      params["head_w"], params["head_w2"], params["head_v"])


# ----------------------------------------------------------------- params ---
def init_params(key):
    ks = iter(jax.random.split(key, 64))

    def rnd(shape, scale=0.05):
        return jax.random.normal(next(ks), shape, jnp.float32) * scale

    E = EMBED
    SCALE = 1.0 / float(E) ** 0.5

    # backbone convs (PyTorch conv layout), flattened once here
    w1 = rnd((C1, IMG_C, 3, 3)); b1 = jnp.zeros((C1,))
    w2 = rnd((C_FEAT, C1, 3, 3)); b2 = jnp.zeros((C_FEAT,))
    wn = rnd((E, C_FEAT, 1, 1)); bn = jnp.zeros((E,))
    w1f = jnp.transpose(w1, (2, 3, 1, 0)).reshape(9 * IMG_C, C1)        # (27,16)
    w2f = jnp.transpose(w2, (2, 3, 1, 0)).reshape(9 * C1, C_FEAT)       # (144,32)
    wneckf = wn.reshape(E, C_FEAT).T                                     # (32,32)

    # head linears
    w_inproj = rnd((E, E)); b_inproj = jnp.zeros((E,))
    w_pos1 = rnd((2, E)); b_pos1 = jnp.zeros((E,))
    w_pos2 = rnd((E, E)); b_pos2 = jnp.zeros((E,))
    w_qpos1 = rnd((3, E)); b_qpos1 = jnp.zeros((E,))
    w_qpos2 = rnd((E, E)); b_qpos2 = jnp.zeros((E,))
    w_saq = rnd((E, E)); b_saq = jnp.zeros((E,))
    w_sak = rnd((E, E)); b_sak = jnp.zeros((E,))
    w_sav = rnd((E, E)); b_sav = jnp.zeros((E,))
    w_sao = rnd((E, E)); b_sao = jnp.zeros((E,))
    w_caq = rnd((E, E)); b_caq = jnp.zeros((E,))
    w_cak = rnd((E, E)); b_cak = jnp.zeros((E,))
    w_cav = rnd((E, E)); b_cav = jnp.zeros((E,))
    w_cao = rnd((E, E)); b_cao = jnp.zeros((E,))
    w_ffn1 = rnd((E, FFN_DIM)); b_ffn1 = jnp.zeros((FFN_DIM,))
    w_ffn2 = rnd((FFN_DIM, E)); b_ffn2 = jnp.zeros((E,))
    w_cls1 = rnd((E, E)); b_cls1 = jnp.zeros((E,))
    w_cls2 = rnd((E, NUM_CLS)); b_cls2 = jnp.zeros((NUM_CLS,))
    w_reg1 = rnd((E, E)); b_reg1 = jnp.zeros((E,))
    w_reg2 = rnd((E, CODE_SIZE)); b_reg2 = jnp.zeros((CODE_SIZE,))
    ln1_g, ln1_b = jnp.ones((E,)), jnp.zeros((E,))
    ln2_g, ln2_b = jnp.ones((E,)), jnp.zeros((E,))
    ln3_g, ln3_b = jnp.ones((E,)), jnp.zeros((E,))

    # --- backbone packing: neck(1x1) ∘ input_proj fused (exact linear) ----
    w_ni = wneckf @ w_inproj                                             # (C_FEAT,E)
    b_ni = bn @ w_inproj + b_inproj
    pos1_pad = jnp.zeros((E, E)).at[:2, :].set(w_pos1)
    bb_proj = jnp.concatenate([w_ni, pos1_pad, w_pos2, w_cak, w_cav],
                              axis=1)                                    # (32,160)
    bb_bias = jnp.zeros((8, E), jnp.float32)
    bb_bias = (bb_bias.at[0, :C1].set(b1).at[1, :].set(b2).at[2, :].set(b_ni)
               .at[3, :].set(b_pos1).at[4, :].set(b_pos2)
               .at[5, :].set(b_cak).at[6, :].set(b_cav))

    # --- head packing: lane-dense (E, n*E); softmax scale folded into q ----
    qpos1_pad = jnp.zeros((E, E)).at[:3, :].set(w_qpos1)
    head_w = jnp.concatenate(
        [qpos1_pad, w_qpos2, w_saq * SCALE, w_sak, w_sav, w_sao,
         w_caq * SCALE, w_cao, w_cls1, w_reg1, w_ffn1], axis=1)          # (32,384)

    cls2_pad = jnp.zeros((E, E)).at[:, :NUM_CLS].set(w_cls2)
    reg2_pad = jnp.zeros((E, E)).at[:, :CODE_SIZE].set(w_reg2)
    branch2 = jnp.zeros((2 * E, 2 * E))
    branch2 = branch2.at[:E, :E].set(cls2_pad).at[E:, E:].set(reg2_pad)
    head_w2 = jnp.concatenate([w_ffn2, branch2], axis=1)                 # (64,96)

    rows = [b_qpos1, b_qpos2, b_saq * SCALE, b_sak, b_sav, b_sao,
            b_caq * SCALE, b_cao, ln1_g, ln1_b, ln2_g, ln2_b, ln3_g, ln3_b,
            b_ffn1, b_ffn2,
            jnp.concatenate([b_cls1, b_reg1]),
            jnp.concatenate([jnp.zeros((E,)).at[:NUM_CLS].set(b_cls2),
                             jnp.zeros((E,)).at[:CODE_SIZE].set(b_reg2)])]
    head_v = jnp.zeros((24, 2 * E), jnp.float32)
    for i, v in enumerate(rows):
        head_v = head_v.at[i, :v.shape[0]].set(v)

    refp = jax.random.uniform(next(ks), (NUM_QUERY, 3), jnp.float32,
                              minval=-2.0, maxval=2.0)
    ref_points = jnp.zeros((NUM_QUERY, E), jnp.float32).at[:, :3].set(refp)

    return {
        "w1f": w1f.astype(jnp.bfloat16),
        "w2f": w2f.astype(jnp.bfloat16),
        "bb_proj": bb_proj.astype(jnp.bfloat16),
        "bb_bias": bb_bias,
        "head_w": head_w.astype(jnp.bfloat16),
        "head_w2": head_w2.astype(jnp.bfloat16),
        "head_v": head_v,
        "ref_points": ref_points,
    }


# ----------------------------------------------------------------- helpers --
def prepare_location(stride, pad_h, pad_w, bs, n, h, w):
    shifts_x = (jnp.arange(0, stride * w, step=stride, dtype=jnp.float32)
                + stride // 2) / pad_w
    shifts_y = (jnp.arange(0, h * stride, step=stride, dtype=jnp.float32)
                + stride // 2) / pad_h
    shift_y, shift_x = jnp.meshgrid(shifts_y, shifts_x, indexing="ij")
    location = jnp.stack((shift_x.reshape(-1), shift_y.reshape(-1)), axis=1)
    location = location.reshape(h, w, 2)
    return jnp.broadcast_to(location[None], (bs * n, h, w, 2))


def make_grid_mask(shape, d=8):
    # Deterministic stand-in for the stochastic GridMask augmentation.
    _, _, H, W = shape
    yy = jnp.arange(H)[:, None]
    xx = jnp.arange(W)[None, :]
    keep = jnp.logical_not(((yy % d) < d // 2) & ((xx % d) < d // 2))
    return keep.astype(jnp.float32)[None, None]


def get_bboxes(outs):
    # TODO(synk): top-k + box decode stays in plain JAX (data-dependent top-k
    # has no clean Pallas equivalent at this scale).
    cls_scores = outs["all_cls_scores"][-1]
    bbox_preds = outs["all_bbox_preds"][-1]
    results = []
    for b in range(cls_scores.shape[0]):
        scores = jax.nn.sigmoid(cls_scores[b]).reshape(-1)
        topk_scores, topk_idx = jax.lax.top_k(scores, MAX_NUM)
        labels = topk_idx % NUM_CLS
        bbox_index = topk_idx // NUM_CLS
        preds = bbox_preds[b][bbox_index]
        cx = preds[:, 0] * (PC_RANGE[3] - PC_RANGE[0]) + PC_RANGE[0]
        cy = preds[:, 1] * (PC_RANGE[4] - PC_RANGE[1]) + PC_RANGE[1]
        cz = preds[:, 4] * (PC_RANGE[5] - PC_RANGE[2]) + PC_RANGE[2]
        w = jnp.exp(preds[:, 3])
        l = jnp.exp(preds[:, 2])
        h = jnp.exp(preds[:, 5])
        rot = jnp.arctan2(preds[:, 6], preds[:, 7])
        bboxes = jnp.stack([cx, cy, cz, w, l, h, rot,
                            preds[:, 8], preds[:, 9]], axis=-1)
        results.append((bboxes, topk_scores, labels))
    return results


# ----------------------------------------------------------------- forward --
def streampetr_forward(params, img, location, mem_emb, mem_ref, mem_ts,
                       mem_ego, mem_velo, use_grid_mask=True):
    if use_grid_mask:
        img = img * make_grid_mask(img.shape)

    # conv1 patches evaluated at every conv2 tap position (tap-major rows),
    # built once in XLA.
    # TODO(synk): at real resolution do this im2col (and the grid-mask
    # multiply) inside the backbone kernel via shifted strided loads to avoid
    # the 9x HBM inflation of the activation stream.
    x = jnp.transpose(img, (0, 2, 3, 1))                        # NHWC
    xp = jnp.pad(x, ((0, 0), (1, 1), (1, 1), (0, 0)))
    cols = [xp[:, di:di + 2 * H1:2, dj:dj + 2 * W1:2, :]
            for di in range(3) for dj in range(3)]
    patch = jnp.stack(cols, axis=3).reshape(N_CAM, H1, W1, 9 * IMG_C)
    patch_p = jnp.pad(patch, ((0, 0), (1, 1), (1, 1), (0, 0)))
    taps = [patch_p[:, di:di + 2 * H2:2, dj:dj + 2 * W2:2, :]
            for di in range(3) for dj in range(3)]
    tp = jnp.stack(taps, axis=1)                                # (N,9,H2,W2,27)
    im2col1 = tp.reshape(N_CAM * 9 * H2 * W2, 9 * IMG_C).astype(jnp.bfloat16)

    loc2 = location.reshape(-1, 2)                              # (N*H2*W2, 2)
    loc_pad = jnp.zeros((loc2.shape[0], EMBED), jnp.float32).at[:, :2].set(loc2)

    # fused backbone + neck + input_proj + pos-MLP + cross-attn K/V projection
    # (one pallas_call, camera-parallel).
    k_img, v_img = run_backbone(params, im2col1, loc_pad)

    # temporal alignment of propagated memory (ego-pose + velocity*dt) — tiny XLA glue
    disp = jnp.concatenate([mem_velo * mem_ts, jnp.zeros_like(mem_ts)], axis=-1)
    mrp = mem_ref + disp
    mrp_h = jnp.concatenate([mrp, jnp.ones_like(mem_ts)], axis=-1)
    aligned = jnp.einsum("bmij,bmj->bmi", mem_ego, mrp_h)[..., :3]
    mem_aligned = jnp.zeros((NUM_MEM, EMBED), jnp.float32).at[:, :3].set(aligned[0])

    # fused StreamPETR head (one pallas_call); packed lane-dense (NQ, 2E) out.
    out = run_head(params, k_img, v_img, mem_emb[0], mem_aligned)

    cls_scores = out[:, :NUM_CLS][None]                         # (B, NQ, NUM_CLS)
    bbox_preds = out[:, EMBED:EMBED + CODE_SIZE][None]          # (B, NQ, CODE_SIZE)
    outs = {"all_cls_scores": cls_scores[None],
            "all_bbox_preds": bbox_preds[None]}
    return get_bboxes(outs)


# ----------------------------------------------------------------- main ----
if __name__ == "__main__":
    key = jax.random.PRNGKey(0)
    kp, ki, k1, k2, k3, k4, k5 = jax.random.split(key, 7)
    params = init_params(kp)

    img = jax.random.normal(ki, (N_CAM, IMG_C, IMG_H, IMG_W), jnp.float32)
    location = prepare_location(STRIDE, IMG_H, IMG_W, B, N_CAM, FEAT_H, FEAT_W)
    memory_embedding = jax.random.normal(k1, (B, NUM_MEM, EMBED), jnp.float32) * 0.1
    memory_reference_point = jax.random.uniform(k2, (B, NUM_MEM, 3), jnp.float32)
    memory_timestamp = jax.random.uniform(k3, (B, NUM_MEM, 1), jnp.float32)
    memory_egopose = jnp.broadcast_to(jnp.eye(4, dtype=jnp.float32),
                                      (B, NUM_MEM, 4, 4))
    memory_velo = jax.random.normal(k5, (B, NUM_MEM, 2), jnp.float32) * 0.1

    fwd = jax.jit(functools.partial(streampetr_forward, use_grid_mask=True))
    bbox_list = fwd(params, img, location, memory_embedding,
                    memory_reference_point, memory_timestamp, memory_egopose,
                    memory_velo)

    for bboxes, scores, labels in bbox_list:
        jax.block_until_ready(bboxes)
        jax.block_until_ready(scores)
        jax.block_until_ready(labels)
    assert bbox_list[0][0].shape == (MAX_NUM, 9)
    assert bbox_list[0][1].shape == (MAX_NUM,)
    assert bbox_list[0][2].shape == (MAX_NUM,)
    print("KERNEL_OK")
</pallas_src>

<mosaic_0001>
module attributes {stable_mosaic.version = 11 : i64} {
  func.func @_backbone_kernel(%arg0: i32, %arg1: memref<576x27xbf16, #tpu.memory_space<vmem>>, %arg2: memref<64x32xf32, #tpu.memory_space<vmem>>, %arg3: memref<27x16xbf16, #tpu.memory_space<vmem>>, %arg4: memref<144x32xbf16, #tpu.memory_space<vmem>>, %arg5: memref<32x160xbf16, #tpu.memory_space<vmem>>, %arg6: memref<8x32xf32, #tpu.memory_space<vmem>>, %arg7: memref<64x32xf32, #tpu.memory_space<vmem>>, %arg8: memref<64x32xf32, #tpu.memory_space<vmem>>) attributes {dimension_semantics = [#tpu.dimension_semantics<parallel>], iteration_bounds = array<i64: 2>, scalar_prefetch = 0 : i64, scratch_operands = 0 : i64, tpu.core_type = #tpu.core_type<tc>, window_params = [{transform_indices = @transform_0, window_bounds = array<i64: 576, 27>}, {transform_indices = @transform_1, window_bounds = array<i64: 64, 32>}, {pipeline_mode = #tpu.pipeline_mode<synchronous>, transform_indices = @transform_2, window_bounds = array<i64: 27, 16>}, {pipeline_mode = #tpu.pipeline_mode<synchronous>, transform_indices = @transform_3, window_bounds = array<i64: 144, 32>}, {pipeline_mode = #tpu.pipeline_mode<synchronous>, transform_indices = @transform_4, window_bounds = array<i64: 32, 160>}, {pipeline_mode = #tpu.pipeline_mode<synchronous>, transform_indices = @transform_5, window_bounds = array<i64: 8, 32>}, {transform_indices = @transform_6, window_bounds = array<i64: 64, 32>}, {transform_indices = @transform_7, window_bounds = array<i64: 64, 32>}]} {
    %c0 = arith.constant 0 : index
    %c0_0 = arith.constant 0 : index
    %0 = vector.load %arg1[%c0, %c0_0] : memref<576x27xbf16, #tpu.memory_space<vmem>>, vector<576x27xbf16>
    %c0_1 = arith.constant 0 : index
    %c0_2 = arith.constant 0 : index
    %1 = vector.load %arg3[%c0_1, %c0_2] : memref<27x16xbf16, #tpu.memory_space<vmem>>, vector<27x16xbf16>
    %cst = arith.constant dense<0.000000e+00> : vector<576x16xf32>
    %2 = tpu.matmul %0, %1, %cst {dimension_numbers = #tpu.dot_dimension_numbers<[1], [0], [0], [1], [0, 0, 1, 1], [], []>} : vector<576x27xbf16>, vector<27x16xbf16>, vector<576x16xf32> -> vector<576x16xf32>
    %c0_3 = arith.constant 0 : index
    %c0_4 = arith.constant 0 : index
    %3 = vector.load %arg6[%c0_3, %c0_4] : memref<8x32xf32, #tpu.memory_space<vmem>>, vector<1x16xf32>
    %4 = vector.broadcast %3 : vector<1x16xf32> to vector<576x16xf32>
    %5 = arith.addf %2, %4 : vector<576x16xf32>
    %cst_5 = arith.constant 0.000000e+00 : f32
    %6 = vector.broadcast %cst_5 : f32 to vector<576x16xf32>
    %7 = arith.maximumf %5, %6 : vector<576x16xf32>
    %8 = arith.truncf %7 : vector<576x16xf32> to vector<576x16xbf16>
    %9 = tpu.iota {dimensions = array<i32: 0>} : vector<64x1xi32>
    %c8_i32 = arith.constant 8 : i32
    %10 = vector.broadcast %c8_i32 : i32 to vector<64x1xi32>
    %11 = arith.cmpi slt, %9, %10 : vector<64x1xi32>
    %c8_i32_6 = arith.constant 8 : i32
    %c0_i32 = arith.constant 0 : i32
    %12 = arith.cmpi eq, %c8_i32_6, %c0_i32 : i32
    %c1_i32 = arith.constant 1 : i32
    %13 = arith.select %12, %c1_i32, %c8_i32_6 : i32
    %14 = vector.broadcast %13 : i32 to vector<64x1xi32>
    %15 = arith.remsi %9, %14 : vector<64x1xi32>
    %c0_i32_7 = arith.constant 0 : i32
    %16 = vector.broadcast %c0_i32_7 : i32 to vector<64x1xi32>
    %17 = arith.cmpi ne, %15, %16 : vector<64x1xi32>
    %c0_i32_8 = arith.constant 0 : i32
    %18 = vector.broadcast %c0_i32_8 : i32 to vector<64x1xi32>
    %19 = arith.cmpi slt, %15, %18 : vector<64x1xi32>
    %c0_i32_9 = arith.constant 0 : i32
    %20 = arith.cmpi slt, %13, %c0_i32_9 : i32
    %21 = vector.broadcast %20 : i1 to vector<64x1xi1>
    %22 = vector.broadcast %21 : vector<64x1xi1> to vector<64x1xi1>
    %23 = arith.xori %19, %22 : vector<64x1xi1>
    %24 = arith.andi %23, %17 : vector<64x1xi1>
    %25 = vector.broadcast %13 : i32 to vector<64x1xi32>
    %26 = arith.addi %15, %25 : vector<64x1xi32>
    %27 = arith.select %24, %26, %15 : vector<64x1xi1>, vector<64x1xi32>
    %c0_i32_10 = arith.constant 0 : i32
    %28 = vector.broadcast %c0_i32_10 : i32 to vector<64x1xi32>
    %29 = arith.cmpi eq, %27, %28 : vector<64x1xi32>
    %cst_11 = arith.constant 0.000000e+00 : f32
    %30 = vector.broadcast %cst_11 : f32 to vector<64x32xf32>
    %31 = vector.extract_strided_slice %8 {offsets = [0, 0], sizes = [64, 16], strides = [1, 1]} : vector<576x16xbf16> to vector<64x16xbf16>
    %32 = arith.ori %11, %29 : vector<64x1xi1>
    %cst_12 = arith.constant 0.000000e+00 : f32
    %33 = arith.truncf %cst_12 : f32 to bf16
    %34 = vector.shape_cast %32 : vector<64x1xi1> to vector<64x1xi1>
    %35 = vector.broadcast %34 : vector<64x1xi1> to vector<64x16xi1>
    %36 = vector.broadcast %33 : bf16 to vector<64x16xbf16>
    %37 = arith.select %35, %36, %31 : vector<64x16xi1>, vector<64x16xbf16>
    %c0_13 = arith.constant 0 : index
    %c0_14 = arith.constant 0 : index
    %38 = vector.load %arg4[%c0_13, %c0_14] : memref<144x32xbf16, #tpu.memory_space<vmem>>, vector<16x32xbf16>
    %cst_15 = arith.constant dense<0.000000e+00> : vector<64x32xf32>
    %39 = tpu.matmul %37, %38, %cst_15 {dimension_numbers = #tpu.dot_dimension_numbers<[1], [0], [0], [1], [0, 0, 1, 1], [], []>} : vector<64x16xbf16>, vector<16x32xbf16>, vector<64x32xf32> -> vector<64x32xf32>
    %40 = arith.addf %30, %39 : vector<64x32xf32>
    %41 = vector.extract_strided_slice %8 {offsets = [64, 0], sizes = [64, 16], strides = [1, 1]} : vector<576x16xbf16> to vector<64x16xbf16>
    %cst_16 = arith.constant 0.000000e+00 : f32
    %42 = arith.truncf %cst_16 : f32 to bf16
    %43 = vector.shape_cast %11 : vector<64x1xi1> to vector<64x1xi1>
    %44 = vector.broadcast %43 : vector<64x1xi1> to vector<64x16xi1>
    %45 = vector.broadcast %42 : bf16 to vector<64x16xbf16>
    %46 = arith.select %44, %45, %41 : vector<64x16xi1>, vector<64x16xbf16>
    %c16 = arith.constant 16 : index
    %c0_17 = arith.constant 0 : index
    %47 = vector.load %arg4[%c16, %c0_17] : memref<144x32xbf16, #tpu.memory_space<vmem>>, vector<16x32xbf16>
    %cst_18 = arith.constant dense<0.000000e+00> : vector<64x32xf32>
    %48 = tpu.matmul %46, %47, %cst_18 {dimension_numbers = #tpu.dot_dimension_numbers<[1], [0], [0], [1], [0, 0, 1, 1], [], []>} : vector<64x16xbf16>, vector<16x32xbf16>, vector<64x32xf32> -> vector<64x32xf32>
    %49 = arith.addf %40, %48 : vector<64x32xf32>
    %50 = vector.extract_strided_slice %8 {offsets = [128, 0], sizes = [64, 16], strides = [1, 1]} : vector<576x16xbf16> to vector<64x16xbf16>
    %cst_19 = arith.constant 0.000000e+00 : f32
    %51 = arith.truncf %cst_19 : f32 to bf16
    %52 = vector.shape_cast %11 : vector<64x1xi1> to vector<64x1xi1>
    %53 = vector.broadcast %52 : vector<64x1xi1> to vector<64x16xi1>
    %54 = vector.broadcast %51 : bf16 to vector<64x16xbf16>
    %55 = arith.select %53, %54, %50 : vector<64x16xi1>, vector<64x16xbf16>
    %c32 = arith.constant 32 : index
    %c0_20 = arith.constant 0 : index
    %56 = vector.load %arg4[%c32, %c0_20] : memref<144x32xbf16, #tpu.memory_space<vmem>>, vector<16x32xbf16>
    %cst_21 = arith.constant dense<0.000000e+00> : vector<64x32xf32>
    %57 = tpu.matmul %55, %56, %cst_21 {dimension_numbers = #tpu.dot_dimension_numbers<[1], [0], [0], [1], [0, 0, 1, 1], [], []>} : vector<64x16xbf16>, vector<16x32xbf16>, vector<64x32xf32> -> vector<64x32xf32>
    %58 = arith.addf %49, %57 : vector<64x32xf32>
    %59 = vector.extract_strided_slice %8 {offsets = [192, 0], sizes = [64, 16], strides = [1, 1]} : vector<576x16xbf16> to vector<64x16xbf16>
    %cst_22 = arith.constant 0.000000e+00 : f32
    %60 = arith.truncf %cst_22 : f32 to bf16
    %61 = vector.shape_cast %29 : vector<64x1xi1> to vector<64x1xi1>
    %62 = vector.broadcast %61 : vector<64x1xi1> to vector<64x16xi1>
    %63 = vector.broadcast %60 : bf16 to vector<64x16xbf16>
    %64 = arith.select %62, %63, %59 : vector<64x16xi1>, vector<64x16xbf16>
    %c48 = arith.constant 48 : index
    %c0_23 = arith.constant 0 : index
    %65 = vector.load %arg4[%c48, %c0_23] : memref<144x32xbf16, #tpu.memory_space<vmem>>, vector<16x32xbf16>
    %cst_24 = arith.constant dense<0.000000e+00> : vector<64x32xf32>
    %66 = tpu.matmul %64, %65, %cst_24 {dimension_numbers = #tpu.dot_dimension_numbers<[1], [0], [0], [1], [0, 0, 1, 1], [], []>} : vector<64x16xbf16>, vector<16x32xbf16>, vector<64x32xf32> -> vector<64x32xf32>
    %67 = arith.addf %58, %66 : vector<64x32xf32>
    %68 = vector.extract_strided_slice %8 {offsets = [256, 0], sizes = [64, 16], strides = [1, 1]} : vector<576x16xbf16> to vector<64x16xbf16>
    %c64 = arith.constant 64 : index
    %c0_25 = arith.constant 0 : index
    %69 = vector.load %arg4[%c64, %c0_25] : memref<144x32xbf16, #tpu.memory_space<vmem>>, vector<16x32xbf16>
    %cst_26 = arith.constant dense<0.000000e+00> : vector<64x32xf32>
    %70 = tpu.matmul %68, %69, %cst_26 {dimension_numbers = #tpu.dot_dimension_numbers<[1], [0], [0], [1], [0, 0, 1, 1], [], []>} : vector<64x16xbf16>, vector<16x32xbf16>, vector<64x32xf32> -> vector<64x32xf32>
    %71 = arith.addf %67, %70 : vector<64x32xf32>
    %72 = vector.extract_strided_slice %8 {offsets = [320, 0], sizes = [64, 16], strides = [1, 1]} : vector<576x16xbf16> to vector<64x16xbf16>
    %c80 = arith.constant 80 : index
    %c0_27 = arith.constant 0 : index
    %73 = vector.load %arg4[%c80, %c0_27] : memref<144x32xbf16, #tpu.memory_space<vmem>>, vector<16x32xbf16>
    %cst_28 = arith.constant dense<0.000000e+00> : vector<64x32xf32>
    %74 = tpu.matmul %72, %73, %cst_28 {dimension_numbers = #tpu.dot_dimension_numbers<[1], [0], [0], [1], [0, 0, 1, 1], [], []>} : vector<64x16xbf16>, vector<16x32xbf16>, vector<64x32xf32> -> vector<64x32xf32>
    %75 = arith.addf %71, %74 : vector<64x32xf32>
    %76 = vector.extract_strided_slice %8 {offsets = [384, 0], sizes = [64, 16], strides = [1, 1]} : vector<576x16xbf16> to vector<64x16xbf16>
    %cst_29 = arith.constant 0.000000e+00 : f32
    %77 = arith.truncf %cst_29 : f32 to bf16
    %78 = vector.shape_cast %29 : vector<64x1xi1> to vector<64x1xi1>
    %79 = vector.broadcast %78 : vector<64x1xi1> to vector<64x16xi1>
    %80 = vector.broadcast %77 : bf16 to vector<64x16xbf16>
    %81 = arith.select %79, %80, %76 : vector<64x16xi1>, vector<64x16xbf16>
    %c96 = arith.constant 96 : index
    %c0_30 = arith.constant 0 : index
    %82 = vector.load %arg4[%c96, %c0_30] : memref<144x32xbf16, #tpu.memory_space<vmem>>, vector<16x32xbf16>
    %cst_31 = arith.constant dense<0.000000e+00> : vector<64x32xf32>
    %83 = tpu.matmul %81, %82, %cst_31 {dimension_numbers = #tpu.dot_dimension_numbers<[1], [0], [0], [1], [0, 0, 1, 1], [], []>} : vector<64x16xbf16>, vector<16x32xbf16>, vector<64x32xf32> -> vector<64x32xf32>
    %84 = arith.addf %75, %83 : vector<64x32xf32>
    %85 = vector.extract_strided_slice %8 {offsets = [448, 0], sizes = [64, 16], strides = [1, 1]} : vector<576x16xbf16> to vector<64x16xbf16>
    %c112 = arith.constant 112 : index
    %c0_32 = arith.constant 0 : index
    %86 = vector.load %arg4[%c112, %c0_32] : memref<144x32xbf16, #tpu.memory_space<vmem>>, vector<16x32xbf16>
    %cst_33 = arith.constant dense<0.000000e+00> : vector<64x32xf32>
    %87 = tpu.matmul %85, %86, %cst_33 {dimension_numbers = #tpu.dot_dimension_numbers<[1], [0], [0], [1], [0, 0, 1, 1], [], []>} : vector<64x16xbf16>, vector<16x32xbf16>, vector<64x32xf32> -> vector<64x32xf32>
    %88 = arith.addf %84, %87 : vector<64x32xf32>
    %89 = vector.extract_strided_slice %8 {offsets = [512, 0], sizes = [64, 16], strides = [1, 1]} : vector<576x16xbf16> to vector<64x16xbf16>
    %c128 = arith.constant 128 : index
    %c0_34 = arith.constant 0 : index
    %90 = vector.load %arg4[%c128, %c0_34] : memref<144x32xbf16, #tpu.memory_space<vmem>>, vector<16x32xbf16>
    %cst_35 = arith.constant dense<0.000000e+00> : vector<64x32xf32>
    %91 = tpu.matmul %89, %90, %cst_35 {dimension_numbers = #tpu.dot_dimension_numbers<[1], [0], [0], [1], [0, 0, 1, 1], [], []>} : vector<64x16xbf16>, vector<16x32xbf16>, vector<64x32xf32> -> vector<64x32xf32>
    %92 = arith.addf %88, %91 : vector<64x32xf32>
    %c1 = arith.constant 1 : index
    %c0_36 = arith.constant 0 : index
    %93 = vector.load %arg6[%c1, %c0_36] : memref<8x32xf32, #tpu.memory_space<vmem>>, vector<1x32xf32>
    %94 = vector.broadcast %93 : vector<1x32xf32> to vector<64x32xf32>
    %95 = arith.addf %92, %94 : vector<64x32xf32>
    %cst_37 = arith.constant 0.000000e+00 : f32
    %96 = vector.broadcast %cst_37 : f32 to vector<64x32xf32>
    %97 = arith.maximumf %95, %96 : vector<64x32xf32>
    %98 = arith.truncf %97 : vector<64x32xf32> to vector<64x32xbf16>
    %c0_38 = arith.constant 0 : index
    %c0_39 = arith.constant 0 : index
    %99 = vector.load %arg5[%c0_38, %c0_39] : memref<32x160xbf16, #tpu.memory_space<vmem>>, vector<32x32xbf16>
    %cst_40 = arith.constant dense<0.000000e+00> : vector<64x32xf32>
    %100 = tpu.matmul %98, %99, %cst_40 {dimension_numbers = #tpu.dot_dimension_numbers<[1], [0], [0], [1], [0, 0, 1, 1], [], []>} : vector<64x32xbf16>, vector<32x32xbf16>, vector<64x32xf32> -> vector<64x32xf32>
    %c2 = arith.constant 2 : index
    %c0_41 = arith.constant 0 : index
    %101 = vector.load %arg6[%c2, %c0_41] : memref<8x32xf32, #tpu.memory_space<vmem>>, vector<1x32xf32>
    %102 = vector.broadcast %101 : vector<1x32xf32> to vector<64x32xf32>
    %103 = arith.addf %100, %102 : vector<64x32xf32>
    %c0_42 = arith.constant 0 : index
    %c0_43 = arith.constant 0 : index
    %104 = vector.load %arg2[%c0_42, %c0_43] : memref<64x32xf32, #tpu.memory_space<vmem>>, vector<64x32xf32>
    %105 = arith.truncf %104 : vector<64x32xf32> to vector<64x32xbf16>
    %c0_44 = arith.constant 0 : index
    %c32_45 = arith.constant 32 : index
    %106 = vector.load %arg5[%c0_44, %c32_45] : memref<32x160xbf16, #tpu.memory_space<vmem>>, vector<32x32xbf16>
    %cst_46 = arith.constant dense<0.000000e+00> : vector<64x32xf32>
    %107 = tpu.matmul %105, %106, %cst_46 {dimension_numbers = #tpu.dot_dimension_numbers<[1], [0], [0], [1], [0, 0, 1, 1], [], []>} : vector<64x32xbf16>, vector<32x32xbf16>, vector<64x32xf32> -> vector<64x32xf32>
    %c3 = arith.constant 3 : index
    %c0_47 = arith.constant 0 : index
    %108 = vector.load %arg6[%c3, %c0_47] : memref<8x32xf32, #tpu.memory_space<vmem>>, vector<1x32xf32>
    %109 = vector.broadcast %108 : vector<1x32xf32> to vector<64x32xf32>
    %110 = arith.addf %107, %109 : vector<64x32xf32>
    %cst_48 = arith.constant 0.000000e+00 : f32
    %111 = vector.broadcast %cst_48 : f32 to vector<64x32xf32>
    %112 = arith.maximumf %110, %111 : vector<64x32xf32>
    %113 = arith.truncf %112 : vector<64x32xf32> to vector<64x32xbf16>
    %c0_49 = arith.constant 0 : index
    %c64_50 = arith.constant 64 : index
    %114 = vector.load %arg5[%c0_49, %c64_50] : memref<32x160xbf16, #tpu.memory_space<vmem>>, vector<32x32xbf16>
    %cst_51 = arith.constant dense<0.000000e+00> : vector<64x32xf32>
    %115 = tpu.matmul %113, %114, %cst_51 {dimension_numbers = #tpu.dot_dimension_numbers<[1], [0], [0], [1], [0, 0, 1, 1], [], []>} : vector<64x32xbf16>, vector<32x32xbf16>, vector<64x32xf32> -> vector<64x32xf32>
    %c4 = arith.constant 4 : index
    %c0_52 = arith.constant 0 : index
    %116 = vector.load %arg6[%c4, %c0_52] : memref<8x32xf32, #tpu.memory_space<vmem>>, vector<1x32xf32>
    %117 = vector.broadcast %116 : vector<1x32xf32> to vector<64x32xf32>
    %118 = arith.addf %115, %117 : vector<64x32xf32>
    %119 = arith.addf %103, %118 : vector<64x32xf32>
    %120 = arith.truncf %119 : vector<64x32xf32> to vector<64x32xbf16>
    %c0_53 = arith.constant 0 : index
    %c96_54 = arith.constant 96 : index
    %121 = vector.load %arg5[%c0_53, %c96_54] : memref<32x160xbf16, #tpu.memory_space<vmem>>, vector<32x32xbf16>
    %cst_55 = arith.constant dense<0.000000e+00> : vector<64x32xf32>
    %122 = tpu.matmul %120, %121, %cst_55 {dimension_numbers = #tpu.dot_dimension_numbers<[1], [0], [0], [1], [0, 0, 1, 1], [], []>} : vector<64x32xbf16>, vector<32x32xbf16>, vector<64x32xf32> -> vector<64x32xf32>
    %c5 = arith.constant 5 : index
    %c0_56 = arith.constant 0 : index
    %123 = vector.load %arg6[%c5, %c0_56] : memref<8x32xf32, #tpu.memory_space<vmem>>, vector<1x32xf32>
    %124 = vector.broadcast %123 : vector<1x32xf32> to vector<64x32xf32>
    %125 = arith.addf %122, %124 : vector<64x32xf32>
    %c0_57 = arith.constant 0 : index
    %c0_58 = arith.constant 0 : index
    %126 = vector.load %arg7[%c0_57, %c0_58] : memref<64x32xf32, #tpu.memory_space<vmem>>, vector<64x32xf32>
    tpu.vector_store %arg7[%c0_57, %c0_58], %125 {strides = array<i32>} : memref<64x32xf32, #tpu.memory_space<vmem>>, vector<64x32xf32>,
    %127 = arith.truncf %103 : vector<64x32xf32> to vector<64x32xbf16>
    %c0_59 = arith.constant 0 : index
    %c128_60 = arith.constant 128 : index
    %128 = vector.load %arg5[%c0_59, %c128_60] : memref<32x160xbf16, #tpu.memory_space<vmem>>, vector<32x32xbf16>
    %cst_61 = arith.constant dense<0.000000e+00> : vector<64x32xf32>
    %129 = tpu.matmul %127, %128, %cst_61 {dimension_numbers = #tpu.dot_dimension_numbers<[1], [0], [0], [1], [0, 0, 1, 1], [], []>} : vector<64x32xbf16>, vector<32x32xbf16>, vector<64x32xf32> -> vector<64x32xf32>
    %c6 = arith.constant 6 : index
    %c0_62 = arith.constant 0 : index
    %130 = vector.load %arg6[%c6, %c0_62] : memref<8x32xf32, #tpu.memory_space<vmem>>, vector<1x32xf32>
    %131 = vector.broadcast %130 : vector<1x32xf32> to vector<64x32xf32>
    %132 = arith.addf %129, %131 : vector<64x32xf32>
    %c0_63 = arith.constant 0 : index
    %c0_64 = arith.constant 0 : index
    %133 = vector.load %arg8[%c0_63, %c0_64] : memref<64x32xf32, #tpu.memory_space<vmem>>, vector<64x32xf32>
    tpu.vector_store %arg8[%c0_63, %c0_64], %132 {strides = array<i32>} : memref<64x32xf32, #tpu.memory_space<vmem>>, vector<64x32xf32>,
    return
  }
  func.func @transform_0(%arg0: i32) -> (i32, i32) {
    %c0_i32 = arith.constant 0 : i32
    %c0_i32_0 = arith.constant 0 : i32
    return %arg0, %c0_i32 : i32, i32
  }
  func.func @transform_1(%arg0: i32) -> (i32, i32) {
    %c0_i32 = arith.constant 0 : i32
    %c0_i32_0 = arith.constant 0 : i32
    return %arg0, %c0_i32 : i32, i32
  }
  func.func @transform_2(%arg0: i32) -> (i32, i32) {
    %c0_i32 = arith.constant 0 : i32
    %c0_i32_0 = arith.constant 0 : i32
    %c0_i32_1 = arith.constant 0 : i32
    return %c0_i32, %c0_i32_0 : i32, i32
  }
  func.func @transform_3(%arg0: i32) -> (i32, i32) {
    %c0_i32 = arith.constant 0 : i32
    %c0_i32_0 = arith.constant 0 : i32
    %c0_i32_1 = arith.constant 0 : i32
    return %c0_i32, %c0_i32_0 : i32, i32
  }
  func.func @transform_4(%arg0: i32) -> (i32, i32) {
    %c0_i32 = arith.constant 0 : i32
    %c0_i32_0 = arith.constant 0 : i32
    %c0_i32_1 = arith.constant 0 : i32
    return %c0_i32, %c0_i32_0 : i32, i32
  }
  func.func @transform_5(%arg0: i32) -> (i32, i32) {
    %c0_i32 = arith.constant 0 : i32
    %c0_i32_0 = arith.constant 0 : i32
    %c0_i32_1 = arith.constant 0 : i32
    return %c0_i32, %c0_i32_0 : i32, i32
  }
  func.func @transform_6(%arg0: i32) -> (i32, i32) {
    %c0_i32 = arith.constant 0 : i32
    %c0_i32_0 = arith.constant 0 : i32
    return %arg0, %c0_i32 : i32, i32
  }
  func.func @transform_7(%arg0: i32) -> (i32, i32) {
    %c0_i32 = arith.constant 0 : i32
    %c0_i32_0 = arith.constant 0 : i32
    return %arg0, %c0_i32 : i32, i32
  }
}

module attributes {stable_mosaic.version = 11 : i64} {
  func.func @_head_kernel(%arg0: i32, %arg1: memref<128x32xf32, #tpu.memory_space<vmem>>, %arg2: memref<128x32xf32, #tpu.memory_space<vmem>>, %arg3: memref<16x32xf32, #tpu.memory_space<vmem>>, %arg4: memref<8x32xf32, #tpu.memory_space<vmem>>, %arg5: memref<8x32xf32, #tpu.memory_space<vmem>>, %arg6: memref<32x384xbf16, #tpu.memory_space<vmem>>, %arg7: memref<64x96xbf16, #tpu.memory_space<vmem>>, %arg8: memref<24x64xf32, #tpu.memory_space<vmem>>, %arg9: memref<16x64xf32, #tpu.memory_space<vmem>>) attributes {dimension_semantics = [#tpu.dimension_semantics<arbitrary>], iteration_bounds = array<i64: 1>, scalar_prefetch = 0 : i64, scratch_operands = 0 : i64, tpu.core_type = #tpu.core_type<tc>, window_params = [{pipeline_mode = #tpu.pipeline_mode<synchronous>, transform_indices = @transform_0, window_bounds = array<i64: 128, 32>}, {pipeline_mode = #tpu.pipeline_mode<synchronous>, transform_indices = @transform_1, window_bounds = array<i64: 128, 32>}, {pipeline_mode = #tpu.pipeline_mode<synchronous>, transform_indices = @transform_2, window_bounds = array<i64: 16, 32>}, {pipeline_mode = #tpu.pipeline_mode<synchronous>, transform_indices = @transform_3, window_bounds = array<i64: 8, 32>}, {pipeline_mode = #tpu.pipeline_mode<synchronous>, transform_indices = @transform_4, window_bounds = array<i64: 8, 32>}, {pipeline_mode = #tpu.pipeline_mode<synchronous>, transform_indices = @transform_5, window_bounds = array<i64: 32, 384>}, {pipeline_mode = #tpu.pipeline_mode<synchronous>, transform_indices = @transform_6, window_bounds = array<i64: 64, 96>}, {pipeline_mode = #tpu.pipeline_mode<synchronous>, transform_indices = @transform_7, window_bounds = array<i64: 24, 64>}, {pipeline_mode = #tpu.pipeline_mode<synchronous>, transform_indices = @transform_8, window_bounds = array<i64: 16, 64>}]} {
    %c0 = arith.constant 0 : index
    %c0_0 = arith.constant 0 : index
    %0 = vector.load %arg3[%c0, %c0_0] : memref<16x32xf32, #tpu.memory_space<vmem>>, vector<16x32xf32>
    %1 = arith.negf %0 : vector<16x32xf32>
    %2 = math.exp %1 : vector<16x32xf32>
    %cst = arith.constant 1.000000e+00 : f32
    %3 = vector.broadcast %cst : f32 to vector<16x32xf32>
    %4 = arith.addf %3, %2 : vector<16x32xf32>
    %5 = arith.divf %3, %4 : vector<16x32xf32>
    %c0_1 = arith.constant 0 : index
    %c0_2 = arith.constant 0 : index
    %6 = vector.load %arg4[%c0_1, %c0_2] : memref<8x32xf32, #tpu.memory_space<vmem>>, vector<8x32xf32>
    %c0_3 = arith.constant 0 : index
    %c0_4 = arith.constant 0 : index
    %7 = vector.load %arg5[%c0_3, %c0_4] : memref<8x32xf32, #tpu.memory_space<vmem>>, vector<8x32xf32>
    %8 = tpu.concatenate %5, %7 in 0 : vector<16x32xf32>, vector<8x32xf32> -> vector<24x32xf32>
    %c0_5 = arith.constant 0 : index
    %c0_6 = arith.constant 0 : index
    %9 = vector.load %arg6[%c0_5, %c0_6] : memref<32x384xbf16, #tpu.memory_space<vmem>>, vector<32x32xbf16>
    %c0_7 = arith.constant 0 : index
    %c0_8 = arith.constant 0 : index
    %10 = vector.load %arg8[%c0_7, %c0_8] : memref<24x64xf32, #tpu.memory_space<vmem>>, vector<1x32xf32>
    %11 = arith.truncf %8 : vector<24x32xf32> to vector<24x32xbf16>
    %cst_9 = arith.constant dense<0.000000e+00> : vector<24x32xf32>
    %12 = tpu.matmul %11, %9, %cst_9 {dimension_numbers = #tpu.dot_dimension_numbers<[1], [0], [0], [1], [0, 0, 1, 1], [], []>} : vector<24x32xbf16>, vector<32x32xbf16>, vector<24x32xf32> -> vector<24x32xf32>
    %13 = vector.broadcast %10 : vector<1x32xf32> to vector<24x32xf32>
    %14 = arith.addf %12, %13 : vector<24x32xf32>
    %cst_10 = arith.constant 0.000000e+00 : f32
    %15 = vector.broadcast %cst_10 : f32 to vector<24x32xf32>
    %16 = arith.maximumf %14, %15 : vector<24x32xf32>
    %c0_11 = arith.constant 0 : index
    %c32 = arith.constant 32 : index
    %17 = vector.load %arg6[%c0_11, %c32] : memref<32x384xbf16, #tpu.memory_space<vmem>>, vector<32x32xbf16>
    %c1 = arith.constant 1 : index
    %c0_12 = arith.constant 0 : index
    %18 = vector.load %arg8[%c1, %c0_12] : memref<24x64xf32, #tpu.memory_space<vmem>>, vector<1x32xf32>
    %19 = arith.truncf %16 : vector<24x32xf32> to vector<24x32xbf16>
    %cst_13 = arith.constant dense<0.000000e+00> : vector<24x32xf32>
    %20 = tpu.matmul %19, %17, %cst_13 {dimension_numbers = #tpu.dot_dimension_numbers<[1], [0], [0], [1], [0, 0, 1, 1], [], []>} : vector<24x32xbf16>, vector<32x32xbf16>, vector<24x32xf32> -> vector<24x32xf32>
    %21 = vector.broadcast %18 : vector<1x32xf32> to vector<24x32xf32>
    %22 = arith.addf %20, %21 : vector<24x32xf32>
    %23 = vector.extract_strided_slice %22 {offsets = [0, 0], sizes = [16, 32], strides = [1, 1]} : vector<24x32xf32> to vector<16x32xf32>
    %24 = vector.extract_strided_slice %22 {offsets = [16, 0], sizes = [8, 32], strides = [1, 1]} : vector<24x32xf32> to vector<8x32xf32>
    %c0_14 = arith.constant 0 : index
    %c64 = arith.constant 64 : index
    %25 = vector.load %arg6[%c0_14, %c64] : memref<32x384xbf16, #tpu.memory_space<vmem>>, vector<32x32xbf16>
    %c2 = arith.constant 2 : index
    %c0_15 = arith.constant 0 : index
    %26 = vector.load %arg8[%c2, %c0_15] : memref<24x64xf32, #tpu.memory_space<vmem>>, vector<1x32xf32>
    %27 = arith.truncf %23 : vector<16x32xf32> to vector<16x32xbf16>
    %cst_16 = arith.constant dense<0.000000e+00> : vector<16x32xf32>
    %28 = tpu.matmul %27, %25, %cst_16 {dimension_numbers = #tpu.dot_dimension_numbers<[1], [0], [0], [1], [0, 0, 1, 1], [], []>} : vector<16x32xbf16>, vector<32x32xbf16>, vector<16x32xf32> -> vector<16x32xf32>
    %29 = vector.broadcast %26 : vector<1x32xf32> to vector<16x32xf32>
    %30 = arith.addf %28, %29 : vector<16x32xf32>
    %31 = arith.addf %6, %24 : vector<8x32xf32>
    %32 = tpu.concatenate %23, %31 in 0 : vector<16x32xf32>, vector<8x32xf32> -> vector<24x32xf32>
    %c0_17 = arith.constant 0 : index
    %c96 = arith.constant 96 : index
    %33 = vector.load %arg6[%c0_17, %c96] : memref<32x384xbf16, #tpu.memory_space<vmem>>, vector<32x32xbf16>
    %c3 = arith.constant 3 : index
    %c0_18 = arith.constant 0 : index
    %34 = vector.load %arg8[%c3, %c0_18] : memref<24x64xf32, #tpu.memory_space<vmem>>, vector<1x32xf32>
    %35 = arith.truncf %32 : vector<24x32xf32> to vector<24x32xbf16>
    %cst_19 = arith.constant dense<0.000000e+00> : vector<24x32xf32>
    %36 = tpu.matmul %35, %33, %cst_19 {dimension_numbers = #tpu.dot_dimension_numbers<[1], [0], [0], [1], [0, 0, 1, 1], [], []>} : vector<24x32xbf16>, vector<32x32xbf16>, vector<24x32xf32> -> vector<24x32xf32>
    %37 = vector.broadcast %34 : vector<1x32xf32> to vector<24x32xf32>
    %38 = arith.addf %36, %37 : vector<24x32xf32>
    %c0_20 = arith.constant 0 : index
    %c128 = arith.constant 128 : index
    %39 = vector.load %arg6[%c0_20, %c128] : memref<32x384xbf16, #tpu.memory_space<vmem>>, vector<32x32xbf16>
    %c4 = arith.constant 4 : index
    %c0_21 = arith.constant 0 : index
    %40 = vector.load %arg8[%c4, %c0_21] : memref<24x64xf32, #tpu.memory_space<vmem>>, vector<1x32xf32>
    %41 = arith.truncf %6 : vector<8x32xf32> to vector<8x32xbf16>
    %cst_22 = arith.constant dense<0.000000e+00> : vector<8x32xf32>
    %42 = tpu.matmul %41, %39, %cst_22 {dimension_numbers = #tpu.dot_dimension_numbers<[1], [0], [0], [1], [0, 0, 1, 1], [], []>} : vector<8x32xbf16>, vector<32x32xbf16>, vector<8x32xf32> -> vector<8x32xf32>
    %43 = vector.broadcast %40 : vector<1x32xf32> to vector<8x32xf32>
    %44 = arith.addf %42, %43 : vector<8x32xf32>
    %c4_23 = arith.constant 4 : index
    %c0_24 = arith.constant 0 : index
    %45 = vector.load %arg8[%c4_23, %c0_24] : memref<24x64xf32, #tpu.memory_space<vmem>>, vector<1x32xf32>
    %46 = vector.shape_cast %45 : vector<1x32xf32> to vector<1x32xf32>
    %47 = vector.broadcast %46 : vector<1x32xf32> to vector<16x32xf32>
    %48 = tpu.concatenate %47, %44 in 0 : vector<16x32xf32>, vector<8x32xf32> -> vector<24x32xf32>
    %49 = arith.truncf %30 : vector<16x32xf32> to vector<16x32xbf16>
    %50 = arith.truncf %38 : vector<24x32xf32> to vector<24x32xbf16>
    %cst_25 = arith.constant dense<0.000000e+00> : vector<16x24xf32>
    %51 = tpu.matmul %49, %50, %cst_25 {dimension_numbers = #tpu.dot_dimension_numbers<[1], [1], [0], [0], [0, 0, 1, 0], [], []>} : vector<16x32xbf16>, vector<24x32xbf16>, vector<16x24xf32> -> vector<16x24xf32>
    %cst_26 = arith.constant dense<0xFF800000> : vector<16xf32>
    %52 = vector.multi_reduction <maximumf>, %51, %cst_26 [1] : vector<16x24xf32> to vector<16xf32>
    %53 = vector.shape_cast %52 : vector<16xf32> to vector<16x1xf32>
    %54 = vector.broadcast %53 : vector<16x1xf32> to vector<16x24xf32>
    %55 = arith.subf %51, %54 : vector<16x24xf32>
    %56 = math.exp %55 : vector<16x24xf32>
    %cst_27 = arith.constant dense<0.000000e+00> : vector<16xf32>
    %57 = vector.multi_reduction <add>, %56, %cst_27 [1] : vector<16x24xf32> to vector<16xf32>
    %58 = vector.shape_cast %57 : vector<16xf32> to vector<16x1xf32>
    %59 = arith.truncf %56 : vector<16x24xf32> to vector<16x24xbf16>
    %60 = arith.truncf %48 : vector<24x32xf32> to vector<24x32xbf16>
    %cst_28 = arith.constant dense<0.000000e+00> : vector<16x32xf32>
    %61 = tpu.matmul %59, %60, %cst_28 {dimension_numbers = #tpu.dot_dimension_numbers<[1], [0], [0], [1], [0, 0, 1, 1], [], []>} : vector<16x24xbf16>, vector<24x32xbf16>, vector<16x32xf32> -> vector<16x32xf32>
    %62 = tpu.reciprocal %58 {approx = true} : vector<16x1xf32> -> vector<16x1xf32>
    %63 = vector.broadcast %62 : vector<16x1xf32> to vector<16x32xf32>
    %64 = arith.mulf %61, %63 : vector<16x32xf32>
    %c0_29 = arith.constant 0 : index
    %c160 = arith.constant 160 : index
    %65 = vector.load %arg6[%c0_29, %c160] : memref<32x384xbf16, #tpu.memory_space<vmem>>, vector<32x32xbf16>
    %c5 = arith.constant 5 : index
    %c0_30 = arith.constant 0 : index
    %66 = vector.load %arg8[%c5, %c0_30] : memref<24x64xf32, #tpu.memory_space<vmem>>, vector<1x32xf32>
    %67 = arith.truncf %64 : vector<16x32xf32> to vector<16x32xbf16>
    %cst_31 = arith.constant dense<0.000000e+00> : vector<16x32xf32>
    %68 = tpu.matmul %67, %65, %cst_31 {dimension_numbers = #tpu.dot_dimension_numbers<[1], [0], [0], [1], [0, 0, 1, 1], [], []>} : vector<16x32xbf16>, vector<32x32xbf16>, vector<16x32xf32> -> vector<16x32xf32>
    %69 = vector.broadcast %66 : vector<1x32xf32> to vector<16x32xf32>
    %70 = arith.addf %68, %69 : vector<16x32xf32>
    %cst_32 = arith.constant dense<0.000000e+00> : vector<16xf32>
    %71 = vector.multi_reduction <add>, %70, %cst_32 [1] : vector<16x32xf32> to vector<16xf32>
    %72 = vector.shape_cast %71 : vector<16xf32> to vector<16x1xf32>
    %cst_33 = arith.constant 3.125000e-02 : f32
    %73 = vector.broadcast %cst_33 : f32 to vector<16x1xf32>
    %74 = arith.mulf %72, %73 : vector<16x1xf32>
    %75 = vector.broadcast %74 : vector<16x1xf32> to vector<16x32xf32>
    %76 = arith.subf %70, %75 : vector<16x32xf32>
    %77 = arith.mulf %76, %76 : vector<16x32xf32>
    %cst_34 = arith.constant dense<0.000000e+00> : vector<16xf32>
    %78 = vector.multi_reduction <add>, %77, %cst_34 [1] : vector<16x32xf32> to vector<16xf32>
    %79 = vector.shape_cast %78 : vector<16xf32> to vector<16x1xf32>
    %cst_35 = arith.constant 3.125000e-02 : f32
    %80 = vector.broadcast %cst_35 : f32 to vector<16x1xf32>
    %81 = arith.mulf %79, %80 : vector<16x1xf32>
    %cst_36 = arith.constant 9.99999974E-6 : f32
    %82 = vector.broadcast %cst_36 : f32 to vector<16x1xf32>
    %83 = arith.addf %81, %82 : vector<16x1xf32>
    %84 = math.rsqrt %83 : vector<16x1xf32>
    %85 = vector.broadcast %84 : vector<16x1xf32> to vector<16x32xf32>
    %86 = arith.mulf %76, %85 : vector<16x32xf32>
    %c8 = arith.constant 8 : index
    %c0_37 = arith.constant 0 : index
    %87 = vector.load %arg8[%c8, %c0_37] : memref<24x64xf32, #tpu.memory_space<vmem>>, vector<1x32xf32>
    %88 = vector.broadcast %87 : vector<1x32xf32> to vector<16x32xf32>
    %89 = arith.mulf %86, %88 : vector<16x32xf32>
    %c9 = arith.constant 9 : index
    %c0_38 = arith.constant 0 : index
    %90 = vector.load %arg8[%c9, %c0_38] : memref<24x64xf32, #tpu.memory_space<vmem>>, vector<1x32xf32>
    %91 = vector.broadcast %90 : vector<1x32xf32> to vector<16x32xf32>
    %92 = arith.addf %89, %91 : vector<16x32xf32>
    %93 = arith.addf %92, %23 : vector<16x32xf32>
    %c0_39 = arith.constant 0 : index
    %c192 = arith.constant 192 : index
    %94 = vector.load %arg6[%c0_39, %c192] : memref<32x384xbf16, #tpu.memory_space<vmem>>, vector<32x32xbf16>
    %c6 = arith.constant 6 : index
    %c0_40 = arith.constant 0 : index
    %95 = vector.load %arg8[%c6, %c0_40] : memref<24x64xf32, #tpu.memory_space<vmem>>, vector<1x32xf32>
    %96 = arith.truncf %93 : vector<16x32xf32> to vector<16x32xbf16>
    %cst_41 = arith.constant dense<0.000000e+00> : vector<16x32xf32>
    %97 = tpu.matmul %96, %94, %cst_41 {dimension_numbers = #tpu.dot_dimension_numbers<[1], [0], [0], [1], [0, 0, 1, 1], [], []>} : vector<16x32xbf16>, vector<32x32xbf16>, vector<16x32xf32> -> vector<16x32xf32>
    %98 = vector.broadcast %95 : vector<1x32xf32> to vector<16x32xf32>
    %99 = arith.addf %97, %98 : vector<16x32xf32>
    %c0_42 = arith.constant 0 : index
    %c0_43 = arith.constant 0 : index
    %100 = vector.load %arg1[%c0_42, %c0_43] : memref<128x32xf32, #tpu.memory_space<vmem>>, vector<128x32xf32>
    %c0_44 = arith.constant 0 : index
    %c0_45 = arith.constant 0 : index
    %101 = vector.load %arg2[%c0_44, %c0_45] : memref<128x32xf32, #tpu.memory_space<vmem>>, vector<128x32xf32>
    %102 = arith.truncf %99 : vector<16x32xf32> to vector<16x32xbf16>
    %103 = arith.truncf %100 : vector<128x32xf32> to vector<128x32xbf16>
    %cst_46 = arith.constant dense<0.000000e+00> : vector<16x128xf32>
    %104 = tpu.matmul %102, %103, %cst_46 {dimension_numbers = #tpu.dot_dimension_numbers<[1], [1], [0], [0], [0, 0, 1, 0], [], []>} : vector<16x32xbf16>, vector<128x32xbf16>, vector<16x128xf32> -> vector<16x128xf32>
    %cst_47 = arith.constant dense<0xFF800000> : vector<16xf32>
    %105 = vector.multi_reduction <maximumf>, %104, %cst_47 [1] : vector<16x128xf32> to vector<16xf32>
    %106 = vector.shape_cast %105 : vector<16xf32> to vector<16x1xf32>
    %107 = vector.broadcast %106 : vector<16x1xf32> to vector<16x128xf32>
    %108 = arith.subf %104, %107 : vector<16x128xf32>
    %109 = math.exp %108 : vector<16x128xf32>
    %cst_48 = arith.constant dense<0.000000e+00> : vector<16xf32>
    %110 = vector.multi_reduction <add>, %109, %cst_48 [1] : vector<16x128xf32> to vector<16xf32>
    %111 = vector.shape_cast %110 : vector<16xf32> to vector<16x1xf32>
    %112 = arith.truncf %109 : vector<16x128xf32> to vector<16x128xbf16>
    %113 = arith.truncf %101 : vector<128x32xf32> to vector<128x32xbf16>
    %cst_49 = arith.constant dense<0.000000e+00> : vector<16x32xf32>
    %114 = tpu.matmul %112, %113, %cst_49 {dimension_numbers = #tpu.dot_dimension_numbers<[1], [0], [0], [1], [0, 0, 1, 1], [], []>} : vector<16x128xbf16>, vector<128x32xbf16>, vector<16x32xf32> -> vector<16x32xf32>
    %115 = tpu.reciprocal %111 {approx = true} : vector<16x1xf32> -> vector<16x1xf32>
    %116 = vector.broadcast %115 : vector<16x1xf32> to vector<16x32xf32>
    %117 = arith.mulf %114, %116 : vector<16x32xf32>
    %c0_50 = arith.constant 0 : index
    %c224 = arith.constant 224 : index
    %118 = vector.load %arg6[%c0_50, %c224] : memref<32x384xbf16, #tpu.memory_space<vmem>>, vector<32x32xbf16>
    %c7 = arith.constant 7 : index
    %c0_51 = arith.constant 0 : index
    %119 = vector.load %arg8[%c7, %c0_51] : memref<24x64xf32, #tpu.memory_space<vmem>>, vector<1x32xf32>
    %120 = arith.truncf %117 : vector<16x32xf32> to vector<16x32xbf16>
    %cst_52 = arith.constant dense<0.000000e+00> : vector<16x32xf32>
    %121 = tpu.matmul %120, %118, %cst_52 {dimension_numbers = #tpu.dot_dimension_numbers<[1], [0], [0], [1], [0, 0, 1, 1], [], []>} : vector<16x32xbf16>, vector<32x32xbf16>, vector<16x32xf32> -> vector<16x32xf32>
    %122 = vector.broadcast %119 : vector<1x32xf32> to vector<16x32xf32>
    %123 = arith.addf %121, %122 : vector<16x32xf32>
    %124 = arith.addf %92, %123 : vector<16x32xf32>
    %cst_53 = arith.constant dense<0.000000e+00> : vector<16xf32>
    %125 = vector.multi_reduction <add>, %124, %cst_53 [1] : vector<16x32xf32> to vector<16xf32>
    %126 = vector.shape_cast %125 : vector<16xf32> to vector<16x1xf32>
    %cst_54 = arith.constant 3.125000e-02 : f32
    %127 = vector.broadcast %cst_54 : f32 to vector<16x1xf32>
    %128 = arith.mulf %126, %127 : vector<16x1xf32>
    %129 = vector.broadcast %128 : vector<16x1xf32> to vector<16x32xf32>
    %130 = arith.subf %124, %129 : vector<16x32xf32>
    %131 = arith.mulf %130, %130 : vector<16x32xf32>
    %cst_55 = arith.constant dense<0.000000e+00> : vector<16xf32>
    %132 = vector.multi_reduction <add>, %131, %cst_55 [1] : vector<16x32xf32> to vector<16xf32>
    %133 = vector.shape_cast %132 : vector<16xf32> to vector<16x1xf32>
    %cst_56 = arith.constant 3.125000e-02 : f32
    %134 = vector.broadcast %cst_56 : f32 to vector<16x1xf32>
    %135 = arith.mulf %133, %134 : vector<16x1xf32>
    %cst_57 = arith.constant 9.99999974E-6 : f32
    %136 = vector.broadcast %cst_57 : f32 to vector<16x1xf32>
    %137 = arith.addf %135, %136 : vector<16x1xf32>
    %138 = math.rsqrt %137 : vector<16x1xf32>
    %139 = vector.broadcast %138 : vector<16x1xf32> to vector<16x32xf32>
    %140 = arith.mulf %130, %139 : vector<16x32xf32>
    %c10 = arith.constant 10 : index
    %c0_58 = arith.constant 0 : index
    %141 = vector.load %arg8[%c10, %c0_58] : memref<24x64xf32, #tpu.memory_space<vmem>>, vector<1x32xf32>
    %142 = vector.broadcast %141 : vector<1x32xf32> to vector<16x32xf32>
    %143 = arith.mulf %140, %142 : vector<16x32xf32>
    %c11 = arith.constant 11 : index
    %c0_59 = arith.constant 0 : index
    %144 = vector.load %arg8[%c11, %c0_59] : memref<24x64xf32, #tpu.memory_space<vmem>>, vector<1x32xf32>
    %145 = vector.broadcast %144 : vector<1x32xf32> to vector<16x32xf32>
    %146 = arith.addf %143, %145 : vector<16x32xf32>
    %c0_60 = arith.constant 0 : index
    %c320 = arith.constant 320 : index
    %147 = vector.load %arg6[%c0_60, %c320] : memref<32x384xbf16, #tpu.memory_space<vmem>>, vector<32x64xbf16>
    %c14 = arith.constant 14 : index
    %c0_61 = arith.constant 0 : index
    %148 = vector.load %arg8[%c14, %c0_61] : memref<24x64xf32, #tpu.memory_space<vmem>>, vector<1x64xf32>
    %149 = arith.truncf %146 : vector<16x32xf32> to vector<16x32xbf16>
    %cst_62 = arith.constant dense<0.000000e+00> : vector<16x64xf32>
    %150 = tpu.matmul %149, %147, %cst_62 {dimension_numbers = #tpu.dot_dimension_numbers<[1], [0], [0], [1], [0, 0, 1, 1], [], []>} : vector<16x32xbf16>, vector<32x64xbf16>, vector<16x64xf32> -> vector<16x64xf32>
    %151 = vector.broadcast %148 : vector<1x64xf32> to vector<16x64xf32>
    %152 = arith.addf %150, %151 : vector<16x64xf32>
    %cst_63 = arith.constant 0.000000e+00 : f32
    %153 = vector.broadcast %cst_63 : f32 to vector<16x64xf32>
    %154 = arith.maximumf %152, %153 : vector<16x64xf32>
    %c0_64 = arith.constant 0 : index
    %c0_65 = arith.constant 0 : index
    %155 = vector.load %arg7[%c0_64, %c0_65] : memref<64x96xbf16, #tpu.memory_space<vmem>>, vector<64x32xbf16>
    %c15 = arith.constant 15 : index
    %c0_66 = arith.constant 0 : index
    %156 = vector.load %arg8[%c15, %c0_66] : memref<24x64xf32, #tpu.memory_space<vmem>>, vector<1x32xf32>
    %157 = arith.truncf %154 : vector<16x64xf32> to vector<16x64xbf16>
    %cst_67 = arith.constant dense<0.000000e+00> : vector<16x32xf32>
    %158 = tpu.matmul %157, %155, %cst_67 {dimension_numbers = #tpu.dot_dimension_numbers<[1], [0], [0], [1], [0, 0, 1, 1], [], []>} : vector<16x64xbf16>, vector<64x32xbf16>, vector<16x32xf32> -> vector<16x32xf32>
    %159 = vector.broadcast %156 : vector<1x32xf32> to vector<16x32xf32>
    %160 = arith.addf %158, %159 : vector<16x32xf32>
    %161 = arith.addf %146, %160 : vector<16x32xf32>
    %cst_68 = arith.constant dense<0.000000e+00> : vector<16xf32>
    %162 = vector.multi_reduction <add>, %161, %cst_68 [1] : vector<16x32xf32> to vector<16xf32>
    %163 = vector.shape_cast %162 : vector<16xf32> to vector<16x1xf32>
    %cst_69 = arith.constant 3.125000e-02 : f32
    %164 = vector.broadcast %cst_69 : f32 to vector<16x1xf32>
    %165 = arith.mulf %163, %164 : vector<16x1xf32>
    %166 = vector.broadcast %165 : vector<16x1xf32> to vector<16x32xf32>
    %167 = arith.subf %161, %166 : vector<16x32xf32>
    %168 = arith.mulf %167, %167 : vector<16x32xf32>
    %cst_70 = arith.constant dense<0.000000e+00> : vector<16xf32>
    %169 = vector.multi_reduction <add>, %168, %cst_70 [1] : vector<16x32xf32> to vector<16xf32>
    %170 = vector.shape_cast %169 : vector<16xf32> to vector<16x1xf32>
    %cst_71 = arith.constant 3.125000e-02 : f32
    %171 = vector.broadcast %cst_71 : f32 to vector<16x1xf32>
    %172 = arith.mulf %170, %171 : vector<16x1xf32>
    %cst_72 = arith.constant 9.99999974E-6 : f32
    %173 = vector.broadcast %cst_72 : f32 to vector<16x1xf32>
    %174 = arith.addf %172, %173 : vector<16x1xf32>
    %175 = math.rsqrt %174 : vector<16x1xf32>
    %176 = vector.broadcast %175 : vector<16x1xf32> to vector<16x32xf32>
    %177 = arith.mulf %167, %176 : vector<16x32xf32>
    %c12 = arith.constant 12 : index
    %c0_73 = arith.constant 0 : index
    %178 = vector.load %arg8[%c12, %c0_73] : memref<24x64xf32, #tpu.memory_space<vmem>>, vector<1x32xf32>
    %179 = vector.broadcast %178 : vector<1x32xf32> to vector<16x32xf32>
    %180 = arith.mulf %177, %179 : vector<16x32xf32>
    %c13 = arith.constant 13 : index
    %c0_74 = arith.constant 0 : index
    %181 = vector.load %arg8[%c13, %c0_74] : memref<24x64xf32, #tpu.memory_space<vmem>>, vector<1x32xf32>
    %182 = vector.broadcast %181 : vector<1x32xf32> to vector<16x32xf32>
    %183 = arith.addf %180, %182 : vector<16x32xf32>
    %c0_75 = arith.constant 0 : index
    %c256 = arith.constant 256 : index
    %184 = vector.load %arg6[%c0_75, %c256] : memref<32x384xbf16, #tpu.memory_space<vmem>>, vector<32x64xbf16>
    %c16 = arith.constant 16 : index
    %c0_76 = arith.constant 0 : index
    %185 = vector.load %arg8[%c16, %c0_76] : memref<24x64xf32, #tpu.memory_space<vmem>>, vector<1x64xf32>
    %186 = arith.truncf %183 : vector<16x32xf32> to vector<16x32xbf16>
    %cst_77 = arith.constant dense<0.000000e+00> : vector<16x64xf32>
    %187 = tpu.matmul %186, %184, %cst_77 {dimension_numbers = #tpu.dot_dimension_numbers<[1], [0], [0], [1], [0, 0, 1, 1], [], []>} : vector<16x32xbf16>, vector<32x64xbf16>, vector<16x64xf32> -> vector<16x64xf32>
    %188 = vector.broadcast %185 : vector<1x64xf32> to vector<16x64xf32>
    %189 = arith.addf %187, %188 : vector<16x64xf32>
    %cst_78 = arith.constant 0.000000e+00 : f32
    %190 = vector.broadcast %cst_78 : f32 to vector<16x64xf32>
    %191 = arith.maximumf %189, %190 : vector<16x64xf32>
    %c0_79 = arith.constant 0 : index
    %c32_80 = arith.constant 32 : index
    %192 = vector.load %arg7[%c0_79, %c32_80] : memref<64x96xbf16, #tpu.memory_space<vmem>>, vector<64x64xbf16>
    %c17 = arith.constant 17 : index
    %c0_81 = arith.constant 0 : index
    %193 = vector.load %arg8[%c17, %c0_81] : memref<24x64xf32, #tpu.memory_space<vmem>>, vector<1x64xf32>
    %194 = arith.truncf %191 : vector<16x64xf32> to vector<16x64xbf16>
    %cst_82 = arith.constant dense<0.000000e+00> : vector<16x64xf32>
    %195 = tpu.matmul %194, %192, %cst_82 {dimension_numbers = #tpu.dot_dimension_numbers<[1], [0], [0], [1], [0, 0, 1, 1], [], []>} : vector<16x64xbf16>, vector<64x64xbf16>, vector<16x64xf32> -> vector<16x64xf32>
    %196 = vector.broadcast %193 : vector<1x64xf32> to vector<16x64xf32>
    %197 = arith.addf %195, %196 : vector<16x64xf32>
    %cst_83 = arith.constant 9.99999974E-6 : f32
    %cst_84 = arith.constant 0.999989986 : f32
    %198 = vector.broadcast %cst_83 : f32 to vector<16x32xf32>
    %199 = arith.maximumf %198, %5 : vector<16x32xf32>
    %200 = vector.broadcast %cst_84 : f32 to vector<16x32xf32>
    %201 = arith.minimumf %200, %199 : vector<16x32xf32>
    %cst_85 = arith.constant 1.000000e+00 : f32
    %202 = vector.broadcast %cst_85 : f32 to vector<16x32xf32>
    %203 = arith.subf %202, %201 : vector<16x32xf32>
    %204 = arith.divf %201, %203 : vector<16x32xf32>
    %205 = math.log %204 : vector<16x32xf32>
    %206 = tpu.iota {dimensions = array<i32: 1>} : vector<16x64xi32>
    %c32_i32 = arith.constant 32 : i32
    %207 = vector.broadcast %c32_i32 : i32 to vector<16x64xi32>
    %208 = arith.cmpi eq, %206, %207 : vector<16x64xi32>
    %209 = vector.extract_strided_slice %205 {offsets = [0, 0], sizes = [16, 1], strides = [1, 1]} : vector<16x32xf32> to vector<16x1xf32>
    %cst_86 = arith.constant 0.000000e+00 : f32
    %210 = vector.shape_cast %209 : vector<16x1xf32> to vector<16x1xf32>
    %211 = vector.broadcast %210 : vector<16x1xf32> to vector<16x64xf32>
    %212 = vector.broadcast %cst_86 : f32 to vector<16x64xf32>
    %213 = arith.select %208, %211, %212 : vector<16x64xi1>, vector<16x64xf32>
    %c33_i32 = arith.constant 33 : i32
    %214 = vector.broadcast %c33_i32 : i32 to vector<16x64xi32>
    %215 = arith.cmpi eq, %206, %214 : vector<16x64xi32>
    %216 = vector.extract_strided_slice %205 {offsets = [0, 1], sizes = [16, 1], strides = [1, 1]} : vector<16x32xf32> to vector<16x1xf32>
    %cst_87 = arith.constant 0.000000e+00 : f32
    %217 = vector.shape_cast %216 : vector<16x1xf32> to vector<16x1xf32>
    %218 = vector.broadcast %217 : vector<16x1xf32> to vector<16x64xf32>
    %219 = vector.broadcast %cst_87 : f32 to vector<16x64xf32>
    %220 = arith.select %215, %218, %219 : vector<16x64xi1>, vector<16x64xf32>
    %221 = arith.addf %213, %220 : vector<16x64xf32>
    %c36_i32 = arith.constant 36 : i32
    %222 = vector.broadcast %c36_i32 : i32 to vector<16x64xi32>
    %223 = arith.cmpi eq, %206, %222 : vector<16x64xi32>
    %224 = vector.extract_strided_slice %205 {offsets = [0, 2], sizes = [16, 1], strides = [1, 1]} : vector<16x32xf32> to vector<16x1xf32>
    %cst_88 = arith.constant 0.000000e+00 : f32
    %225 = vector.shape_cast %224 : vector<16x1xf32> to vector<16x1xf32>
    %226 = vector.broadcast %225 : vector<16x1xf32> to vector<16x64xf32>
    %227 = vector.broadcast %cst_88 : f32 to vector<16x64xf32>
    %228 = arith.select %223, %226, %227 : vector<16x64xi1>, vector<16x64xf32>
    %229 = arith.addf %221, %228 : vector<16x64xf32>
    %230 = arith.addf %197, %229 : vector<16x64xf32>
    %c32_i32_89 = arith.constant 32 : i32
    %231 = vector.broadcast %c32_i32_89 : i32 to vector<16x64xi32>
    %232 = arith.cmpi eq, %206, %231 : vector<16x64xi32>
    %c33_i32_90 = arith.constant 33 : i32
    %233 = vector.broadcast %c33_i32_90 : i32 to vector<16x64xi32>
    %234 = arith.cmpi eq, %206, %233 : vector<16x64xi32>
    %235 = arith.ori %232, %234 : vector<16x64xi1>
    %c36_i32_91 = arith.constant 36 : i32
    %236 = vector.broadcast %c36_i32_91 : i32 to vector<16x64xi32>
    %237 = arith.cmpi eq, %206, %236 : vector<16x64xi32>
    %238 = arith.ori %235, %237 : vector<16x64xi1>
    %239 = arith.negf %230 : vector<16x64xf32>
    %240 = math.exp %239 : vector<16x64xf32>
    %cst_92 = arith.constant 1.000000e+00 : f32
    %241 = vector.broadcast %cst_92 : f32 to vector<16x64xf32>
    %242 = arith.addf %241, %240 : vector<16x64xf32>
    %243 = arith.divf %241, %242 : vector<16x64xf32>
    %244 = arith.select %238, %243, %230 : vector<16x64xi1>, vector<16x64xf32>
    %c0_93 = arith.constant 0 : index
    %c0_94 = arith.constant 0 : index
    %245 = vector.load %arg9[%c0_93, %c0_94] : memref<16x64xf32, #tpu.memory_space<vmem>>, vector<16x64xf32>
    tpu.vector_store %arg9[%c0_93, %c0_94], %244 {strides = array<i32>} : memref<16x64xf32, #tpu.memory_space<vmem>>, vector<16x64xf32>,
    return
  }
  func.func @transform_0(%arg0: i32) -> (i32, i32) {
    %c0_i32 = arith.constant 0 : i32
    %c0_i32_0 = arith.constant 0 : i32
    %c0_i32_1 = arith.constant 0 : i32
    return %c0_i32, %c0_i32_0 : i32, i32
  }
  func.func @transform_1(%arg0: i32) -> (i32, i32) {
    %c0_i32 = arith.constant 0 : i32
    %c0_i32_0 = arith.constant 0 : i32
    %c0_i32_1 = arith.constant 0 : i32
    return %c0_i32, %c0_i32_0 : i32, i32
  }
  func.func @transform_2(%arg0: i32) -> (i32, i32) {
    %c0_i32 = arith.constant 0 : i32
    %c0_i32_0 = arith.constant 0 : i32
    %c0_i32_1 = arith.constant 0 : i32
    return %c0_i32, %c0_i32_0 : i32, i32
  }
  func.func @transform_3(%arg0: i32) -> (i32, i32) {
    %c0_i32 = arith.constant 0 : i32
    %c0_i32_0 = arith.constant 0 : i32
    %c0_i32_1 = arith.constant 0 : i32
    return %c0_i32, %c0_i32_0 : i32, i32
  }
  func.func @transform_4(%arg0: i32) -> (i32, i32) {
    %c0_i32 = arith.constant 0 : i32
    %c0_i32_0 = arith.constant 0 : i32
    %c0_i32_1 = arith.constant 0 : i32
    return %c0_i32, %c0_i32_0 : i32, i32
  }
  func.func @transform_5(%arg0: i32) -> (i32, i32) {
    %c0_i32 = arith.constant 0 : i32
    %c0_i32_0 = arith.constant 0 : i32
    %c0_i32_1 = arith.constant 0 : i32
    return %c0_i32, %c0_i32_0 : i32, i32
  }
  func.func @transform_6(%arg0: i32) -> (i32, i32) {
    %c0_i32 = arith.constant 0 : i32
    %c0_i32_0 = arith.constant 0 : i32
    %c0_i32_1 = arith.constant 0 : i32
    return %c0_i32, %c0_i32_0 : i32, i32
  }
  func.func @transform_7(%arg0: i32) -> (i32, i32) {
    %c0_i32 = arith.constant 0 : i32
    %c0_i32_0 = arith.constant 0 : i32
    %c0_i32_1 = arith.constant 0 : i32
    return %c0_i32, %c0_i32_0 : i32, i32
  }
  func.func @transform_8(%arg0: i32) -> (i32, i32) {
    %c0_i32 = arith.constant 0 : i32
    %c0_i32_0 = arith.constant 0 : i32
    %c0_i32_1 = arith.constant 0 : i32
    return %c0_i32, %c0_i32_0 : i32, i32
  }
}

</mosaic_0001>

<bundles_post_ra>
// kernel: streampetr_forward.2
= control target key start
LH: loop header
LB: loop body
LE: loop exit
PB: predicated region body
PF: predicated region fallthrough
CT: control target
= control target key end

     0   :  { %s2842_s24 = smov 0   ;;  %s3518_s0 = inlined_call_operand.vmem [shape: bf16[1152,27], index: 0, kind: input, shape index: {}]   ;;  %s3519_s1 = inlined_call_operand.vmem [shape: f32[128,32], index: 1, kind: input, shape index: {}]   ;;  %s3520_s2 = inlined_call_operand.vmem [shape: bf16[27,16], index: 2, kind: input, shape index: {}]   ;;  %s3521_s3 = inlined_call_operand.vmem [shape: bf16[144,32], index: 3, kind: input, shape index: {}]   ;;  %s3522_s4 = inlined_call_operand.vmem [shape: bf16[32,160], index: 4, kind: input, shape index: {}]   ;;  %s3523_s5 = inlined_call_operand.vmem [shape: f32[8,32], index: 5, kind: input, shape index: {}]   ;;  %s3524_s6 = inlined_call_operand.vmem [shape: f32[128,32], index: 6, kind: output, shape index: {0}]   ;;  %s3525_s7 = inlined_call_operand.vmem [shape: f32[128,32], index: 7, kind: output, shape index: {1}]  }
   0x1 LB: > { %s2402_s25 = sadd.s32 4294967295, %s2794_s24   ;;  %p2406_p0 = scmp.ge.s32.totalorder %s2794_s24, 1  ;;  %s2794_s24 = sphi %s2842_s24, %s18_s24  }
   0x2   : > { %p252_p1 = scmp.lt.s32.totalorder %s2794_s24, 3 }
   0x4   : > { %p253_p2 = pnand %p2406_p0, %p252_p1 }
   0x5   : > { %s294_s30 = smul.u32 (!%p253_p2), 72, %s2402_s25  ;;  %s2799_s11 = smov (!%p253_p2), 96  }
   0x6   : > { %256 = sbr.rel (%p253_p2) target bundleno = 1077 (0x435), region = 44  ;;  %s2800_s18 = smov (!%p253_p2), 64  }
   0x7   : > { %p295_p3 = scmp.lt.s32.totalorder (!%p253_p2), %s294_s30, 143  ;;  %s2408_s27 = sshll.u32 (!%p253_p2), %s2402_s25, 3 }
   0x8   : > { %p301_p4 = scmp.lt.s32.totalorder (!%p253_p2), %s2408_s27, 15  ;;  %s2801_s8 = smov (!%p253_p2), 32  }
   0xb   : > { %v2564_v0 = vld [vmem:[%s3520_s2 + $0x8] sm:$0xf]  ;;  %v2749_v1 = vld [vmem:[%s3520_s2 + $0x8] sm:$0x30]  ;;  %vm697_vm0 = vcmask 1044480   ;;  %vm698_vm1 = vcmask 1045504   ;;  %v1037_v17 = vlaneseq }
   0xc   : > { %v2565_v2 = vor.u32 %v2749_v1, %v2564_v0  ;;  %v2796_v3 = vmov 65535   ;;  %s3547_s30 = smov (!%p295_p3, %s294_s30), 143  ;;  %v2748_v7 = vld [vmem:[%s3520_s2] sm:$0xff]  ;;  %vm588_vm2 = vcmask 220160   ;;  %vm2797_vm4 = vmmov 1   ;;  %s3549_s27 = smov (!%p301_p4, %s2408_s27), 15 }
   0xd   : > { %v699_v4 = vsel %vm697_vm0, 4294967295, %v2796_v3  ;;  %s2407_s10 = sshll.u32 %s3547_s30, 2  ;;  %v2750_v16 = vld [vmem:[%s3521_s3] sm:$0xff]  ;;  %v2890_v19 = vshrl.u32 %v1037_v17, 7  ;;  %vm2897_vm5 = vmpackc.low %vm2797_vm4, %vm2797_vm4  ;;  %vm1260_vm7 = vcmask 130048   ;;  %s3382_s28 = sshll.u32 %s3549_s27, 3 }
   0xe   : > { %v700_v5 = vsel %vm698_vm1, %v699_v4, 0  ;;  %s2864_s13 = scalar_lea.vmem %s3518_s0, %s2407_s10  ;;  %1347 = vmatpush.bf16.msra.mxu2 %v2750_v16  ;;  %v2888_v18 = vld [vmem:[%s3523_s5] ss:$0 sm:$0xff]  ;;  %s3393_s30 = scalar_lea.vmem %s3519_s1, %s3382_s28 }
   0xf   : > { %v702_v6 = vand.u32 %v2565_v2, %v700_v5  ;;  %v2712_v8 = vld [vmem:[%s2864_s13] sm:$0xff]  ;;  %v2713_v9 = vld [vmem:[%s2864_s13 + $0x8] sm:$0xff]  ;;  %v2714_v10 = vld [vmem:[%s2864_s13 + $0x10] sm:$0xff]  ;;  %v1039_v23 = vadd.s32 8, %v2890_v19  ;;  %v1040_v35 = vadd.s32 16, %v2890_v19  ;;  %v1041_v41 = vadd.s32 24, %v2890_v19 }
  0x10   : > { %v2715_v11 = vld [vmem:[%s2864_s13 + $0x18] sm:$0xff]  ;;  %v2716_v12 = vld [vmem:[%s2864_s13 + $0x20] sm:$0xff]  ;;  %v2717_v13 = vld [vmem:[%s2864_s13 + $0x28] sm:$0xff]  ;;  %v1042_v55 = vadd.s32 32, %v2890_v19  ;;  %v1043_v61 = vadd.s32 40, %v2890_v19 }
  0x11   : > { %710 = vmatpush.bf16.msra.mxu0 %v702_v6  ;;  %2763 = vmatpush.bf16.msra.mxu3 %v702_v6  ;;  %v2718_v14 = vld [vmem:[%s2864_s13 + $0x30] sm:$0xff]  ;;  %v2719_v15 = vld [vmem:[%s2864_s13 + $0x38] sm:$0xff]  ;;  %v2720_v20 = vld [vmem:[%s2864_s13 + $0x40] sm:$0xff]  ;;  %v1065_v25 = vand.u32 7, %v1039_v23  ;;  %v1072_v43 = vand.u32 7, %v1040_v35  ;;  %v1079_v45 = vand.u32 7, %v1041_v41 }
  0x12   : > { %v2721_v36 = vld [vmem:[%s2864_s13 + $0x48] sm:$0xff]  ;;  %v2722_v56 = vld [vmem:[%s2864_s13 + $0x50] sm:$0xff]  ;;  %v1086_v63 = vand.u32 7, %v1042_v55  ;;  %v1093_v1 = vand.u32 7, %v1043_v61 }
  0x13   : > { %vm1151_vm3 = vcmp.eq.s32.totalorder %v1065_v25, 0  ;;  %vm1152_vm8 = vcmp.eq.s32.totalorder %v1072_v43, 0  ;;  %vm1153_vm9 = vcmp.eq.s32.totalorder %v1079_v45, 0  ;;  %v2725_v55 = vld [vmem:[%s2864_s13 + $0x68] sm:$0xff] }
  0x14   : > { %vm2901_vm6 = vmpackc.low %vm1151_vm3, %vm1151_vm3  ;;  %vm1154_vm12 = vcmp.eq.s32.totalorder %v1086_v63, 0  ;;  %vm1155_vm13 = vcmp.eq.s32.totalorder %v1093_v1, 0 }
  0x15   : > { %711 = vmatpush.bf16.msra.mxu0 %v2748_v7  ;;  %2764 = vmatpush.bf16.msra.mxu3 %v2748_v7  ;;  %vm2916_vm10 = vmpackc.low %vm1152_vm8, %vm1152_vm8  ;;  %vm2798_vm8 = vmmov 0  }
  0x16   : > { %vm2920_vm11 = vmpackc.low %vm1153_vm9, %vm1153_vm9 }
  0x17   : > { %vm2935_vm14 = vmpackc.low %vm1154_vm12, %vm1154_vm12 }
  0x18   : > { %2566 = vmatmul.msk.bf16.vlgmr.msra.gmra.mxu0 %vm588_vm2, %v2712_v8  ;;  %vm2939_vm15 = vmpackc.low %vm1155_vm13, %vm1155_vm13 }
  0x19   : > { %vm2978_vm9 = vmpackc.low %vm2798_vm8, %vm2798_vm8 }
  0x28   : > { %2567 = vmatmul.msk.bf16.gmra.mxu0 %vm588_vm2, %v2713_v9 }
  0x38   : > { %2568 = vmatmul.msk.bf16.gmra.mxu0 %vm588_vm2, %v2714_v10 }
  0x48   : > { %2569 = vmatmul.msk.bf16.gmra.mxu0 %vm588_vm2, %v2715_v11  ;;  %v1044_v11 = vadd.s32 48, %v2890_v19 }
  0x4a   : > { %v1100_v23 = vand.u32 7, %v1044_v11 }
  0x4c   : > { %vm1156_vm0 = vcmp.eq.s32.totalorder %v1100_v23, 0 }
  0x4d   : > { %vm2959_vm3 = vmpackc.low %vm1156_vm0, %vm1156_vm0 }
  0x58   : > { %2570 = vmatmul.msk.bf16.gmra.mxu0 %vm588_vm2, %v2716_v12  ;;  %v2723_v12 = vld [vmem:[%s2864_s13 + $0x58] sm:$0xff] }
  0x68   : > { %2571 = vmatmul.msk.bf16.gmra.mxu0 %vm588_vm2, %v2717_v13  ;;  %v2751_v13 = vld [vmem:[%s3521_s3 + $0x8] sm:$0xff] }
  0x69   : > { %1280 = vmatpush.bf16.msra.mxu1 %v2751_v13  ;;  %v2738_v13 = vld [vmem:[%s2864_s13 + $0xd0] sm:$0xff] }
  0x78   : > { %2572 = vmatmul.msk.bf16.gmra.mxu0 %vm588_vm2, %v2718_v14 }
  0x88   : > { %2573 = vmatmul.msk.bf16.gmra.mxu0 %vm588_vm2, %v2719_v15 }
  0x95   : > { %v713_v21 = vpop.f32.mrf.mxu0 }
  0x96   : > { %v714_v22 = vadd.f32 %v2888_v18, %v713_v21  ;;  %v2735_v21 = vld [vmem:[%s2864_s13 + $0xb8] sm:$0xff] }
  0x97   : > { %2589 = vmatmul.msk.bf16.vlgmr.msra.gmra.mxu3 %vm588_vm2, %v2735_v21 }
  0x98   : > { %2574 = vmatmul.msk.bf16.gmra.mxu0 %vm588_vm2, %v2720_v20  ;;  %v893_v24 = vmax.f32 %v714_v22, 0.0  ;;  %v1045_v20 = vadd.s32 56, %v2890_v19 }
  0x9a   : > { %v965_v27 = vpack.c.bf16 %v893_v24, %v893_v24  ;;  %v1107_v25 = vand.u32 7, %v1045_v20 }
  0x9c   : > { %v1190_v32 = vsel %vm2897_vm5, 0, %v965_v27  ;;  %vm1157_vm1 = vcmp.eq.s32.totalorder %v1107_v25, 0  ;;  %v2727_v25 = vld [vmem:[%s2864_s13 + $0x78] sm:$0xff] }
  0x9d   : > { %v715_v26 = vpop.f32.mrf.mxu0  ;;  %v1310_v37 = vunpack.c.l.b16 %v1190_v32  ;;  %vm2963_vm4 = vmpackc.low %vm1157_vm1, %vm1157_vm1 }
  0x9e   : > { %v716_v28 = vadd.f32 %v2888_v18, %v715_v26 }
  0xa0   : > { %v894_v30 = vmax.f32 %v716_v28, 0.0 }
  0xa2   : > { %v966_v33 = vpack.c.bf16 %v894_v30, %v894_v30 }
  0xa4   : > { %v1191_v34 = vsel %vm2901_vm6, 0, %v966_v33 }
  0xa5   : > { %v1311_v38 = vunpack.c.l.b16 %v1191_v34  ;;  %v718_v39 = vpop.f32.mrf.mxu0 }
  0xa6   : > { %v719_v40 = vadd.f32 %v2888_v18, %v718_v39 }
  0xa7   : > { %v1318_v42 = vpack.c.b16 %v1311_v38, %v1310_v37  ;;  %v2724_v37 = vld [vmem:[%s2864_s13 + $0x60] sm:$0xff] }
  0xa8   : > { %2575 = vmatmul.msk.bf16.gmra.mxu0 %vm588_vm2, %v2721_v36  ;;  %v895_v44 = vmax.f32 %v719_v40, 0.0 }
  0xa9   : > { %2614 = vmatmul.msk.bf16.vlgmr.msra.gmra.mxu2 %vm1260_vm7, %v1318_v42  ;;  %v2736_v42 = vld [vmem:[%s2864_s13 + $0xc0] sm:$0xff] }
  0xaa   : > { %v967_v47 = vpack.c.bf16 %v895_v44, %v895_v44  ;;  %2590 = vmatmul.msk.bf16.gmra.mxu3 %vm588_vm2, %v2736_v42 }
  0xac   : > { %v1192_v52 = vsel %vm2916_vm10, 0, %v967_v47 }
  0xad   : > { %v720_v46 = vpop.f32.mrf.mxu0  ;;  %v1312_v57 = vunpack.c.l.b16 %v1192_v52 }
  0xae   : > { %v721_v48 = vadd.f32 %v2888_v18, %v720_v46 }
  0xb0   : > { %v896_v50 = vmax.f32 %v721_v48, 0.0 }
  0xb2   : > { %v968_v53 = vpack.c.bf16 %v896_v50, %v896_v50 }
  0xb4   : > { %v1193_v54 = vsel %vm2920_vm11, 0, %v968_v53 }
  0xb5   : > { %v1313_v58 = vunpack.c.l.b16 %v1193_v54  ;;  %v723_v59 = vpop.f32.mrf.mxu0 }
  0xb6   : > { %v724_v60 = vadd.f32 %v2888_v18, %v723_v59 }
  0xb7   : > { %v1319_v62 = vpack.c.b16 %v1313_v58, %v1312_v57 }
  0xb8   : > { %2576 = vmatmul.msk.bf16.gmra.mxu0 %vm588_vm2, %v2722_v56  ;;  %v897_v0 = vmax.f32 %v724_v60, 0.0  ;;  %v2737_v60 = vld [vmem:[%s2864_s13 + $0xc8] sm:$0xff] }
  0xb9   : > { %2615 = vmatmul.msk.bf16.gmra.mxu2 %vm1260_vm7, %v1319_v62 }
  0xba   : > { %v969_v3 = vpack.c.bf16 %v897_v0, %v897_v0  ;;  %2591 = vmatmul.msk.bf16.gmra.mxu3 %vm588_vm2, %v2737_v60 }
  0xbc   : > { %v1194_v8 = vsel %vm2935_vm14, 0, %v969_v3 }
  0xbd   : > { %v725_v2 = vpop.f32.mrf.mxu0  ;;  %v1314_v14 = vunpack.c.l.b16 %v1194_v8  ;;  %v2726_v8 = vld [vmem:[%s2864_s13 + $0x70] sm:$0xff] }
  0xbe   : > { %v726_v4 = vadd.f32 %v2888_v18, %v725_v2 }
  0xc0   : > { %v898_v6 = vmax.f32 %v726_v4, 0.0 }
  0xc2   : > { %v970_v9 = vpack.c.bf16 %v898_v6, %v898_v6 }
  0xc4   : > { %v1195_v10 = vsel %vm2939_vm15, 0, %v970_v9 }
  0xc5   : > { %v1315_v15 = vunpack.c.l.b16 %v1195_v10  ;;  %v728_v16 = vpop.f32.mrf.mxu0 }
  0xc6   : > { %v729_v17 = vadd.f32 %v2888_v18, %v728_v16 }
  0xc7   : > { %v1320_v22 = vpack.c.b16 %v1315_v15, %v1314_v14 }
  0xc8   : > { %2577 = vmatmul.msk.bf16.gmra.mxu0 %vm588_vm2, %v2723_v12  ;;  %v899_v24 = vmax.f32 %v729_v17, 0.0 }
  0xc9   : > { %2616 = vmatmul.msk.bf16.gmra.mxu2 %vm1260_vm7, %v1320_v22 }
  0xca   : > { %v971_v27 = vpack.c.bf16 %v899_v24, %v899_v24  ;;  %2592 = vmatmul.msk.bf16.gmra.mxu3 %vm588_vm2, %v2738_v13 }
  0xcc   : > { %v1196_v34 = vsel %vm2959_vm3, 0, %v971_v27 }
  0xcd   : > { %v730_v26 = vpop.f32.mrf.mxu0  ;;  %v1316_v38 = vunpack.c.l.b16 %v1196_v34 }
  0xce   : > { %v731_v28 = vadd.f32 %v2888_v18, %v730_v26  ;;  %v2752_v26 = vld [vmem:[%s3521_s3 + $0x10] sm:$0xff] }
  0xcf   : > { %1424 = vmatpush.bf16.msrb.mxu1 %v2752_v26 }
  0xd0   : > { %v900_v32 = vmax.f32 %v731_v28, 0.0 }
  0xd2   : > { %v972_v35 = vpack.c.bf16 %v900_v32, %v900_v32 }
  0xd4   : > { %v1197_v36 = vsel %vm2963_vm4, 0, %v972_v35  ;;  %v2739_v35 = vld [vmem:[%s2864_s13 + $0xd8] sm:$0xff] }
  0xd5   : > { %v1317_v39 = vunpack.c.l.b16 %v1197_v36  ;;  %v733_v40 = vpop.f32.mrf.mxu0 }
  0xd6   : > { %v734_v41 = vadd.f32 %v2888_v18, %v733_v40 }
  0xd7   : > { %v1321_v43 = vpack.c.b16 %v1317_v39, %v1316_v38 }
  0xd8   : > { %2578 = vmatmul.msk.bf16.gmra.mxu0 %vm588_vm2, %v2724_v37  ;;  %v901_v44 = vmax.f32 %v734_v41, 0.0 }
  0xd9   : > { %2617 = vmatmul.msk.bf16.gmra.mxu2 %vm1260_vm7, %v1321_v43 }
  0xda   : > { %v973_v46 = vpack.c.bf16 %v901_v44, %v901_v44  ;;  %2593 = vmatmul.msk.bf16.gmra.mxu3 %vm588_vm2, %v2739_v35 }
  0xdc   : > { %v1224_v52 = vsel %vm2897_vm5, 0, %v973_v46 }
  0xdd   : > { %v735_v45 = vpop.f32.mrf.mxu0  ;;  %v1242_v56 = vunpack.c.l.b16 %v1224_v52 }
  0xde   : > { %v736_v47 = vadd.f32 %v2888_v18, %v735_v45  ;;  %v2728_v45 = vld [vmem:[%s2864_s13 + $0x80] sm:$0xff] }
  0xe0   : > { %v902_v48 = vmax.f32 %v736_v47, 0.0 }
  0xe2   : > { %v974_v53 = vpack.c.bf16 %v902_v48, %v902_v48 }
  0xe4   : > { %v1225_v54 = vsel %vm2978_vm9, 0, %v974_v53  ;;  %v2740_v53 = vld [vmem:[%s2864_s13 + $0xe0] sm:$0xff] }
  0xe5   : > { %v1243_v57 = vunpack.c.l.b16 %v1225_v54  ;;  %v738_v58 = vpop.f32.mrf.mxu0 }
  0xe6   : > { %v739_v59 = vadd.f32 %v2888_v18, %v738_v58 }
  0xe7   : > { %v1250_v61 = vpack.c.b16 %v1243_v57, %v1242_v56 }
  0xe8   : > { %2579 = vmatmul.msk.bf16.gmra.mxu0 %vm588_vm2, %v2725_v55  ;;  %v903_v62 = vmax.f32 %v739_v59, 0.0 }
  0xe9   : > { %2606 = vmatmul.msk.bf16.vlgmr.msra.gmra.mxu1 %vm1260_vm7, %v1250_v61 }
  0xea   : > { %v975_v0 = vpack.c.bf16 %v903_v62, %v903_v62  ;;  %2594 = vmatmul.msk.bf16.gmra.mxu3 %vm588_vm2, %v2740_v53 }
  0xec   : > { %v1226_v3 = vsel %vm2978_vm9, 0, %v975_v0 }
  0xed   : > { %v740_v63 = vpop.f32.mrf.mxu0  ;;  %v1244_v9 = vunpack.c.l.b16 %v1226_v3 }
  0xee   : > { %v741_v1 = vadd.f32 %v2888_v18, %v740_v63  ;;  %v2729_v63 = vld [vmem:[%s2864_s13 + $0x88] sm:$0xff] }
  0xf0   : > { %v904_v2 = vmax.f32 %v741_v1, 0.0 }
  0xf2   : > { %v976_v4 = vpack.c.bf16 %v904_v2, %v904_v2 }
  0xf4   : > { %v1227_v6 = vsel %vm2978_vm9, 0, %v976_v4  ;;  %v2741_v4 = vld [vmem:[%s2864_s13 + $0xe8] sm:$0xff] }
  0xf5   : > { %v1245_v10 = vunpack.c.l.b16 %v1227_v6  ;;  %v743_v11 = vpop.f32.mrf.mxu0 }
  0xf6   : > { %v744_v12 = vadd.f32 %v2888_v18, %v743_v11 }
  0xf7   : > { %v1251_v14 = vpack.c.b16 %v1245_v10, %v1244_v9 }
  0xf8   : > { %2580 = vmatmul.msk.bf16.gmra.mxu0 %vm588_vm2, %v2726_v8  ;;  %v905_v15 = vmax.f32 %v744_v12, 0.0 }
  0xf9   : > { %2607 = vmatmul.msk.bf16.gmra.mxu1 %vm1260_vm7, %v1251_v14 }
  0xfa   : > { %v977_v17 = vpack.c.bf16 %v905_v15, %v905_v15  ;;  %2595 = vmatmul.msk.bf16.gmra.mxu3 %vm588_vm2, %v2741_v4  ;;  %v2730_v15 = vld [vmem:[%s2864_s13 + $0x90] sm:$0xff] }
  0xfc   : > { %v1228_v22 = vsel %vm2978_vm9, 0, %v977_v17 }
  0xfd   : > { %v745_v16 = vpop.f32.mrf.mxu0  ;;  %v1246_v27 = vunpack.c.l.b16 %v1228_v22  ;;  %v2742_v22 = vld [vmem:[%s2864_s13 + $0xf0] sm:$0xff] }
  0xfe   : > { %v746_v20 = vadd.f32 %v2888_v18, %v745_v16 }
 0x100   : > { %v906_v21 = vmax.f32 %v746_v20, 0.0 }
 0x102   : > { %v978_v23 = vpack.c.bf16 %v906_v21, %v906_v21 }
 0x104   : > { %v1229_v24 = vsel %vm2978_vm9, 0, %v978_v23 }
 0x105   : > { %v1247_v28 = vunpack.c.l.b16 %v1229_v24  ;;  %v748_v32 = vpop.f32.mrf.mxu0 }
 0x106   : > { %v749_v34 = vadd.f32 %v2888_v18, %v748_v32 }
 0x107   : > { %v1252_v36 = vpack.c.b16 %v1247_v28, %v1246_v27 }
 0x108   : > { %2581 = vmatmul.msk.bf16.gmra.mxu0 %vm588_vm2, %v2727_v25  ;;  %v907_v37 = vmax.f32 %v749_v34, 0.0 }
 0x109   : > { %2608 = vmatmul.msk.bf16.gmra.mxu1 %vm1260_vm7, %v1252_v36  ;;  %v2731_v36 = vld [vmem:[%s2864_s13 + $0x98] sm:$0xff] }
 0x10a   : > { %v979_v39 = vpack.c.bf16 %v907_v37, %v907_v37  ;;  %2596 = vmatmul.msk.bf16.gmra.mxu3 %vm588_vm2, %v2742_v22  ;;  %v2753_v37 = vld [vmem:[%s3521_s3 + $0x18] sm:$0xff] }
 0x10b   : > { %1533 = vmatpush.bf16.msra.mxu1 %v2753_v37 }
 0x10c   : > { %v1230_v42 = vsel %vm2978_vm9, 0, %v979_v39 }
 0x10d   : > { %v750_v38 = vpop.f32.mrf.mxu0  ;;  %v1248_v46 = vunpack.c.l.b16 %v1230_v42  ;;  %v2743_v42 = vld [vmem:[%s2864_s13 + $0xf8] sm:$0xff] }
 0x10e   : > { %v751_v40 = vadd.f32 %v2888_v18, %v750_v38 }
 0x110   : > { %v908_v41 = vmax.f32 %v751_v40, 0.0 }
 0x112   : > { %v980_v43 = vpack.c.bf16 %v908_v41, %v908_v41 }
 0x114   : > { %v1231_v44 = vsel %vm2978_vm9, 0, %v980_v43 }
 0x115   : > { %v1249_v47 = vunpack.c.l.b16 %v1231_v44  ;;  %v753_v48 = vpop.f32.mrf.mxu0 }
 0x116   : > { %v754_v52 = vadd.f32 %v2888_v18, %v753_v48 }
 0x117   : > { %v1253_v54 = vpack.c.b16 %v1249_v47, %v1248_v46  ;;  %v2754_v47 = vld [vmem:[%s3521_s3 + $0x20] sm:$0xff] }
 0x118   : > { %2582 = vmatmul.msk.bf16.gmra.mxu0 %vm588_vm2, %v2728_v45  ;;  %v909_v55 = vmax.f32 %v754_v52, 0.0  ;;  %1610 = vmatpush.bf16.msrb.mxu2 %v2754_v47 }
 0x119   : > { %2609 = vmatmul.msk.bf16.gmra.mxu1 %vm1260_vm7, %v1253_v54 }
 0x11a   : > { %v981_v57 = vpack.c.bf16 %v909_v55, %v909_v55  ;;  %2597 = vmatmul.msk.bf16.gmra.mxu3 %vm588_vm2, %v2743_v42  ;;  %v3064_v45 = vpop.f32.mrf.mxu3  ;;  %v2734_v42 = vld [vmem:[%s2864_s13 + $0xb0] sm:$0xff] }
 0x11c   : > { %v1369_v60 = vsel %vm2897_vm5, 0, %v981_v57 }
 0x11d   : > { %v755_v56 = vpop.f32.mrf.mxu0  ;;  %v1387_v0 = vunpack.c.l.b16 %v1369_v60 }
 0x11e   : > { %v756_v58 = vadd.f32 %v2888_v18, %v755_v56 }
 0x120   : > { %v910_v59 = vmax.f32 %v756_v58, 0.0  ;;  %v2732_v58 = vld [vmem:[%s2864_s13 + $0xa0] sm:$0xff] }
 0x122   : > { %v982_v61 = vpack.c.bf16 %v910_v59, %v910_v59  ;;  %v3072_v56 = vpop.f32.mrf.mxu3 }
 0x124   : > { %v1370_v62 = vsel %vm2978_vm9, 0, %v982_v61 }
 0x125   : > { %v1388_v1 = vunpack.c.l.b16 %v1370_v62  ;;  %v758_v2 = vpop.f32.mrf.mxu0 }
 0x126   : > { %v759_v3 = vadd.f32 %v2888_v18, %v758_v2 }
 0x127   : > { %v1395_v6 = vpack.c.b16 %v1388_v1, %v1387_v0  ;;  %v1058_v1 = vand.u32 7, %v2890_v19  ;;  %v2755_v19 = vld [vmem:[%s3521_s3 + $0x28] sm:$0xff] }
 0x128   : > { %2583 = vmatmul.msk.bf16.gmra.mxu0 %vm588_vm2, %v2729_v63  ;;  %v911_v29 = vmax.f32 %v759_v3, 0.0  ;;  %v2744_v63 = vld [vmem:[%s2864_s13 + $0x100] sm:$0xff]  ;;  %2765 = vmatpush.bf16.msrb.mxu3 %v2755_v19 }
 0x129   : > { %2622 = vmatmul.msk.bf16.vlgmr.msrb.gmra.mxu1 %vm1260_vm7, %v1395_v6  ;;  %vm3085_vm5 = vcmp.eq.s32.totalorder %v1058_v1, 0  ;;  %1687 = vmatpush.bf16.msra.mxu2 %v2755_v19  ;;  %v831_v19 = vadd.f32 %v2888_v18, %v3072_v56 }
 0x12a   : > { %v983_v9 = vpack.c.bf16 %v911_v29, %v911_v29  ;;  %2598 = vmatmul.msk.bf16.gmra.mxu3 %vm588_vm2, %v2744_v63  ;;  %vm1470_vm12 = vmpackc.low %vm3085_vm5, %vm3085_vm5 }
 0x12c   : > { %v1371_v12 = vsel %vm2978_vm9, 0, %v983_v9  ;;  %v1349_v2 = vpop.f32.mrf.mxu2 }
 0x12d   : > { %v760_v8 = vpop.f32.mrf.mxu0  ;;  %v1389_v16 = vunpack.c.l.b16 %v1371_v12  ;;  %v3083_v50 = vpop.f32.mrf.mxu3 }
 0x12e   : > { %v761_v10 = vadd.f32 %v2888_v18, %v760_v8 }
 0x130   : > { %v912_v11 = vmax.f32 %v761_v10, 0.0 }
 0x132   : > { %v984_v13 = vpack.c.bf16 %v912_v11, %v912_v11 }
 0x134   : > { %v1372_v14 = vsel %vm2978_vm9, 0, %v984_v13  ;;  %v3103_v13 = vpop.f32.mrf.mxu2 }
 0x135   : > { %v1390_v17 = vunpack.c.l.b16 %v1372_v14  ;;  %v763_v20 = vpop.f32.mrf.mxu0  ;;  %v3101_v12 = vpop.f32.mrf.mxu3 }
 0x136   : > { %v764_v21 = vadd.f32 %v2888_v18, %v763_v20 }
 0x137   : > { %v1396_v23 = vpack.c.b16 %v1390_v17, %v1389_v16 }
 0x138   : > { %2584 = vmatmul.msk.bf16.gmra.mxu0 %vm588_vm2, %v2730_v15  ;;  %v913_v24 = vmax.f32 %v764_v21, 0.0  ;;  %v2733_v15 = vld [vmem:[%s2864_s13 + $0xa8] sm:$0xff] }
 0x139   : > { %2623 = vmatmul.msk.bf16.gmra.mxu1 %vm1260_vm7, %v1396_v23  ;;  %v2745_v23 = vld [vmem:[%s2864_s13 + $0x108] sm:$0xff] }
 0x13a   : > { %v985_v26 = vpack.c.bf16 %v913_v24, %v913_v24  ;;  %2599 = vmatmul.msk.bf16.gmra.mxu3 %vm588_vm2, %v2745_v23 }
 0x13c   : > { %v1373_v32 = vsel %vm2978_vm9, 0, %v985_v26 }
 0x13d   : > { %v765_v25 = vpop.f32.mrf.mxu0  ;;  %v1391_v38 = vunpack.c.l.b16 %v1373_v32  ;;  %v1354_v32 = vpop.f32.mrf.mxu2 }
 0x13e   : > { %v766_v27 = vadd.f32 %v2888_v18, %v765_v25 }
 0x140   : > { %v914_v28 = vmax.f32 %v766_v27, 0.0  ;;  %v3115_v27 = vpop.f32.mrf.mxu3 }
 0x142   : > { %v986_v34 = vpack.c.bf16 %v914_v28, %v914_v28 }
 0x144   : > { %v1374_v35 = vsel %vm2978_vm9, 0, %v986_v34 }
 0x145   : > { %v1392_v39 = vunpack.c.l.b16 %v1374_v35  ;;  %v768_v40 = vpop.f32.mrf.mxu0 }
 0x146   : > { %v769_v41 = vadd.f32 %v2888_v18, %v768_v40 }
 0x147   : > { %v1397_v43 = vpack.c.b16 %v1392_v39, %v1391_v38 }
 0x148   : > { %2585 = vmatmul.msk.bf16.gmra.mxu0 %vm588_vm2, %v2731_v36  ;;  %v915_v44 = vmax.f32 %v769_v41, 0.0  ;;  %v3122_v40 = vpop.f32.mrf.mxu3 }
 0x149   : > { %2624 = vmatmul.msk.bf16.gmra.mxu1 %vm1260_vm7, %v1397_v43 }
 0x14a   : > { %v987_v48 = vpack.c.bf16 %v915_v44, %v915_v44 }
 0x14c   : > { %v1375_v54 = vsel %vm2978_vm9, 0, %v987_v48 }
 0x14d   : > { %v770_v46 = vpop.f32.mrf.mxu0  ;;  %v1393_v59 = vunpack.c.l.b16 %v1375_v54 }
 0x14e   : > { %v771_v52 = vadd.f32 %v2888_v18, %v770_v46 }
 0x150   : > { %v916_v53 = vmax.f32 %v771_v52, 0.0  ;;  %v2746_v52 = vld [vmem:[%s2864_s13 + $0x110] sm:$0xff] }
 0x151   : > { %2600 = vmatmul.msk.bf16.gmra.mxu3 %vm588_vm2, %v2746_v52 }
 0x152   : > { %v988_v55 = vpack.c.bf16 %v916_v53, %v916_v53 }
 0x154   : > { %v1376_v57 = vsel %vm2978_vm9, 0, %v988_v55  ;;  %v3131_v55 = vpop.f32.mrf.mxu2 }
 0x155   : > { %v1394_v60 = vunpack.c.l.b16 %v1376_v57  ;;  %v773_v61 = vpop.f32.mrf.mxu0 }
 0x156   : > { %v774_v62 = vadd.f32 %v2888_v18, %v773_v61 }
 0x157   : > { %v1398_v0 = vpack.c.b16 %v1394_v60, %v1393_v59 }
 0x158   : > { %2586 = vmatmul.msk.bf16.gmra.mxu0 %vm588_vm2, %v2732_v58  ;;  %v917_v3 = vmax.f32 %v774_v62, 0.0  ;;  %v3136_v58 = vpop.f32.mrf.mxu3 }
 0x159   : > { %2625 = vmatmul.msk.bf16.gmra.mxu1 %vm1260_vm7, %v1398_v0 }
 0x15a   : > { %v989_v29 = vpack.c.bf16 %v917_v3, %v917_v3 }
 0x15c   : > { %v1478_v10 = vsel %vm1470_vm12, 0, %v989_v29  ;;  %v1359_v0 = vpop.f32.mrf.mxu2 }
 0x15d   : > { %v775_v6 = vpop.f32.mrf.mxu0  ;;  %v1496_v16 = vunpack.c.l.b16 %v1478_v10 }
 0x15e   : > { %v776_v8 = vadd.f32 %v2888_v18, %v775_v6  ;;  %v829_v6 = vadd.f32 %v2888_v18, %v3064_v45  ;;  %v2760_v45 = vld [vmem:[%s3522_s4 + $0x14] sm:$0xf0] }
 0x160   : > { %v918_v9 = vmax.f32 %v776_v8, 0.0  ;;  %v3143_v3 = vpop.f32.mrf.mxu3 }
 0x162   : > { %v990_v11 = vpack.c.bf16 %v918_v9, %v918_v9 }
 0x164   : > { %v1479_v14 = vsel %vm2901_vm6, 0, %v990_v11 }
 0x165   : > { %v1497_v17 = vunpack.c.l.b16 %v1479_v14  ;;  %v778_v20 = vpop.f32.mrf.mxu0 }
 0x166   : > { %v779_v21 = vadd.f32 %v2888_v18, %v778_v20  ;;  %v1282_v22 = vpop.f32.mrf.mxu1 }
 0x167   : > { %v1504_v24 = vpack.c.b16 %v1497_v17, %v1496_v16  ;;  %v3110_v25 = vadd.f32 %v1349_v2, %v1282_v22  ;;  %v2747_v16 = vld [vmem:[%s2864_s13 + $0x118] sm:$0xff]  ;;  %v940_v22 = vmax.f32 %v831_v19, 0.0  ;;  %s310_s13 = scalar_lea.vmem %s3524_s6, %s3382_s28 }
 0x168   : > { %2587 = vmatmul.msk.bf16.gmra.mxu0 %vm588_vm2, %v2733_v15  ;;  %v919_v26 = vmax.f32 %v779_v21, 0.0  ;;  %v2680_v15 = vld [vmem:[%s3522_s4 + $0x10] sm:$0xf]  ;;  %v939_v21 = vmax.f32 %v829_v6, 0.0  ;;  %2601 = vmatmul.msk.bf16.gmra.mxu3 %vm588_vm2, %v2747_v16 }
 0x169   : > { %2630 = vmatmul.msk.bf16.vlgmr.msra.gmra.mxu1 %vm1260_vm7, %v1504_v24  ;;  %v3161_v20 = vor.u32 %v2760_v45, %v2680_v15  ;;  %v3167_v24 = vpop.f32.mrf.mxu3 }
 0x16a   : > { %v991_v34 = vpack.c.bf16 %v919_v26, %v919_v26  ;;  %v3169_v26 = vpop.f32.mrf.mxu2 }
 0x16b   : > { %2054 = vrot.lane.b32.xlu0 %v3161_v20, %s2799_s11  ;;  %2115 = vrot.lane.b32.xlu1 %v3161_v20, %s2800_s18 }
 0x16c   : > { %v1480_v38 = vsel %vm2916_vm10, 0, %v991_v34  ;;  %2176 = vrot.lane.b32.xlu2 %v3161_v20, %s2801_s8 }
 0x16d   : > { %v780_v28 = vpop.f32.mrf.mxu0  ;;  %v1498_v43 = vunpack.c.l.b16 %v1480_v38 }
 0x16e   : > { %v781_v35 = vadd.f32 %v2888_v18, %v780_v28  ;;  %v3118_v36 = vpop.f32.mrf.mxu1  ;;  %v1011_v28 = vpack.c.bf16 %v939_v21, %v939_v21 }
 0x170   : > { %v920_v37 = vmax.f32 %v781_v35, 0.0  ;;  %v2756_v35 = vld [vmem:[%s3521_s3 + $0x30] sm:$0xff] }
 0x171   : > { %1772 = vmatpush.bf16.msrb.mxu1 %v2756_v35  ;;  %v3184_v52 = vpop.f32.mrf.mxu3  ;;  %v2676_v35 = vld [vmem:[%s3522_s4] sm:$0xf] }
 0x172   : > { %v992_v39 = vpack.c.bf16 %v920_v37, %v920_v37 }
 0x174   : > { %v1481_v41 = vsel %vm2920_vm11, 0, %v992_v39 }
 0x175   : > { %v1499_v44 = vunpack.c.l.b16 %v1481_v41  ;;  %v783_v46 = vpop.f32.mrf.mxu0  ;;  %v1656_v41 = vunpack.c.l.b16 %v1011_v28  ;;  %2015 = vmatpush.bf16.msra.mxu1 %v3161_v20  ;;  %v841_v28 = vadd.f32 %v2888_v18, %v3122_v40  ;;  %v2044_v20 = vld [vmem:[%s3393_s30 + $0x30] sm:$0xff] }
 0x176   : > { %v784_v47 = vadd.f32 %v2888_v18, %v783_v46  ;;  %v1287_v48 = vpop.f32.mrf.mxu1  ;;  %v836_v46 = vadd.f32 %v2888_v18, %v3101_v12 }
 0x177   : > { %v3129_v53 = vadd.f32 %v1354_v32, %v1287_v48  ;;  %v1505_v54 = vpack.c.b16 %v1499_v44, %v1498_v43  ;;  %v1012_v32 = vpack.c.bf16 %v940_v22, %v940_v22  ;;  %v834_v44 = vadd.f32 %v2888_v18, %v3083_v50 }
 0x178   : > { %2588 = vmatmul.msk.bf16.gmra.mxu0 %vm588_vm2, %v2734_v42  ;;  %v921_v57 = vmax.f32 %v784_v47, 0.0  ;;  %vm1996_vm2 = vcmask 261120  }
 0x179   : > { %2631 = vmatmul.msk.bf16.gmra.mxu1 %vm1260_vm7, %v1505_v54  ;;  %v1657_v42 = vunpack.c.l.b16 %v1012_v32 }
 0x17a   : > { %v993_v60 = vpack.c.bf16 %v921_v57, %v921_v57 }
 0x17b   : > { %v1661_v54 = vpack.c.b16 %v1657_v42, %v1656_v41 }
 0x17c   : > { %v1482_v1 = vsel %vm2935_vm14, 0, %v993_v60 }
 0x17d   : > { %v785_v59 = vpop.f32.mrf.mxu0  ;;  %v1500_v8 = vunpack.c.l.b16 %v1482_v1  ;;  %v942_v1 = vmax.f32 %v836_v46, 0.0  ;;  %2649 = vmatmul.msk.bf16.vlgmr.msrb.gmra.mxu3 %vm1260_vm7, %v1661_v54 }
 0x17e   : > { %v786_v61 = vadd.f32 %v2888_v18, %v785_v59  ;;  %v3139_v62 = vpop.f32.mrf.mxu1 }
 0x180   : > { %v922_v63 = vmax.f32 %v786_v61, 0.0 }
 0x182   : > { %v994_v2 = vpack.c.bf16 %v922_v63, %v922_v63  ;;  %v1364_v63 = vpop.f32.mrf.mxu2 }
 0x184   : > { %v1483_v29 = vsel %vm2939_vm15, 0, %v994_v2 }
 0x185   : > { %v1501_v9 = vunpack.c.l.b16 %v1483_v29  ;;  %v788_v10 = vpop.f32.mrf.mxu0  ;;  %v1014_v29 = vpack.c.bf16 %v942_v1, %v942_v1 }
 0x186   : > { %v789_v11 = vadd.f32 %v2888_v18, %v788_v10  ;;  %v1292_v14 = vpop.f32.mrf.mxu1 }
 0x187   : > { %v3159_v17 = vadd.f32 %v1359_v0, %v1292_v14  ;;  %v1506_v56 = vpack.c.b16 %v1501_v9, %v1500_v8  ;;  %v941_v0 = vmax.f32 %v834_v44, 0.0  ;;  %v3193_v8 = vpop.f32.mrf.mxu3  ;;  %v1718_v14 = vsel %vm2901_vm6, 0, %v1014_v29 }
 0x188   : > { %v923_v23 = vmax.f32 %v789_v11, 0.0  ;;  %v1736_v22 = vunpack.c.l.b16 %v1718_v14  ;;  %v846_v29 = vadd.f32 %v2888_v18, %v3143_v3 }
 0x189   : > { %2632 = vmatmul.msk.bf16.gmra.mxu1 %vm1260_vm7, %v1506_v56  ;;  %v1013_v19 = vpack.c.bf16 %v941_v0, %v941_v0 }
 0x18a   : > { %v995_v37 = vpack.c.bf16 %v923_v23, %v923_v23  ;;  %v839_v23 = vadd.f32 %v2888_v18, %v3115_v27 }
 0x18b   : > { %v1717_v11 = vsel %vm1470_vm12, 0, %v1013_v19  ;;  %v844_v19 = vadd.f32 %v2888_v18, %v3136_v58 }
 0x18c   : > { %v1484_v47 = vsel %vm2959_vm3, 0, %v995_v37  ;;  %v1735_v21 = vunpack.c.l.b16 %v1717_v11  ;;  %v2759_v37 = vld [vmem:[%s3522_s4 + $0x4] sm:$0xf0]  ;;  %v943_v27 = vmax.f32 %v839_v23, 0.0 }
 0x18d   : > { %v790_v34 = vpop.f32.mrf.mxu0  ;;  %v1502_v59 = vunpack.c.l.b16 %v1484_v47  ;;  %v3217_v42 = vor.u32 %v2759_v37, %v2676_v35 }
 0x18e   : > { %v791_v38 = vadd.f32 %v2888_v18, %v790_v34  ;;  %v3175_v39 = vpop.f32.mrf.mxu1 }
 0x18f   : > { %v3209_v32 = vpop.f32.mrf.mxu3  ;;  %2052 = vrot.lane.b32.xlu0 %v3217_v42, %s2799_s11  ;;  %2016 = vmatpush.bf16.msra.mxu1 %v3217_v42 }
 0x190   : > { %v924_v43 = vmax.f32 %v791_v38, 0.0  ;;  %v1743_v38 = vpack.c.b16 %v1736_v22, %v1735_v21  ;;  %2113 = vrot.lane.b32.xlu1 %v3217_v42, %s2800_s18  ;;  %2174 = vrot.lane.b32.xlu2 %v3217_v42, %s2801_s8  ;;  %s316_s8 = scalar_lea.vmem %s3525_s7, %s3382_s28 }
 0x192   : > { %v996_v48 = vpack.c.bf16 %v924_v43, %v924_v43  ;;  %v944_v43 = vmax.f32 %v841_v28, 0.0 }
 0x194   : > { %v1485_v57 = vsel %vm2963_vm4, 0, %v996_v48  ;;  %v1015_v48 = vpack.c.bf16 %v943_v27, %v943_v27  ;;  %v1016_v54 = vpack.c.bf16 %v944_v43, %v944_v43 }
 0x195   : > { %v1503_v60 = vunpack.c.l.b16 %v1485_v57  ;;  %v793_v61 = vpop.f32.mrf.mxu0 }
 0x196   : > { %v1297_v50 = vpop.f32.mrf.mxu1  ;;  %v794_v6 = vadd.f32 %v2888_v18, %v793_v61  ;;  %v1720_v61 = vsel %vm2920_vm11, 0, %v1016_v54 }
 0x197   : > { %v3188_v2 = vadd.f32 %v1364_v63, %v1297_v50  ;;  %v1507_v12 = vpack.c.b16 %v1503_v60, %v1502_v59  ;;  %v3228_v57 = vpop.f32.mrf.mxu3 }
 0x198   : > { %v925_v9 = vmax.f32 %v794_v6, 0.0  ;;  %v1738_v6 = vunpack.c.l.b16 %v1720_v61 }
 0x199   : > { %2633 = vmatmul.msk.bf16.gmra.mxu1 %vm1260_vm7, %v1507_v12 }
 0x19a   : > { %v997_v16 = vpack.c.bf16 %v925_v9, %v925_v9 }
 0x19c   : > { %v1573_v34 = vunpack.c.l.b16 %v997_v16  ;;  %v946_v16 = vmax.f32 %v846_v29, 0.0 }
 0x19d   : > { %v795_v10 = vpop.f32.mrf.mxu0 }
 0x19e   : > { %v796_v15 = vadd.f32 %v2888_v18, %v795_v10  ;;  %v3203_v45 = vpop.f32.mrf.mxu1  ;;  %v1018_v23 = vpack.c.bf16 %v946_v16, %v946_v16 }
 0x19f   : > { %v3241_v49 = vpop.f32.mrf.mxu3 }
 0x1a0   : > { %v926_v56 = vmax.f32 %v796_v15, 0.0  ;;  %v945_v15 = vmax.f32 %v844_v19, 0.0  ;;  %v2757_v19 = vld [vmem:[%s3521_s3 + $0x38] sm:$0xff] }
 0x1a2   : > { %v998_v4 = vpack.c.bf16 %v926_v56, %v926_v56  ;;  %v1017_v3 = vpack.c.bf16 %v945_v15, %v945_v15 }
 0x1a4   : > { %v1574_v31 = vunpack.c.l.b16 %v998_v4 }
 0x1a5   : > { %v798_v41 = vpop.f32.mrf.mxu0 }
 0x1a6   : > { %v1581_v40 = vpack.c.b16 %v1574_v31, %v1573_v34  ;;  %v1426_v44 = vpop.f32.mrf.mxu1  ;;  %v799_v47 = vadd.f32 %v2888_v18, %v798_v41  ;;  %v1721_v31 = vsel %vm2935_vm14, 0, %v1017_v3 }
 0x1a7   : > { %v3220_v46 = vadd.f32 %v1426_v44, %v3110_v25  ;;  %v1719_v25 = vsel %vm2916_vm10, 0, %v1015_v48  ;;  %v3250_v28 = vpop.f32.mrf.mxu3  ;;  %v1739_v27 = vunpack.c.l.b16 %v1721_v31  ;;  %v851_v44 = vadd.f32 %v2888_v18, %v3184_v52 }
 0x1a8   : > { %2638 = vmatmul.msk.bf16.vlgmr.msrb.gmra.mxu2 %vm1260_vm7, %v1581_v40  ;;  %v927_v59 = vmax.f32 %v799_v47, 0.0  ;;  %v1737_v12 = vunpack.c.l.b16 %v1719_v25  ;;  %v849_v40 = vadd.f32 %v2888_v18, %v3167_v24 }
 0x1a9   : > { %2654 = vmatmul.msk.bf16.vlgmr.msrb.gmra.mxu1 %vm1260_vm7, %v1743_v38  ;;  %v948_v25 = vmax.f32 %v851_v44, 0.0  ;;  %1849 = vmatpush.bf16.msrb.mxu2 %v2757_v19 }
 0x1aa   : > { %v999_v1 = vpack.c.bf16 %v927_v59, %v927_v59  ;;  %v1744_v11 = vpack.c.b16 %v1738_v6, %v1737_v12 }
 0x1ab   : > { %v1020_v52 = vpack.c.bf16 %v948_v25, %v948_v25 }
 0x1ac   : > { %v1575_v10 = vunpack.c.l.b16 %v999_v1 }
 0x1ad   : > { %v800_v60 = vpop.f32.mrf.mxu0 }
 0x1ae   : > { %v801_v63 = vadd.f32 %v2888_v18, %v800_v60  ;;  %v3235_v0 = vpop.f32.mrf.mxu1  ;;  %v947_v60 = vmax.f32 %v849_v40, 0.0 }
 0x1af   : > { %v3264_v5 = vpop.f32.mrf.mxu3 }
 0x1b0   : > { %v928_v50 = vmax.f32 %v801_v63, 0.0  ;;  %v1019_v24 = vpack.c.bf16 %v947_v60, %v947_v60  ;;  %v3298_v60 = vld [vmem:[%s3523_s5] ss:$0 sm:$0xff] }
 0x1b2   : > { %v1000_v9 = vpack.c.bf16 %v928_v50, %v928_v50 }
 0x1b4   : > { %v1576_v51 = vunpack.c.l.b16 %v1000_v9  ;;  %v1724_v9 = vsel %vm2963_vm4, 0, %v1020_v52 }
 0x1b5   : > { %v803_v14 = vpop.f32.mrf.mxu0  ;;  %v1742_v16 = vunpack.c.l.b16 %v1724_v9 }
 0x1b6   : > { %v1431_v56 = vpop.f32.mrf.mxu1  ;;  %v1582_v21 = vpack.c.b16 %v1576_v51, %v1575_v10  ;;  %v804_v58 = vadd.f32 %v2888_v18, %v803_v14 }
 0x1b7   : > { %v3245_v22 = vadd.f32 %v1431_v56, %v3129_v53  ;;  %v1722_v53 = vsel %vm2939_vm15, 0, %v1018_v23  ;;  %v3272_v12 = vpop.f32.mrf.mxu3 }
 0x1b8   : > { %2639 = vmatmul.msk.bf16.gmra.mxu2 %vm1260_vm7, %v1582_v21  ;;  %v929_v4 = vmax.f32 %v804_v58, 0.0  ;;  %v1740_v43 = vunpack.c.l.b16 %v1722_v53 }
 0x1b9   : > { %2655 = vmatmul.msk.bf16.gmra.mxu1 %vm1260_vm7, %v1744_v11 }
 0x1ba   : > { %v1001_v38 = vpack.c.bf16 %v929_v4, %v929_v4  ;;  %v1745_v54 = vpack.c.b16 %v1740_v43, %v1739_v27 }
 0x1bc   : > { %v1577_v48 = vunpack.c.l.b16 %v1001_v38 }
 0x1bd   : > { %v805_v34 = vpop.f32.mrf.mxu0 }
 0x1be   : > { %v806_v35 = vadd.f32 %v2888_v18, %v805_v34  ;;  %v3258_v37 = vpop.f32.mrf.mxu1 }
 0x1bf   : > { %v3284_v21 = vpop.f32.mrf.mxu3 }
 0x1c0   : > { %v930_v41 = vmax.f32 %v806_v35, 0.0 }
 0x1c2   : > { %v1002_v47 = vpack.c.bf16 %v930_v41, %v930_v41 }
 0x1c4   : > { %v1578_v7 = vunpack.c.l.b16 %v1002_v47 }
 0x1c5   : > { %v808_v59 = vpop.f32.mrf.mxu0 }
 0x1c6   : > { %v1436_v61 = vpop.f32.mrf.mxu1  ;;  %v1583_v63 = vpack.c.b16 %v1578_v7, %v1577_v48  ;;  %v809_v50 = vadd.f32 %v2888_v18, %v808_v59 }
 0x1c7   : > { %v3267_v1 = vadd.f32 %v1436_v61, %v3159_v17  ;;  %v1723_v17 = vsel %vm2959_vm3, 0, %v1019_v24  ;;  %v873_v53 = vpop.f32.mrf.mxu3 }
 0x1c8   : > { %2640 = vmatmul.msk.bf16.gmra.mxu2 %vm1260_vm7, %v1583_v63  ;;  %v931_v6 = vmax.f32 %v809_v50, 0.0  ;;  %v1741_v15 = vunpack.c.l.b16 %v1723_v17  ;;  %v874_v25 = vadd.f32 %v3298_v60, %v873_v53 }
 0x1c9   : > { %2656 = vmatmul.msk.bf16.gmra.mxu1 %vm1260_vm7, %v1745_v54 }
 0x1ca   : > { %v1003_v11 = vpack.c.bf16 %v931_v6, %v931_v6  ;;  %v1746_v23 = vpack.c.b16 %v1742_v16, %v1741_v15  ;;  %v957_v50 = vmax.f32 %v874_v25, 0.0 }
 0x1cc   : > { %v1579_v58 = vunpack.c.l.b16 %v1003_v11  ;;  %v1029_v9 = vpack.c.bf16 %v957_v50, %v957_v50 }
 0x1cd   : > { %v810_v29 = vpop.f32.mrf.mxu0 }
 0x1ce   : > { %v811_v10 = vadd.f32 %v2888_v18, %v810_v29  ;;  %v3282_v51 = vpop.f32.mrf.mxu1 }
 0x1cf   : > { %v875_v47 = vpop.f32.mrf.mxu3 }
 0x1d0   : > { %v932_v14 = vmax.f32 %v811_v10, 0.0 }
 0x1d2   : > { %v1004_v56 = vpack.c.bf16 %v932_v14, %v932_v14 }
 0x1d4   : > { %v1580_v3 = vunpack.c.l.b16 %v1004_v56 }
 0x1d5   : > { %v813_v30 = vpop.f32.mrf.mxu0 }
 0x1d6   : > { %v1441_v4 = vpop.f32.mrf.mxu1  ;;  %v1584_v34 = vpack.c.b16 %v1580_v3, %v1579_v58  ;;  %v814_v31 = vadd.f32 %v2888_v18, %v813_v30  ;;  %v2758_v30 = vld [vmem:[%s3521_s3 + $0x40] sm:$0xff] }
 0x1d7   : > { %v3287_v33 = vadd.f32 %v1441_v4, %v3188_v2  ;;  %v878_v52 = vpop.f32.mrf.mxu3  ;;  %1926 = vmatpush.bf16.msra.mxu3 %v2758_v30 }
 0x1d8   : > { %2641 = vmatmul.msk.bf16.gmra.mxu2 %vm1260_vm7, %v1584_v34  ;;  %v933_v35 = vmax.f32 %v814_v31, 0.0  ;;  %v879_v53 = vadd.f32 %v3298_v60, %v878_v52 }
 0x1d9   : > { %2657 = vmatmul.msk.bf16.gmra.mxu1 %vm1260_vm7, %v1746_v23 }
 0x1da   : > { %v1005_v43 = vpack.c.bf16 %v933_v35, %v933_v35 }
 0x1dc   : > { %v1650_v48 = vunpack.c.l.b16 %v1005_v43  ;;  %v959_v43 = vmax.f32 %v879_v53, 0.0 }
 0x1dd   : > { %v815_v38 = vpop.f32.mrf.mxu0 }
 0x1de   : > { %v816_v41 = vadd.f32 %v2888_v18, %v815_v38  ;;  %v3293_v27 = vpop.f32.mrf.mxu1  ;;  %v876_v18 = vadd.f32 %v3298_v60, %v875_v47 }
 0x1df   : > { %v880_v56 = vpop.f32.mrf.mxu3 }
 0x1e0   : > { %v934_v40 = vmax.f32 %v816_v41, 0.0  ;;  %v958_v24 = vmax.f32 %v876_v18, 0.0  ;;  %v881_v35 = vadd.f32 %v3298_v60, %v880_v56 }
 0x1e2   : > { %v1006_v44 = vpack.c.bf16 %v934_v40, %v934_v40  ;;  %v1030_v10 = vpack.c.bf16 %v958_v24, %v958_v24  ;;  %v960_v40 = vmax.f32 %v881_v35, 0.0 }
 0x1e4   : > { %v1651_v2 = vunpack.c.l.b16 %v1006_v44  ;;  %v1890_v16 = vunpack.c.l.b16 %v1030_v10  ;;  %v2055_v44 = vpop.permute.xlu0 %2054 }
 0x1e5   : > { %v818_v7 = vpop.f32.mrf.mxu0 }
 0x1e6   : > { %v1658_v54 = vpack.c.b16 %v1651_v2, %v1650_v48  ;;  %v1535_v59 = vpop.f32.mrf.mxu1  ;;  %v819_v63 = vadd.f32 %v3298_v60, %v818_v7 }
 0x1e7   : > { %v3303_v61 = vadd.f32 %v1535_v59, %v3220_v46  ;;  %v1889_v46 = vunpack.c.l.b16 %v1029_v9  ;;  %v883_v47 = vpop.f32.mrf.mxu3  ;;  %v1032_v59 = vpack.c.bf16 %v960_v40, %v960_v40  ;;  %v856_v9 = vadd.f32 %v3298_v60, %v3209_v32 }
 0x1e8   : > { %2646 = vmatmul.msk.bf16.vlgmr.msra.gmra.mxu2 %vm1260_vm7, %v1658_v54  ;;  %v935_v6 = vmax.f32 %v819_v63, 0.0  ;;  %v859_v40 = vadd.f32 %v3298_v60, %v3228_v57 }
 0x1e9   : > { %v1897_v31 = vpack.c.b16 %v1890_v16, %v1889_v46  ;;  %2076 = vmatpush.bf16.msra.mxu2 %v2055_v44  ;;  %v1892_v24 = vunpack.c.l.b16 %v1032_v59 }
 0x1ea   : > { %v1007_v11 = vpack.c.bf16 %v935_v6, %v935_v6 }
 0x1eb   : > { %2670 = vmatmul.msk.bf16.vlgmr.msra.gmra.mxu3 %vm1260_vm7, %v1897_v31 }
 0x1ec   : > { %v1652_v58 = vunpack.c.l.b16 %v1007_v11 }
 0x1ed   : > { %v820_v19 = vpop.f32.mrf.mxu0 }
 0x1ee   : > { %v821_v29 = vadd.f32 %v3298_v60, %v820_v19  ;;  %v3308_v17 = vpop.f32.mrf.mxu1 }
 0x1ef   : > { %v885_v52 = vpop.f32.mrf.mxu3 }
 0x1f0   : > { %v936_v14 = vmax.f32 %v821_v29, 0.0  ;;  %v854_v29 = vadd.f32 %v3298_v60, %v3193_v8  ;;  %v886_v46 = vadd.f32 %v3298_v60, %v885_v52 }
 0x1f2   : > { %v1008_v15 = vpack.c.bf16 %v936_v14, %v936_v14  ;;  %v949_v56 = vmax.f32 %v854_v29, 0.0 }
 0x1f4   : > { %v1653_v3 = vunpack.c.l.b16 %v1008_v15  ;;  %v884_v15 = vadd.f32 %v3298_v60, %v883_v47  ;;  %v1021_v32 = vpack.c.bf16 %v949_v56, %v949_v56  ;;  %v861_v47 = vadd.f32 %v3298_v60, %v3241_v49 }
 0x1f5   : > { %v823_v23 = vpop.f32.mrf.mxu0 }
 0x1f6   : > { %v1540_v4 = vpop.f32.mrf.mxu1  ;;  %v1659_v34 = vpack.c.b16 %v1653_v3, %v1652_v58  ;;  %v824_v41 = vadd.f32 %v3298_v60, %v823_v23  ;;  %v950_v58 = vmax.f32 %v856_v9, 0.0  ;;  %v961_v3 = vmax.f32 %v884_v15, 0.0 }
 0x1f7   : > { %v3316_v38 = vadd.f32 %v1540_v4, %v3245_v22  ;;  %v1031_v22 = vpack.c.bf16 %v959_v43, %v959_v43  ;;  %v962_v23 = vmax.f32 %v886_v46, 0.0  ;;  %v888_v8 = vpop.f32.mrf.mxu3  ;;  %v1812_v53 = vunpack.c.l.b16 %v1021_v32 }
 0x1f8   : > { %2647 = vmatmul.msk.bf16.gmra.mxu2 %vm1260_vm7, %v1659_v34  ;;  %v937_v48 = vmax.f32 %v824_v41, 0.0  ;;  %v1022_v30 = vpack.c.bf16 %v950_v58, %v950_v58  ;;  %v1033_v34 = vpack.c.bf16 %v961_v3, %v961_v3  ;;  %v866_v15 = vadd.f32 %v3298_v60, %v3264_v5 }
 0x1f9   : > { %v1891_v50 = vunpack.c.l.b16 %v1031_v22  ;;  %v1034_v31 = vpack.c.bf16 %v962_v23, %v962_v23 }
 0x1fa   : > { %v1009_v25 = vpack.c.bf16 %v937_v48, %v937_v48  ;;  %v1813_v35 = vunpack.c.l.b16 %v1022_v30  ;;  %v1893_v41 = vunpack.c.l.b16 %v1033_v34  ;;  %v954_v58 = vmax.f32 %v866_v15, 0.0 }
 0x1fb   : > { %v1898_v14 = vpack.c.b16 %v1892_v24, %v1891_v50 }
 0x1fc   : > { %v1654_v6 = vunpack.c.l.b16 %v1009_v25  ;;  %v1820_v43 = vpack.c.b16 %v1813_v35, %v1812_v53  ;;  %v1026_v30 = vpack.c.bf16 %v954_v58, %v954_v58  ;;  %v2116_v58 = vpop.permute.xlu1 %2115 }
 0x1fd   : > { %v825_v2 = vpop.f32.mrf.mxu0  ;;  %2671 = vmatmul.msk.bf16.gmra.mxu3 %vm1260_vm7, %v1898_v14  ;;  %v864_v14 = vadd.f32 %v3298_v60, %v3250_v28 }
 0x1fe   : > { %v826_v7 = vadd.f32 %v3298_v60, %v825_v2  ;;  %v3322_v54 = vpop.f32.mrf.mxu1  ;;  %v1817_v5 = vunpack.c.l.b16 %v1026_v30  ;;  %2137 = vmatpush.bf16.msrb.mxu3 %v2116_v58 }
 0x1ff   : > { %v890_v44 = vpop.f32.mrf.mxu3  ;;  %v953_v56 = vmax.f32 %v864_v14, 0.0 }
 0x200   : > { %v938_v18 = vmax.f32 %v826_v7, 0.0  ;;  %v889_v7 = vadd.f32 %v3298_v60, %v888_v8  ;;  %v891_v22 = vadd.f32 %v3298_v60, %v890_v44  ;;  %v1352_v8 = vadd.f32 %v3103_v13, %v3118_v36 }
 0x201   : > { %v2053_v25 = vpop.permute.xlu0 %2052  ;;  %v1025_v32 = vpack.c.bf16 %v953_v56, %v953_v56 }
 0x202   : > { %v1010_v63 = vpack.c.bf16 %v938_v18, %v938_v18  ;;  %v951_v18 = vmax.f32 %v859_v40, 0.0  ;;  %v963_v50 = vmax.f32 %v889_v7, 0.0  ;;  %v964_v57 = vmax.f32 %v891_v22, 0.0  ;;  %2077 = vmatpush.bf16.msra.mxu2 %v2053_v25  ;;  %v2039_v22 = vld [vmem:[%s3393_s30 + $0x8] sm:$0xff] }
 0x203   : > { %v1447_v28 = vadd.f32 %v3235_v0, %v1352_v8  ;;  %v1816_v34 = vunpack.c.l.b16 %v1025_v32 }
 0x204   : > { %v1655_v19 = vunpack.c.l.b16 %v1010_v63  ;;  %v952_v63 = vmax.f32 %v861_v47, 0.0  ;;  %v1023_v49 = vpack.c.bf16 %v951_v18, %v951_v18  ;;  %v1035_v52 = vpack.c.bf16 %v963_v50, %v963_v50 }
 0x206   : > { %v1545_v10 = vpop.f32.mrf.mxu1  ;;  %v1660_v11 = vpack.c.b16 %v1655_v19, %v1654_v6  ;;  %v1024_v24 = vpack.c.bf16 %v952_v63, %v952_v63  ;;  %v1036_v6 = vpack.c.bf16 %v964_v57, %v964_v57  ;;  %v1814_v19 = vunpack.c.l.b16 %v1023_v49 }
 0x207   : > { %v3331_v16 = vadd.f32 %v1545_v10, %v3267_v1  ;;  %v1894_v1 = vunpack.c.l.b16 %v1034_v31  ;;  %v1895_v9 = vunpack.c.l.b16 %v1035_v52  ;;  %v1556_v31 = vadd.f32 %v3308_v17, %v1447_v28  ;;  %v1704_v50 = vpop.f32.mrf.mxu3 }
 0x208   : > { %2648 = vmatmul.msk.bf16.gmra.mxu2 %vm1260_vm7, %v1660_v11  ;;  %v1815_v29 = vunpack.c.l.b16 %v1024_v24  ;;  %v1896_v10 = vunpack.c.l.b16 %v1036_v6  ;;  %v1357_v17 = vadd.f32 %v3131_v55, %v3139_v62  ;;  %v1362_v62 = vadd.f32 %v3169_v26, %v3175_v39  ;;  %v2042_v6 = vld [vmem:[%s3393_s30 + $0x20] sm:$0xff] }
 0x209   : > { %v1899_v2 = vpack.c.b16 %v1894_v1, %v1893_v41  ;;  %v1822_v41 = vpack.c.b16 %v1817_v5, %v1816_v34  ;;  %v871_v1 = vadd.f32 %v3298_v60, %v3284_v21 }
 0x20a   : > { %v1821_v11 = vpack.c.b16 %v1815_v29, %v1814_v19  ;;  %v1900_v46 = vpack.c.b16 %v1896_v10, %v1895_v9  ;;  %v1449_v47 = vadd.f32 %v3258_v37, %v1357_v17  ;;  %v1451_v37 = vadd.f32 %v3282_v51, %v1362_v62  ;;  %v2040_v51 = vld [vmem:[%s3393_s30 + $0x10] sm:$0xff]  ;;  %v2114_v62 = vpop.permute.xlu1 %2113 }
 0x20b   : > { %v956_v36 = vmax.f32 %v871_v1, 0.0  ;;  %2138 = vmatpush.bf16.msrb.mxu3 %v2114_v62 }
 0x20c   : > { %v1558_v21 = vadd.f32 %v3322_v54, %v1449_v47  ;;  %v2038_v54 = vld [vmem:[%s3393_s30] sm:$0xff] }
 0x20d   : > { %2672 = vmatmul.msk.bf16.gmra.mxu3 %vm1260_vm7, %v1899_v2  ;;  %v1028_v44 = vpack.c.bf16 %v956_v36, %v956_v36  ;;  %v2046_v63 = vpack.c.bf16 %v2039_v22, %v2038_v54 }
 0x20e   : > { %v3335_v4 = vpop.f32.mrf.mxu1 }
 0x20f   : > { %v1560_v25 = vadd.f32 %v3335_v4, %v1451_v37  ;;  %v2041_v4 = vld [vmem:[%s3393_s30 + $0x18] sm:$0xff] }
 0x210   : > { %v2047_v24 = vpack.c.bf16 %v2041_v4, %v2040_v51 }
 0x216   : > { %v1550_v48 = vpop.f32.mrf.mxu1 }
 0x217   : > { %v3344_v59 = vadd.f32 %v1550_v48, %v3287_v33  ;;  %v3348_v33 = vpop.f32.mrf.mxu2  ;;  %v1819_v48 = vunpack.c.l.b16 %v1028_v44 }
 0x218   : > { %2662 = vmatmul.msk.bf16.vlgmr.msrb.gmra.mxu2 %vm1260_vm7, %v1820_v43 }
 0x21d   : > { %2673 = vmatmul.msk.bf16.gmra.mxu3 %vm1260_vm7, %v1900_v46  ;;  %v3419_v46 = vpop.f32.mrf.mxu3 }
 0x21e   : > { %v3415_v10 = vpop.f32.mrf.mxu1 }
 0x226   : > { %v1774_v42 = vpop.f32.mrf.mxu1 }
 0x228   : > { %2663 = vmatmul.msk.bf16.gmra.mxu2 %vm1260_vm7, %v1821_v11  ;;  %v2045_v11 = vld [vmem:[%s3393_s30 + $0x38] sm:$0xff] }
 0x229   : > { %v2049_v15 = vpack.c.bf16 %v2045_v11, %v2044_v20 }
 0x22b   : > { %v1612_v3 = vpop.f32.mrf.mxu2 }
 0x22c   : > { %v3357_v23 = vadd.f32 %v1612_v3, %v3303_v61  ;;  %v869_v61 = vadd.f32 %v3298_v60, %v3272_v12 }
 0x22e   : > { %v955_v13 = vmax.f32 %v869_v61, 0.0  ;;  %v1776_v8 = vpop.f32.mrf.mxu1 }
 0x230   : > { %v1027_v40 = vpack.c.bf16 %v955_v13, %v955_v13  ;;  %v3427_v13 = vld [vmem:[%s3523_s5 + $0x1] ss:$0 sm:$0xff] }
 0x232   : > { %v1818_v12 = vunpack.c.l.b16 %v1027_v40 }
 0x233   : > { %v1614_v53 = vpop.f32.mrf.mxu2 }
 0x234   : > { %v3363_v35 = vadd.f32 %v1614_v53, %v1556_v31  ;;  %v1823_v7 = vpack.c.b16 %v1819_v48, %v1818_v12 }
 0x236   : > { %v1779_v31 = vpop.f32.mrf.mxu1 }
 0x238   : > { %2664 = vmatmul.msk.bf16.gmra.mxu2 %vm1260_vm7, %v1822_v41 }
 0x23b   : > { %v1617_v0 = vpop.f32.mrf.mxu2 }
 0x23c   : > { %v3371_v43 = vadd.f32 %v1617_v0, %v3316_v38 }
 0x243   : > { %v1619_v60 = vpop.f32.mrf.mxu2 }
 0x244   : > { %v3379_v2 = vadd.f32 %v1619_v60, %v1558_v21 }
 0x248   : > { %2665 = vmatmul.msk.bf16.gmra.mxu2 %vm1260_vm7, %v1823_v7 }
 0x24b   : > { %v1622_v38 = vpop.f32.mrf.mxu2 }
 0x24c   : > { %v3385_v55 = vadd.f32 %v1622_v38, %v3331_v16 }
 0x253   : > { %v1624_v16 = vpop.f32.mrf.mxu2 }
 0x254   : > { %v3399_v18 = vadd.f32 %v1624_v16, %v1560_v25 }
 0x258   : > { %2686 = vmatmul.msk.bf16.vlgmr.msra.gmra.mxu2 %vm1996_vm2, %v2046_v63 }
 0x25b   : > { %v1627_v26 = vpop.f32.mrf.mxu2 }
 0x25c   : > { %v1638_v39 = vadd.f32 %v1627_v26, %v3344_v59  ;;  %v2043_v59 = vld [vmem:[%s3393_s30 + $0x28] sm:$0xff] }
 0x25d   : > { %v2048_v29 = vpack.c.bf16 %v2043_v59, %v2042_v6 }
 0x25e   : > { %v3403_v57 = vadd.f32 %v1704_v50, %v1638_v39 }
 0x263   : > { %v3408_v49 = vpop.f32.mrf.mxu2 }
 0x268   : > { %2687 = vmatmul.msk.bf16.gmra.mxu2 %vm1996_vm2, %v2047_v24 }
 0x26b   : > { %v1689_v52 = vpop.f32.mrf.mxu2 }
 0x26c   : > { %v1709_v28 = vadd.f32 %v1689_v52, %v3357_v23  ;;  %v1781_v23 = vpop.f32.mrf.mxu1 }
 0x26e   : > { %v1928_v3 = vpop.f32.mrf.mxu3  ;;  %v1794_v5 = vadd.f32 %v1774_v42, %v1709_v28 }
 0x273   : > { %v1691_v19 = vpop.f32.mrf.mxu2 }
 0x274   : > { %v1710_v53 = vadd.f32 %v1691_v19, %v3363_v35  ;;  %v1784_v22 = vpop.f32.mrf.mxu1 }
 0x276   : > { %v1930_v30 = vpop.f32.mrf.mxu3  ;;  %v1795_v36 = vadd.f32 %v1776_v8, %v1710_v53 }
 0x278   : > { %2688 = vmatmul.msk.bf16.gmra.mxu2 %vm1996_vm2, %v2048_v29 }
 0x27b   : > { %v1694_v9 = vpop.f32.mrf.mxu2 }
 0x27c   : > { %v1711_v47 = vadd.f32 %v1694_v9, %v3371_v43  ;;  %v1786_v6 = vpop.f32.mrf.mxu1 }
 0x27e   : > { %v1796_v38 = vadd.f32 %v1779_v31, %v1711_v47 }
 0x280   : > { %v1933_v61 = vpop.f32.mrf.mxu3 }
 0x283   : > { %v1696_v14 = vpop.f32.mrf.mxu2 }
 0x284   : > { %v1712_v37 = vadd.f32 %v1696_v14, %v3379_v2 }
 0x286   : > { %v1797_v16 = vadd.f32 %v1781_v23, %v1712_v37 }
 0x288   : > { %2689 = vmatmul.msk.bf16.gmra.mxu2 %vm1996_vm2, %v2049_v15  ;;  %v1935_v60 = vpop.f32.mrf.mxu3 }
 0x28b   : > { %v1699_v56 = vpop.f32.mrf.mxu2 }
 0x28c   : > { %v1713_v51 = vadd.f32 %v1699_v56, %v3385_v55  ;;  %v1367_v55 = vadd.f32 %v3348_v33, %v3203_v45  ;;  %v1789_v56 = vpop.f32.mrf.mxu1 }
 0x28d   : > { %v1800_v53 = vadd.f32 %v1789_v56, %v3403_v57  ;;  %v2783_v56 = vld [vmem:[%s3523_s5 + $0x2] ss:$0 sm:$0xff] }
 0x28e   : > { %v1798_v19 = vadd.f32 %v1784_v22, %v1713_v51  ;;  %v1453_v58 = vadd.f32 %v3293_v27, %v1367_v55  ;;  %v2177_v55 = vpop.permute.xlu2 %2176 }
 0x28f   : > { %2198 = vmatpush.bf16.msrb.mxu1 %v2177_v55 }
 0x290   : > { %v1938_v26 = vpop.f32.mrf.mxu3 }
 0x293   : > { %v1701_v32 = vpop.f32.mrf.mxu2 }
 0x294   : > { %v1714_v29 = vadd.f32 %v1701_v32, %v3399_v18  ;;  %v1791_v27 = vpop.f32.mrf.mxu1 }
 0x296   : > { %v1799_v14 = vadd.f32 %v1786_v6, %v1714_v29 }
 0x298   : > { %v1940_v20 = vpop.f32.mrf.mxu3 }
 0x29b   : > { %v1851_v34 = vpop.f32.mrf.mxu2 }
 0x29c   : > { %v1871_v41 = vadd.f32 %v1851_v34, %v1794_v5 }
 0x29e   : > { %v1948_v1 = vadd.f32 %v1928_v3, %v1871_v41 }
 0x2a0   : > { %v1958_v40 = vadd.f32 %v3427_v13, %v1948_v1  ;;  %v1943_v32 = vpop.f32.mrf.mxu3 }
 0x2a2   : > { %v1966_v35 = vmax.f32 %v1958_v40, 0.0 }
 0x2a3   : > { %v1853_v0 = vpop.f32.mrf.mxu2 }
 0x2a4   : > { %v1872_v17 = vadd.f32 %v1853_v0, %v1795_v36 }
 0x2a6   : > { %v1949_v44 = vadd.f32 %v1930_v30, %v1872_v17  ;;  %v1562_v30 = vadd.f32 %v3415_v10, %v1453_v58 }
 0x2a8   : > { %v1959_v12 = vadd.f32 %v3427_v13, %v1949_v44  ;;  %v1639_v28 = vadd.f32 %v3408_v49, %v1562_v30  ;;  %v1945_v36 = vpop.f32.mrf.mxu3 }
 0x2aa   : > { %v1967_v48 = vmax.f32 %v1959_v12, 0.0  ;;  %v1716_v33 = vadd.f32 %v3419_v46, %v1639_v28  ;;  %v2782_v46 = vld [vmem:[%s3523_s5 + $0x3] ss:$0 sm:$0xff] }
 0x2ab   : > { %v1856_v21 = vpop.f32.mrf.mxu2 }
 0x2ac   : > { %v1974_v7 = vpack.c.bf16 %v1967_v48, %v1966_v35  ;;  %v1873_v54 = vadd.f32 %v1856_v21, %v1796_v38 }
 0x2ae   : > { %2682 = vmatmul.msk.bf16.vlgmr.msra.gmra.mxu1 %vm1996_vm2, %v1974_v7  ;;  %v1950_v25 = vadd.f32 %v1933_v61, %v1873_v54  ;;  %v1801_v61 = vadd.f32 %v1791_v27, %v1716_v33 }
 0x2b0   : > { %v1960_v39 = vadd.f32 %v3427_v13, %v1950_v25 }
 0x2b2   : > { %v1968_v24 = vmax.f32 %v1960_v39, 0.0 }
 0x2b3   : > { %v1858_v63 = vpop.f32.mrf.mxu2 }
 0x2b4   : > { %v1874_v43 = vadd.f32 %v1858_v63, %v1797_v16 }
 0x2b6   : > { %v1951_v50 = vadd.f32 %v1935_v60, %v1874_v43 }
 0x2b8   : > { %v1961_v4 = vadd.f32 %v3427_v13, %v1951_v50 }
 0x2ba   : > { %v1969_v52 = vmax.f32 %v1961_v4, 0.0 }
 0x2bb   : > { %v1861_v2 = vpop.f32.mrf.mxu2 }
 0x2bc   : > { %v1975_v59 = vpack.c.bf16 %v1969_v52, %v1968_v24  ;;  %v1875_v9 = vadd.f32 %v1861_v2, %v1798_v19  ;;  %v2704_v24 = vld [vmem:[%s3522_s4 + $0x14] sm:$0xf]  ;;  %v2762_v52 = vld [vmem:[%s3522_s4 + $0x18] sm:$0xf0]  ;;  %v2761_v19 = vld [vmem:[%s3522_s4 + $0x8] sm:$0xf0] }
 0x2bd   : > { %v2705_v6 = vor.u32 %v2762_v52, %v2704_v24  ;;  %v2785_v24 = vld [vmem:[%s3523_s5 + $0x6] ss:$0 sm:$0xff] }
 0x2be   : > { %2683 = vmatmul.msk.bf16.gmra.mxu1 %vm1996_vm2, %v1975_v59  ;;  %v1952_v11 = vadd.f32 %v1938_v26, %v1875_v9  ;;  %v2700_v59 = vld [vmem:[%s3522_s4 + $0x4] sm:$0xf] }
 0x2bf   : > { %2269 = vmatpush.bf16.msrb.mxu2 %v2705_v6  ;;  %v2701_v9 = vor.u32 %v2761_v19, %v2700_v59 }
 0x2c0   : > { %v1962_v3 = vadd.f32 %v3427_v13, %v1952_v11 }
 0x2c2   : > { %v1970_v34 = vmax.f32 %v1962_v3, 0.0 }
 0x2c3   : > { %v1863_v15 = vpop.f32.mrf.mxu2  ;;  %2270 = vmatpush.bf16.msrb.mxu2 %v2701_v9 }
 0x2c4   : > { %v1876_v42 = vadd.f32 %v1863_v15, %v1799_v14 }
 0x2c6   : > { %v1953_v8 = vadd.f32 %v1940_v20, %v1876_v42 }
 0x2c8   : > { %v1963_v18 = vadd.f32 %v3427_v13, %v1953_v8 }
 0x2ca   : > { %v1971_v5 = vmax.f32 %v1963_v18, 0.0  ;;  %v2175_v18 = vpop.permute.xlu2 %2174 }
 0x2cb   : > { %v1866_v31 = vpop.f32.mrf.mxu2  ;;  %2199 = vmatpush.bf16.msrb.mxu1 %v2175_v18 }
 0x2cc   : > { %v1976_v45 = vpack.c.bf16 %v1971_v5, %v1970_v34  ;;  %v1877_v41 = vadd.f32 %v1866_v31, %v1800_v53 }
 0x2ce   : > { %2684 = vmatmul.msk.bf16.gmra.mxu1 %vm1996_vm2, %v1976_v45  ;;  %v1954_v1 = vadd.f32 %v1943_v32, %v1877_v41 }
 0x2d0   : > { %v1964_v17 = vadd.f32 %v3427_v13, %v1954_v1 }
 0x2d2   : > { %v1972_v44 = vmax.f32 %v1964_v17, 0.0 }
 0x2d3   : > { %v1868_v10 = vpop.f32.mrf.mxu2 }
 0x2d4   : > { %v1878_v0 = vadd.f32 %v1868_v10, %v1801_v61 }
 0x2d6   : > { %v1955_v49 = vadd.f32 %v1945_v36, %v1878_v0 }
 0x2d8   : > { %v1965_v40 = vadd.f32 %v3427_v13, %v1955_v49  ;;  %v2784_v49 = vld [vmem:[%s3523_s5 + $0x4] ss:$0 sm:$0xff] }
 0x2da   : > { %v1973_v23 = vmax.f32 %v1965_v40, 0.0 }
 0x2db   : > { %v2079_v57 = vpop.f32.mrf.mxu2 }
 0x2dc   : > { %v1977_v47 = vpack.c.bf16 %v1973_v23, %v1972_v44  ;;  %v2080_v12 = vadd.f32 %v2782_v46, %v2079_v57 }
 0x2de   : > { %2685 = vmatmul.msk.bf16.gmra.mxu1 %vm1996_vm2, %v1977_v47  ;;  %v2099_v21 = vmax.f32 %v2080_v12, 0.0 }
 0x2e3   : > { %v2081_v35 = vpop.f32.mrf.mxu2 }
 0x2e4   : > { %v2082_v48 = vadd.f32 %v2782_v46, %v2081_v35 }
 0x2e6   : > { %v2100_v60 = vmax.f32 %v2082_v48, 0.0 }
 0x2e8   : > { %v2107_v7 = vpack.c.bf16 %v2100_v60, %v2099_v21 }
 0x2ea   : > { %2690 = vmatmul.msk.bf16.vlgmr.msrb.gmra.mxu3 %vm1996_vm2, %v2107_v7 }
 0x2eb   : > { %v2084_v38 = vpop.f32.mrf.mxu2 }
 0x2ec   : > { %v2085_v13 = vadd.f32 %v2782_v46, %v2084_v38 }
 0x2ee   : > { %v2101_v54 = vmax.f32 %v2085_v13, 0.0 }
 0x2f3   : > { %v2086_v62 = vpop.f32.mrf.mxu2 }
 0x2f4   : > { %v2087_v37 = vadd.f32 %v2782_v46, %v2086_v62 }
 0x2f6   : > { %v2102_v22 = vmax.f32 %v2087_v37, 0.0 }
 0x2f8   : > { %v2108_v25 = vpack.c.bf16 %v2102_v22, %v2101_v54 }
 0x2fa   : > { %2691 = vmatmul.msk.bf16.gmra.mxu3 %vm1996_vm2, %v2108_v25 }
 0x2fb   : > { %v2089_v16 = vpop.f32.mrf.mxu2 }
 0x2fc   : > { %v2090_v63 = vadd.f32 %v2782_v46, %v2089_v16 }
 0x2fe   : > { %v2103_v39 = vmax.f32 %v2090_v63, 0.0 }
 0x303   : > { %v2091_v43 = vpop.f32.mrf.mxu2 }
 0x304   : > { %v2092_v26 = vadd.f32 %v2782_v46, %v2091_v43 }
 0x306   : > { %v2104_v50 = vmax.f32 %v2092_v26, 0.0 }
 0x308   : > { %v2109_v51 = vpack.c.bf16 %v2104_v50, %v2103_v39 }
 0x30a   : > { %2692 = vmatmul.msk.bf16.gmra.mxu3 %vm1996_vm2, %v2109_v51 }
 0x30b   : > { %v2094_v4 = vpop.f32.mrf.mxu2 }
 0x30c   : > { %v2095_v2 = vadd.f32 %v2782_v46, %v2094_v4 }
 0x30e   : > { %v2105_v11 = vmax.f32 %v2095_v2, 0.0 }
 0x313   : > { %v2096_v29 = vpop.f32.mrf.mxu2 }
 0x314   : > { %v2097_v20 = vadd.f32 %v2782_v46, %v2096_v29 }
 0x316   : > { %v2106_v14 = vmax.f32 %v2097_v20, 0.0 }
 0x318   : > { %v2110_v15 = vpack.c.bf16 %v2106_v14, %v2105_v11 }
 0x31a   : > { %2693 = vmatmul.msk.bf16.gmra.mxu3 %vm1996_vm2, %v2110_v15 }
 0x32b   : > { %v2018_v42 = vpop.f32.mrf.mxu1 }
 0x32c   : > { %v2019_v3 = vadd.f32 %v2783_v56, %v2018_v42 }
 0x333   : > { %v2020_v58 = vpop.f32.mrf.mxu1 }
 0x334   : > { %v2021_v8 = vadd.f32 %v2783_v56, %v2020_v58 }
 0x336   : > { %v2229_v30 = vpack.c.bf16 %v2021_v8, %v2019_v3 }
 0x338   : > { %2706 = vmatmul.msk.bf16.vlgmr.msrb.gmra.mxu2 %vm1996_vm2, %v2229_v30 }
 0x33b   : > { %v2023_v32 = vpop.f32.mrf.mxu1 }
 0x33c   : > { %v2024_v34 = vadd.f32 %v2783_v56, %v2023_v32 }
 0x343   : > { %v2025_v28 = vpop.f32.mrf.mxu1 }
 0x344   : > { %v2026_v5 = vadd.f32 %v2783_v56, %v2025_v28 }
 0x346   : > { %v2230_v31 = vpack.c.bf16 %v2026_v5, %v2024_v34 }
 0x348   : > { %2707 = vmatmul.msk.bf16.gmra.mxu2 %vm1996_vm2, %v2230_v31 }
 0x34b   : > { %v2028_v53 = vpop.f32.mrf.mxu1 }
 0x34c   : > { %v2029_v33 = vadd.f32 %v2783_v56, %v2028_v53 }
 0x353   : > { %v2030_v45 = vpop.f32.mrf.mxu1 }
 0x354   : > { %v2031_v41 = vadd.f32 %v2783_v56, %v2030_v45 }
 0x356   : > { %v2231_v27 = vpack.c.bf16 %v2031_v41, %v2029_v33 }
 0x358   : > { %2708 = vmatmul.msk.bf16.gmra.mxu2 %vm1996_vm2, %v2231_v27 }
 0x35b   : > { %v2033_v61 = vpop.f32.mrf.mxu1 }
 0x35c   : > { %v2034_v10 = vadd.f32 %v2783_v56, %v2033_v61 }
 0x363   : > { %v2035_v1 = vpop.f32.mrf.mxu1 }
 0x364   : > { %v2036_v36 = vadd.f32 %v2783_v56, %v2035_v1 }
 0x366   : > { %v2232_v0 = vpack.c.bf16 %v2036_v36, %v2034_v10 }
 0x368   : > { %2709 = vmatmul.msk.bf16.gmra.mxu2 %vm1996_vm2, %v2232_v0 }
 0x36d   : > { %v2140_v17 = vpop.f32.mrf.mxu3 }
 0x36e   : > { %v2141_v40 = vadd.f32 %v2784_v49, %v2140_v17 }
 0x370   : > { %v2160_v57 = vadd.f32 %v2141_v40, %v2019_v3 }
 0x375   : > { %v2142_v44 = vpop.f32.mrf.mxu3 }
 0x376   : > { %v2143_v23 = vadd.f32 %v2784_v49, %v2142_v44 }
 0x378   : > { %v2161_v47 = vadd.f32 %v2143_v23, %v2021_v8  ;;  %v2786_v8 = vld [vmem:[%s3523_s5 + $0x5] ss:$0 sm:$0xff] }
 0x37a   : > { %v2168_v46 = vpack.c.bf16 %v2161_v47, %v2160_v57 }
 0x37c   : > { %2694 = vmatmul.msk.bf16.vlgmr.msrb.gmra.mxu1 %vm1996_vm2, %v2168_v46 }
 0x37d   : > { %v2145_v12 = vpop.f32.mrf.mxu3 }
 0x37e   : > { %v2146_v35 = vadd.f32 %v2784_v49, %v2145_v12 }
 0x380   : > { %v2162_v60 = vadd.f32 %v2146_v35, %v2024_v34 }
 0x385   : > { %v2147_v48 = vpop.f32.mrf.mxu3 }
 0x386   : > { %v2148_v21 = vadd.f32 %v2784_v49, %v2147_v48 }
 0x388   : > { %v2163_v7 = vadd.f32 %v2148_v21, %v2026_v5 }
 0x38a   : > { %v2169_v38 = vpack.c.bf16 %v2163_v7, %v2162_v60 }
 0x38c   : > { %2695 = vmatmul.msk.bf16.gmra.mxu1 %vm1996_vm2, %v2169_v38 }
 0x38d   : > { %v2150_v13 = vpop.f32.mrf.mxu3 }
 0x38e   : > { %v2151_v62 = vadd.f32 %v2784_v49, %v2150_v13 }
 0x390   : > { %v2164_v22 = vadd.f32 %v2151_v62, %v2029_v33 }
 0x395   : > { %v2152_v37 = vpop.f32.mrf.mxu3 }
 0x396   : > { %v2153_v54 = vadd.f32 %v2784_v49, %v2152_v37 }
 0x398   : > { %v2165_v25 = vadd.f32 %v2153_v54, %v2031_v41 }
 0x39a   : > { %v2170_v16 = vpack.c.bf16 %v2165_v25, %v2164_v22 }
 0x39c   : > { %2696 = vmatmul.msk.bf16.gmra.mxu1 %vm1996_vm2, %v2170_v16 }
 0x39d   : > { %v2155_v63 = vpop.f32.mrf.mxu3 }
 0x39e   : > { %v2156_v43 = vadd.f32 %v2784_v49, %v2155_v63 }
 0x3a0   : > { %v2166_v50 = vadd.f32 %v2156_v43, %v2034_v10 }
 0x3a5   : > { %v2157_v26 = vpop.f32.mrf.mxu3 }
 0x3a6   : > { %v2158_v39 = vadd.f32 %v2784_v49, %v2157_v26 }
 0x3a8   : > { %v2167_v51 = vadd.f32 %v2158_v39, %v2036_v36 }
 0x3aa   : > { %v2171_v4 = vpack.c.bf16 %v2167_v51, %v2166_v50 }
 0x3ac   : > { %2697 = vmatmul.msk.bf16.gmra.mxu1 %vm1996_vm2, %v2171_v4 }
 0x3bb   : > { %v2272_v52 = vpop.f32.mrf.mxu2 }
 0x3bc   : > { %v2273_v6 = vadd.f32 %v2785_v24, %v2272_v52 }
 0x3be   : > { %2292 = vst.msk [vmem:[%s316_s8] sm:$0xff] %vm1996_vm2, %v2273_v6 }
 0x3c3   : > { %v2274_v2 = vpop.f32.mrf.mxu2 }
 0x3c4   : > { %v2275_v59 = vadd.f32 %v2785_v24, %v2274_v2 }
 0x3c6   : > { %2293 = vst.msk [vmem:[%s316_s8 + $0x8] sm:$0xff] %vm1996_vm2, %v2275_v59 }
 0x3cb   : > { %v2277_v19 = vpop.f32.mrf.mxu2 }
 0x3cc   : > { %v2278_v29 = vadd.f32 %v2785_v24, %v2277_v19 }
 0x3ce   : > { %2294 = vst.msk [vmem:[%s316_s8 + $0x10] sm:$0xff] %vm1996_vm2, %v2278_v29 }
 0x3d3   : > { %v2279_v9 = vpop.f32.mrf.mxu2 }
 0x3d4   : > { %v2280_v20 = vadd.f32 %v2785_v24, %v2279_v9 }
 0x3d6   : > { %2295 = vst.msk [vmem:[%s316_s8 + $0x18] sm:$0xff] %vm1996_vm2, %v2280_v20 }
 0x3db   : > { %v2282_v11 = vpop.f32.mrf.mxu2 }
 0x3dc   : > { %v2283_v14 = vadd.f32 %v2785_v24, %v2282_v11 }
 0x3de   : > { %2296 = vst.msk [vmem:[%s316_s8 + $0x20] sm:$0xff] %vm1996_vm2, %v2283_v14 }
 0x3e3   : > { %v2284_v15 = vpop.f32.mrf.mxu2 }
 0x3e4   : > { %v2285_v55 = vadd.f32 %v2785_v24, %v2284_v15 }
 0x3e6   : > { %2297 = vst.msk [vmem:[%s316_s8 + $0x28] sm:$0xff] %vm1996_vm2, %v2285_v55 }
 0x3eb   : > { %v2287_v42 = vpop.f32.mrf.mxu2 }
 0x3ec   : > { %v2288_v56 = vadd.f32 %v2785_v24, %v2287_v42 }
 0x3ee   : > { %2298 = vst.msk [vmem:[%s316_s8 + $0x30] sm:$0xff] %vm1996_vm2, %v2288_v56 }
 0x3f3   : > { %v2289_v58 = vpop.f32.mrf.mxu2 }
 0x3f4   : > { %v2290_v3 = vadd.f32 %v2785_v24, %v2289_v58 }
 0x3f6   : > { %2299 = vst.msk [vmem:[%s316_s8 + $0x38] sm:$0xff] %vm1996_vm2, %v2290_v3 }
 0x3f9   : > { %v2201_v30 = vpop.f32.mrf.mxu1 }
 0x3fa   : > { %v2202_v18 = vadd.f32 %v2786_v8, %v2201_v30 }
 0x3fc   : > { %2221 = vst.msk [vmem:[%s310_s13] sm:$0xff] %vm1996_vm2, %v2202_v18 }
 0x401   : > { %v2203_v32 = vpop.f32.mrf.mxu1 }
 0x402   : > { %v2204_v28 = vadd.f32 %v2786_v8, %v2203_v32 }
 0x404   : > { %2222 = vst.msk [vmem:[%s310_s13 + $0x8] sm:$0xff] %vm1996_vm2, %v2204_v28 }
 0x409   : > { %v2206_v34 = vpop.f32.mrf.mxu1 }
 0x40a   : > { %v2207_v5 = vadd.f32 %v2786_v8, %v2206_v34 }
 0x40c   : > { %2223 = vst.msk [vmem:[%s310_s13 + $0x10] sm:$0xff] %vm1996_vm2, %v2207_v5 }
 0x411   : > { %v2208_v31 = vpop.f32.mrf.mxu1 }
 0x412   : > { %v2209_v53 = vadd.f32 %v2786_v8, %v2208_v31 }
 0x414   : > { %2224 = vst.msk [vmem:[%s310_s13 + $0x18] sm:$0xff] %vm1996_vm2, %v2209_v53 }
 0x419   : > { %v2211_v45 = vpop.f32.mrf.mxu1 }
 0x41a   : > { %v2212_v33 = vadd.f32 %v2786_v8, %v2211_v45 }
 0x41c   : > { %2225 = vst.msk [vmem:[%s310_s13 + $0x20] sm:$0xff] %vm1996_vm2, %v2212_v33 }
 0x421   : > { %v2213_v41 = vpop.f32.mrf.mxu1 }
 0x422   : > { %v2214_v27 = vadd.f32 %v2786_v8, %v2213_v41 }
 0x424   : > { %2226 = vst.msk [vmem:[%s310_s13 + $0x28] sm:$0xff] %vm1996_vm2, %v2214_v27 }
 0x429   : > { %v2216_v61 = vpop.f32.mrf.mxu1 }
 0x42a   : > { %v2217_v1 = vadd.f32 %v2786_v8, %v2216_v61 }
 0x42c   : > { %2227 = vst.msk [vmem:[%s310_s13 + $0x30] sm:$0xff] %vm1996_vm2, %v2217_v1 }
 0x431   : > { %v2218_v10 = vpop.f32.mrf.mxu1 }
 0x432   : > { %v2219_v36 = vadd.f32 %v2786_v8, %v2218_v10 }
 0x434   : > { %2228 = vst.msk [vmem:[%s310_s13 + $0x38] sm:$0xff] %vm1996_vm2, %v2219_v36 }
 0x435 PF: > { %s18_s24 = sadd.s32 1, %s2794_s24  }
 0x436   : > { %p15_p5 = scmp.ge.s32.totalorder %s18_s24, 4  }
 0x438   :  { %17 = sbr.rel (!%p15_p5) target bundleno = 1 (0x1), region = 89 }

// kernel: streampetr_forward.3
= control target key start
LH: loop header
LB: loop body
LE: loop exit
PB: predicated region body
PF: predicated region fallthrough
CT: control target
= control target key end

     0   :  { %s1120_s17 = smov 96   ;;  %vm92_vm0 = vcmask 261120   ;;  %vm297_vm9 = vcmask 1043456   ;;  %vm272_vm10 = vcmask 195584   ;;  %s1504_s5 = inlined_call_operand.vmem [shape: bf16[32,384], index: 5, kind: input, shape index: {}]   ;;  %s1505_s2 = inlined_call_operand.vmem [shape: f32[16,32], index: 2, kind: input, shape index: {}]   ;;  %s1506_s7 = inlined_call_operand.vmem [shape: f32[24,64], index: 7, kind: input, shape index: {}]   ;;  %s1507_s4 = inlined_call_operand.vmem [shape: f32[8,32], index: 4, kind: input, shape index: {}]   ;;  %s1508_s3 = inlined_call_operand.vmem [shape: f32[8,32], index: 3, kind: input, shape index: {}]   ;;  %s1509_s0 = inlined_call_operand.vmem [shape: f32[128,32], index: 0, kind: input, shape index: {}]   ;;  %s1510_s1 = inlined_call_operand.vmem [shape: f32[128,32], index: 1, kind: input, shape index: {}]   ;;  %s1511_s6 = inlined_call_operand.vmem [shape: bf16[64,96], index: 6, kind: input, shape index: {}]   ;;  %s1512_s8 = inlined_call_operand.vmem [shape: f32[16,64], index: 8, kind: output, shape index: {}]  }
   0x1   :  { %v972_v0 = vld [vmem:[%s1504_s5 + $0x18] sm:$0xf]  ;;  %v1027_v1 = vld [vmem:[%s1504_s5 + $0x20] sm:$0xf0]  ;;  %v968_v2 = vld [vmem:[%s1504_s5] sm:$0xf] }
   0x2   :  { %v973_v3 = vor.u32 %v1027_v1, %v972_v0  ;;  %v1026_v4 = vld [vmem:[%s1504_s5 + $0x8] sm:$0xf0]  ;;  %v30_v5 = vld [vmem:[%s1505_s2] sm:$0xff] }
   0x3   :  { %v31_v6 = vld [vmem:[%s1505_s2 + $0x8] sm:$0xff]  ;;  %v964_v7 = vmul.f32 -1.442695, %v30_v5  ;;  %v969_v9 = vor.u32 %v1026_v4, %v968_v2  ;;  %v71_v10 = vld [vmem:[%s1507_s4] sm:$0xff]  ;;  %s1121_s2 = smov 32   ;;  %s1122_s4 = smov 64  }
   0x4   :  { %v965_v8 = vmul.f32 -1.442695, %v31_v6  ;;  %105 = vmatpush.bf16.msra.mxu0 %v973_v3  ;;  %1036 = vmatpush.bf16.msra.mxu2 %v973_v3  ;;  %v78_v11 = vpack.c.bf16 %v71_v10, %v71_v10  ;;  %v1050_v42 = vld [vmem:[%s1506_s7] ss:$0 sm:$0xff]  ;;  %v1051_v57 = vld [vmem:[%s1506_s7 + $0x1] ss:$0 sm:$0xff] }
   0x5   :  { %1068 = vpow2.f32 %v964_v7  ;;  %126 = vrot.lane.b32.xlu0 %v973_v3, %s1120_s17  ;;  %186 = vrot.lane.b32.xlu1 %v973_v3, %s1121_s2  ;;  %v70_v0 = vld [vmem:[%s1508_s3] sm:$0xff]  ;;  %v987_v5 = vld [vmem:[%s1504_s5 + $0x1c] sm:$0xf] }
   0x6   :  { %1070 = vpow2.f32 %v965_v8  ;;  %159 = vrot.lane.b32.xlu2 %v973_v3, %s1122_s4  ;;  %v1029_v6 = vld [vmem:[%s1504_s5 + $0x24] sm:$0xf0]  ;;  %v983_v7 = vld [vmem:[%s1504_s5 + $0x4] sm:$0xf] }
   0x7   :  { %v1235_v8 = vor.u32 %v1029_v6, %v987_v5 }
   0x8   :  { %106 = vmatpush.bf16.msra.mxu0 %v969_v9  ;;  %1037 = vmatpush.bf16.msra.mxu2 %v969_v9 }
   0xb   :  { %v1069_v12 = vpop.eup %1068  ;;  %975 = vmatmul.msk.bf16.vlgmr.msra.gmra.mxu2 %vm92_vm0, %v78_v11 }
   0xc   :  { %v1071_v13 = vpop.eup %1070  ;;  %v38_v14 = vadd.f32 1.0, %v1069_v12  ;;  %v216_v12 = vpack.c.bf16 %v70_v0, %v70_v0 }
   0xd   :  { %v39_v15 = vadd.f32 1.0, %v1071_v13  ;;  %124 = vrot.lane.b32.xlu0 %v969_v9, %s1120_s17  ;;  %184 = vrot.lane.b32.xlu1 %v969_v9, %s1121_s2  ;;  %v1053_v13 = vld [vmem:[%s1506_s7 + $0x3] ss:$0 sm:$0xff] }
   0xe   :  { %1072 = vrcp.f32 %v38_v14  ;;  %vm45_vm1 = vweird.f32 %v38_v14  ;;  %v51_v19 = vand.u32 2147483648, %v38_v14  ;;  %v49_v22 = vand.u32 2147483647, %v38_v14  ;;  %157 = vrot.lane.b32.xlu2 %v969_v9, %s1122_s4  ;;  %v1028_v9 = vld [vmem:[%s1504_s5 + $0xc] sm:$0xf0] }
   0xf   :  { %1074 = vrcp.f32 %v39_v15  ;;  %v66_v23 = vand.u32 2147483648, %v39_v15  ;;  %vm60_vm3 = vweird.f32 %v39_v15  ;;  %v64_v25 = vand.u32 2147483647, %v39_v15 }
  0x10   :  { %v52_v27 = vor.u32 1.1754944e-38, %v51_v19  ;;  %vm50_vm6 = vcmp.eq.f32.partialorder %v49_v22, 8.507059e+37  ;;  %v1241_v11 = vor.u32 %v1028_v9, %v983_v7 }
  0x11   :  { %v67_v30 = vor.u32 1.1754944e-38, %v66_v23  ;;  %vm65_vm8 = vcmp.eq.f32.partialorder %v64_v25, 8.507059e+37 }
  0x14   :  { %v1073_v16 = vpop.eup %1072 }
  0x15   :  { %v1075_v17 = vpop.eup %1074  ;;  %v41_v18 = vmul.f32 %v1073_v16, %v38_v14  ;;  %vm46_vm2 = vweird.f32 %v1073_v16 }
  0x16   :  { %v56_v20 = vmul.f32 %v1075_v17, %v39_v15  ;;  %vm61_vm4 = vweird.f32 %v1075_v17  ;;  %vm47_vm5 = vmor %vm45_vm1, %vm46_vm2 }
  0x17   :  { %v42_v21 = vsub.f32 1.0, %v41_v18  ;;  %vm62_vm7 = vmor %vm60_vm3, %vm61_vm4 }
  0x18   :  { %v57_v24 = vsub.f32 1.0, %v56_v20 }
  0x19   :  { %v43_v26 = vmul.f32 %v1073_v16, %v42_v21 }
  0x1a   :  { %v58_v28 = vmul.f32 %v1075_v17, %v57_v24  ;;  %v1052_v24 = vld [vmem:[%s1506_s7 + $0x2] ss:$0 sm:$0xff] }
  0x1b   :  { %v44_v29 = vadd.f32 %v1073_v16, %v43_v26 }
  0x1c   :  { %v59_v31 = vadd.f32 %v1075_v17, %v58_v28 }
  0x1d   :  { %v48_v32 = vsel %vm47_vm5, %v1073_v16, %v44_v29  ;;  %v1054_v29 = vld [vmem:[%s1506_s7 + $0x4] ss:$0 sm:$0xff] }
  0x1e   :  { %v1195_v33 = vsel %vm50_vm6, %v52_v27, %v48_v32  ;;  %v63_v34 = vsel %vm62_vm7, %v1075_v17, %v59_v31 }
  0x1f   :  { %v1197_v35 = vsel %vm65_vm8, %v67_v30, %v63_v34  ;;  %vm705_vm8 = vcmask 523264  }
  0x20   :  { %v77_v36 = vpack.c.bf16 %v1197_v35, %v1195_v33 }
  0x22   :  { %974 = vmatmul.msk.bf16.vlgmr.msra.gmra.mxu0 %vm92_vm0, %v77_v36 }
  0x60   :  { %v160_v52 = vpop.permute.xlu2 %159 }
  0x61   :  { %172 = vmatpush.bf16.msrb.mxu2 %v160_v52 }
  0x68   :  { %v158_v54 = vpop.permute.xlu2 %157 }
  0x69   :  { %173 = vmatpush.bf16.msrb.mxu2 %v158_v54 }
  0x6d   :  { %239 = vmatpush.bf16.msra.mxu2 %v1235_v8 }
  0x71   :  { %240 = vmatpush.bf16.msra.mxu2 %v1241_v11 }
  0x77   :  { %v127_v37 = vpop.permute.xlu0 %126  ;;  %v187_v53 = vpop.permute.xlu1 %186 }
  0x78   :  { %142 = vmatpush.bf16.msra.mxu1 %v127_v37  ;;  %199 = vmatpush.bf16.msra.mxu3 %v187_v53 }
  0x7f   :  { %v125_v38 = vpop.permute.xlu0 %124  ;;  %v185_v55 = vpop.permute.xlu1 %184 }
  0x80   :  { %143 = vmatpush.bf16.msra.mxu1 %v125_v38  ;;  %200 = vmatpush.bf16.msra.mxu3 %v185_v55 }
  0x8e   :  { %v113_v39 = vpop.f32.mrf.mxu2 }
  0x8f   :  { %v114_v49 = vadd.f32 %v1050_v42, %v113_v39 }
  0x91   :  { %v119_v50 = vmax.f32 %v114_v49, 0.0 }
  0x93   :  { %v122_v51 = vpack.c.bf16 %v119_v50, %v119_v50 }
  0x96   :  { %v115_v40 = vpop.f32.mrf.mxu2 }
  0x9f   :  { %v108_v41 = vpop.f32.mrf.mxu0 }
  0xa0   :  { %v109_v43 = vadd.f32 %v1050_v42, %v108_v41  ;;  %v292_v41 = vpack.c.bf16 %v1054_v29, %v1054_v29 }
  0xa2   :  { %v117_v46 = vmax.f32 %v109_v43, 0.0 }
  0xa7   :  { %v110_v44 = vpop.f32.mrf.mxu0 }
  0xa8   :  { %v111_v45 = vadd.f32 %v1050_v42, %v110_v44 }
  0xaa   :  { %v118_v47 = vmax.f32 %v111_v45, 0.0 }
  0xac   :  { %v121_v48 = vpack.c.bf16 %v118_v47, %v117_v46 }
  0xae   :  { %976 = vmatmul.msk.bf16.vlgmr.msra.gmra.mxu1 %vm92_vm0, %v121_v48 }
  0xbe   :  { %977 = vmatmul.msk.bf16.gmra.mxu1 %vm92_vm0, %v122_v51 }
 0x12b   :  { %v145_v56 = vpop.f32.mrf.mxu1 }
 0x12c   :  { %v1214_v59 = vadd.f32 %v1051_v57, %v145_v56 }
 0x133   :  { %v147_v58 = vpop.f32.mrf.mxu1 }
 0x134   :  { %v1216_v60 = vadd.f32 %v1051_v57, %v147_v58 }
 0x136   :  { %v155_v61 = vpack.c.bf16 %v1216_v60, %v1214_v59 }
 0x138   :  { %978 = vmatmul.msk.bf16.vlgmr.msrb.gmra.mxu2 %vm92_vm0, %v155_v61  ;;  %979 = vmatmul.msk.bf16.vlgmr.msra.gmra.mxu3 %vm92_vm0, %v155_v61 }
 0x13b   :  { %v150_v62 = vpop.f32.mrf.mxu1 }
 0x13c   :  { %v151_v63 = vadd.f32 %v1051_v57, %v150_v62 }
 0x13e   :  { %v180_v1 = vadd.f32 %v151_v63, %v70_v0 }
 0x140   :  { %v182_v3 = vpack.c.bf16 %v180_v1, %v180_v1 }
 0x143   :  { %v152_v2 = vpop.f32.mrf.mxu1 }
 0x144   :  { %v1055_v2 = vld [vmem:[%s1506_s7 + $0x5] ss:$0 sm:$0xff] }
 0x148   :  { %980 = vmatmul.msk.bf16.gmra.mxu3 %vm92_vm0, %v182_v3  ;;  %989 = vmatmul.msk.bf16.vlgmr.msra.gmra.mxu2 %vm92_vm0, %v216_v12 }
 0x1bb   :  { %v202_v4 = vpop.f32.mrf.mxu3  ;;  %v175_v16 = vpop.f32.mrf.mxu2 }
 0x1bc   :  { %v203_v20 = vadd.f32 %v1053_v13, %v202_v4  ;;  %v176_v27 = vadd.f32 %v1052_v24, %v175_v16 }
 0x1c3   :  { %v204_v10 = vpop.f32.mrf.mxu3  ;;  %v177_v23 = vpop.f32.mrf.mxu2 }
 0x1c4   :  { %v205_v18 = vadd.f32 %v1053_v13, %v204_v10  ;;  %v178_v26 = vadd.f32 %v1052_v24, %v177_v23 }
 0x1c6   :  { %v247_v22 = vpack.c.bf16 %v205_v18, %v203_v20  ;;  %v246_v28 = vpack.c.bf16 %v178_v26, %v176_v27  ;;  %v439_v27 = vld [vmem:[%s1509_s0 + $0x70] sm:$0xff] }
 0x1c8   :  { %v253_v25 = vsel %vm92_vm0, %v247_v22, 0 }
 0x1cb   :  { %v207_v14 = vpop.f32.mrf.mxu3  ;;  %v242_v30 = vpop.f32.mrf.mxu2 }
 0x1cc   :  { %v208_v15 = vadd.f32 %v1053_v13, %v207_v14  ;;  %v243_v31 = vadd.f32 %v1054_v29, %v242_v30 }
 0x1ce   :  { %v248_v17 = vpack.c.bf16 %v208_v15, %v208_v15  ;;  %v293_v32 = vpack.c.bf16 %v243_v31, %v243_v31 }
 0x1d0   :  { %v256_v19 = vsel %vm92_vm0, %v248_v17, 0  ;;  %v299_v34 = vsel %vm297_vm9, %v293_v32, 0  ;;  %v437_v32 = vld [vmem:[%s1509_s0 + $0x60] sm:$0xff] }
 0x1d1   :  { %264 = vmatpush.bf16.xpose.msrb.mxu0 %v256_v19  ;;  %307 = vmatpush.bf16.msrb.mxu1 %v299_v34  ;;  %v438_v34 = vld [vmem:[%s1509_s0 + $0x68] sm:$0xff] }
 0x1d3   :  { %v209_v21 = vpop.f32.mrf.mxu3  ;;  %v244_v36 = vpop.f32.mrf.mxu2 }
 0x1d5   :  { %308 = vmatpush.bf16.msrb.mxu1 %v292_v41 }
 0x1d9   :  { %265 = vmatpush.bf16.xpose.msrb.mxu0 %v253_v25 }
 0x1e0   :  { %990 = vmatmul.msk.bf16.vlgmr.msrb.gmra.mxu0 %vm92_vm0, %v246_v28  ;;  %v440_v28 = vld [vmem:[%s1509_s0 + $0x78] sm:$0xff] }
 0x1e1   :  { %v465_v29 = vpack.c.bf16 %v440_v28, %v439_v27  ;;  %v1058_v27 = vld [vmem:[%s1506_s7 + $0x6] ss:$0 sm:$0xff] }
 0x25d   :  { %v267_v37 = vpop.f32.mrf.mxu0 }
 0x25e   :  { %v273_v38 = vsel %vm272_vm10, %v267_v37, -inf }
 0x25f   :  { %274 = vmax.xlane.f32.xlu0 %v273_v38 }
 0x265   :  { %v269_v39 = vpop.f32.mrf.mxu0 }
 0x266   :  { %v276_v40 = vsel %vm272_vm10, %v269_v39, -inf }
 0x267   :  { %277 = vmax.xlane.f32.xlu1 %v276_v40 }
 0x273   :  { %324 = vrot.lane.b32.xlu0 %v1235_v8, %s1120_s17 }
 0x280   :  { %322 = vrot.lane.b32.xlu1 %v1241_v11, %s1120_s17 }
 0x288   :  { %404 = vrot.lane.b32.xlu1 %v1235_v8, %s1122_s4 }
 0x2d2   :  { %v275_v42 = vpop.xlane.xlu0 %274 }
 0x2d3   :  { %v279_v43 = vsub.f32 %v267_v37, %v275_v42  ;;  %v491_v37 = vsel %vm92_vm0, %v465_v29, 0 }
 0x2d4   :  { %493 = vmatpush.bf16.xpose.msra.mxu0 %v491_v37 }
 0x2d5   :  { %v281_v44 = vmul.f32 1.442695, %v279_v43 }
 0x2d7   :  { %1076 = vpow2.f32 %v281_v44 }
 0x2da   :  { %v278_v45 = vpop.xlane.xlu1 %277 }
 0x2db   :  { %v280_v46 = vsub.f32 %v269_v39, %v278_v45  ;;  %v464_v39 = vpack.c.bf16 %v438_v34, %v437_v32  ;;  %v435_v45 = vld [vmem:[%s1509_s0 + $0x50] sm:$0xff]  ;;  %v456_v34 = vld [vmem:[%s1510_s1 + $0x78] sm:$0xff] }
 0x2dc   :  { %v455_v32 = vld [vmem:[%s1510_s1 + $0x70] sm:$0xff] }
 0x2dd   :  { %v1077_v47 = vpop.eup %1076  ;;  %v283_v48 = vmul.f32 1.442695, %v280_v46  ;;  %v488_v43 = vsel %vm92_vm0, %v464_v39, 0  ;;  %v436_v46 = vld [vmem:[%s1509_s0 + $0x58] sm:$0xff]  ;;  %v529_v37 = vpack.c.bf16 %v456_v34, %v455_v32 }
 0x2de   :  { %v285_v49 = vsel %vm272_vm10, %v1077_v47, 0.0  ;;  %494 = vmatpush.bf16.xpose.msra.mxu0 %v488_v43 }
 0x2df   :  { %1078 = vpow2.f32 %v283_v48  ;;  %286 = vadd.xlane.f32.xlu2 %v285_v49  ;;  %530 = vmatpush.bf16.msra.mxu1 %v529_v37 }
 0x2e5   :  { %v1079_v50 = vpop.eup %1078  ;;  %v325_v53 = vpop.permute.xlu0 %324 }
 0x2e6   :  { %v288_v51 = vsel %vm272_vm10, %v1079_v50, 0.0  ;;  %v291_v52 = vpack.c.bf16 %v1079_v50, %v1077_v47  ;;  %337 = vmatpush.bf16.msrb.mxu2 %v325_v53  ;;  %v1056_v53 = vld [vmem:[%s1506_s7 + $0x8] ss:$0 sm:$0xff] }
 0x2e7   :  { %289 = vadd.xlane.f32.xlu2 %v288_v51  ;;  %v463_v51 = vpack.c.bf16 %v436_v46, %v435_v45  ;;  %v449_v45 = vld [vmem:[%s1510_s1 + $0x40] sm:$0xff]  ;;  %v450_v46 = vld [vmem:[%s1510_s1 + $0x48] sm:$0xff] }
 0x2e8   :  { %991 = vmatmul.msk.bf16.vlgmr.msrb.gmra.mxu1 %vm272_vm10, %v291_v52 }
 0x2f2   :  { %v323_v54 = vpop.permute.xlu1 %322 }
 0x2f3   :  { %338 = vmatpush.bf16.msrb.mxu2 %v323_v54 }
 0x2fa   :  { %v405_v23 = vpop.permute.xlu1 %404 }
 0x2fb   :  { %417 = vmatpush.bf16.msrb.mxu3 %v405_v23  ;;  %v426_v23 = vld [vmem:[%s1509_s0 + $0x8] sm:$0xff] }
 0x352   :  { %v287_v55 = vpop.xlane.xlu2 %286 }
 0x353   :  { %1080 = vrcp.f32 %v287_v55 }
 0x359   :  { %v1081_v58 = vpop.eup %1080 }
 0x35a   :  { %v290_v56 = vpop.xlane.xlu2 %289 }
 0x35b   :  { %1082 = vrcp.f32 %v290_v56  ;;  %v485_v56 = vsel %vm92_vm0, %v463_v51, 0  ;;  %v446_v51 = vld [vmem:[%s1510_s1 + $0x28] sm:$0xff] }
 0x35c   :  { %495 = vmatpush.bf16.xpose.msra.mxu0 %v485_v56  ;;  %v441_v56 = vld [vmem:[%s1510_s1] sm:$0xff] }
 0x361   :  { %v1083_v61 = vpop.eup %1082 }
 0x365   :  { %v310_v57 = vpop.f32.mrf.mxu1 }
 0x366   :  { %v317_v63 = vmul.f32 %v1081_v58, %v310_v57  ;;  %v433_v57 = vld [vmem:[%s1509_s0 + $0x40] sm:$0xff]  ;;  %v434_v58 = vld [vmem:[%s1509_s0 + $0x48] sm:$0xff] }
 0x36d   :  { %v312_v62 = vpop.f32.mrf.mxu1 }
 0x36e   :  { %v318_v0 = vmul.f32 %v1083_v61, %v312_v62 }
 0x370   :  { %v320_v1 = vpack.c.bf16 %v318_v0, %v317_v63  ;;  %v1057_v63 = vld [vmem:[%s1506_s7 + $0x9] ss:$0 sm:$0xff] }
 0x372   :  { %992 = vmatmul.msk.bf16.vlgmr.msrb.gmra.mxu2 %vm92_vm0, %v320_v1  ;;  %v462_v1 = vpack.c.bf16 %v434_v58, %v433_v57  ;;  %v442_v57 = vld [vmem:[%s1510_s1 + $0x8] sm:$0xff] }
 0x373   :  { %v522_v58 = vpack.c.bf16 %v442_v57, %v441_v56 }
 0x3f5   :  { %v340_v3 = vpop.f32.mrf.mxu2 }
 0x3f6   :  { %v341_v4 = vadd.f32 %v1055_v2, %v340_v3 }
 0x3f8   :  { %v345_v5 = vsel %vm92_vm0, %v341_v4, 0.0 }
 0x3f9   :  { %346 = vadd.xlane.f32.xlu2 %v345_v5  ;;  %v482_v5 = vsel %vm92_vm0, %v462_v1, 0 }
 0x3fa   :  { %496 = vmatpush.bf16.xpose.msra.mxu0 %v482_v5 }
 0x3fd   :  { %v342_v6 = vpop.f32.mrf.mxu2 }
 0x3fe   :  { %v343_v7 = vadd.f32 %v1055_v2, %v342_v6 }
 0x400   :  { %v348_v9 = vsel %vm92_vm0, %v343_v7, 0.0 }
 0x401   :  { %349 = vadd.xlane.f32.xlu2 %v348_v9  ;;  %v432_v9 = vld [vmem:[%s1509_s0 + $0x38] sm:$0xff] }
 0x46c   :  { %v347_v10 = vpop.xlane.xlu2 %346 }
 0x46d   :  { %v351_v12 = vmul.f32 0.03125, %v347_v10 }
 0x46f   :  { %v353_v13 = vsub.f32 %v341_v4, %v351_v12 }
 0x471   :  { %v355_v14 = vmul.f32 %v353_v13, %v353_v13 }
 0x473   :  { %v357_v15 = vsel %vm92_vm0, %v355_v14, 0.0 }
 0x474   :  { %358 = vadd.xlane.f32.xlu0 %v357_v15  ;;  %v350_v16 = vpop.xlane.xlu2 %349 }
 0x475   :  { %v352_v17 = vmul.f32 0.03125, %v350_v16  ;;  %v429_v16 = vld [vmem:[%s1509_s0 + $0x20] sm:$0xff] }
 0x477   :  { %v354_v18 = vsub.f32 %v343_v7, %v352_v17  ;;  %v431_v7 = vld [vmem:[%s1509_s0 + $0x30] sm:$0xff]  ;;  %v430_v17 = vld [vmem:[%s1509_s0 + $0x28] sm:$0xff] }
 0x479   :  { %v356_v19 = vmul.f32 %v354_v18, %v354_v18 }
 0x47b   :  { %v360_v20 = vsel %vm92_vm0, %v356_v19, 0.0  ;;  %v428_v19 = vld [vmem:[%s1509_s0 + $0x18] sm:$0xff] }
 0x47c   :  { %361 = vadd.xlane.f32.xlu2 %v360_v20 }
 0x494   :  { %402 = vrot.lane.b32.xlu2 %v1241_v11, %s1122_s4 }
 0x4e7   :  { %v359_v21 = vpop.xlane.xlu0 %358 }
 0x4e8   :  { %v363_v22 = vmul.f32 0.03125, %v359_v21 }
 0x4ea   :  { %v365_v24 = vadd.f32 1e-05, %v363_v22  ;;  %v425_v22 = vld [vmem:[%s1509_s0] sm:$0xff] }
 0x4ec   :  { %1084 = vrsqrt.f32 %v365_v24  ;;  %vm373_vm12 = vweird.f32 %v365_v24 }
 0x4ef   :  { %v362_v25 = vpop.xlane.xlu2 %361 }
 0x4f0   :  { %v364_v26 = vmul.f32 0.03125, %v362_v25 }
 0x4f2   :  { %v1085_v30 = vpop.eup %1084  ;;  %v366_v31 = vadd.f32 1e-05, %v364_v26 }
 0x4f3   :  { %v368_v36 = vmul.f32 %v1085_v30, %v365_v24  ;;  %vm374_vm11 = vweird.f32 %v1085_v30  ;;  %v458_v24 = vpack.c.bf16 %v426_v23, %v425_v22 }
 0x4f4   :  { %1086 = vrsqrt.f32 %v366_v31  ;;  %vm375_vm13 = vmor %vm373_vm12, %vm374_vm11  ;;  %vm383_vm15 = vweird.f32 %v366_v31 }
 0x4f5   :  { %v369_v38 = vmul.f32 %v1085_v30, %v368_v36  ;;  %v470_v25 = vsel %vm92_vm0, %v458_v24, 0  ;;  %v453_v36 = vld [vmem:[%s1510_s1 + $0x60] sm:$0xff] }
 0x4f7   :  { %v370_v40 = vmul.f32 0.5, %v369_v38  ;;  %v403_v41 = vpop.permute.xlu2 %402  ;;  %v454_v38 = vld [vmem:[%s1510_s1 + $0x68] sm:$0xff] }
 0x4f8   :  { %418 = vmatpush.bf16.msrb.mxu3 %v403_v41  ;;  %v528_v39 = vpack.c.bf16 %v454_v38, %v453_v36  ;;  %v452_v41 = vld [vmem:[%s1510_s1 + $0x58] sm:$0xff] }
 0x4f9   :  { %v371_v42 = vsub.f32 1.5, %v370_v40  ;;  %v451_v40 = vld [vmem:[%s1510_s1 + $0x50] sm:$0xff] }
 0x4fa   :  { %v1087_v44 = vpop.eup %1086  ;;  %531 = vmatpush.bf16.msra.mxu1 %v528_v39 }
 0x4fb   :  { %v372_v47 = vmul.f32 %v1085_v30, %v371_v42  ;;  %v378_v48 = vmul.f32 %v1087_v44, %v366_v31  ;;  %vm384_vm14 = vweird.f32 %v1087_v44  ;;  %v527_v42 = vpack.c.bf16 %v452_v41, %v451_v40  ;;  %v998_v41 = vld [vmem:[%s1504_s5 + $0x8] sm:$0xf] }
 0x4fc   :  { %vm385_vm1 = vmor %vm383_vm15, %vm384_vm14 }
 0x4fd   :  { %v376_v49 = vsel %vm375_vm13, %v1085_v30, %v372_v47  ;;  %v379_v50 = vmul.f32 %v1087_v44, %v378_v48  ;;  %v526_v47 = vpack.c.bf16 %v450_v46, %v449_v45  ;;  %v447_v48 = vld [vmem:[%s1510_s1 + $0x30] sm:$0xff] }
 0x4fe   :  { %v387_v54 = vmul.f32 %v376_v49, %v353_v13  ;;  %v461_v13 = vpack.c.bf16 %v432_v9, %v431_v7  ;;  %532 = vmatpush.bf16.msra.mxu1 %v527_v42  ;;  %v448_v49 = vld [vmem:[%s1510_s1 + $0x38] sm:$0xff]  ;;  %v1030_v42 = vld [vmem:[%s1504_s5 + $0x10] sm:$0xf0] }
 0x4ff   :  { %v380_v52 = vmul.f32 0.5, %v379_v50  ;;  %v525_v50 = vpack.c.bf16 %v448_v49, %v447_v48 }
 0x500   :  { %v391_v62 = vmul.f32 %v1056_v53, %v387_v54  ;;  %v479_v15 = vsel %vm92_vm0, %v461_v13, 0  ;;  %v444_v54 = vld [vmem:[%s1510_s1 + $0x18] sm:$0xff] }
 0x501   :  { %v381_v55 = vsub.f32 1.5, %v380_v52  ;;  %497 = vmatpush.bf16.xpose.msra.mxu0 %v479_v15 }
 0x502   :  { %v1311_v4 = vadd.f32 %v1057_v63, %v391_v62  ;;  %533 = vmatpush.bf16.msra.mxu1 %v526_v47 }
 0x503   :  { %v382_v61 = vmul.f32 %v1087_v44, %v381_v55 }
 0x504   :  { %v397_v10 = vadd.f32 %v1311_v4, %v1214_v59  ;;  %v460_v59 = vpack.c.bf16 %v430_v17, %v429_v16 }
 0x505   :  { %v386_v0 = vsel %vm385_vm1, %v1087_v44, %v382_v61 }
 0x506   :  { %v388_v2 = vmul.f32 %v386_v0, %v354_v18  ;;  %v476_v18 = vsel %vm92_vm0, %v460_v59, 0  ;;  %534 = vmatpush.bf16.msra.mxu1 %v525_v50 }
 0x508   :  { %v392_v3 = vmul.f32 %v1056_v53, %v388_v2  ;;  %v443_v53 = vld [vmem:[%s1510_s1 + $0x10] sm:$0xff] }
 0x509   :  { %498 = vmatpush.bf16.xpose.msra.mxu0 %v476_v18  ;;  %v523_v55 = vpack.c.bf16 %v444_v54, %v443_v53 }
 0x50a   :  { %v1314_v6 = vadd.f32 %v1057_v63, %v392_v3 }
 0x50c   :  { %v398_v12 = vadd.f32 %v1314_v6, %v1216_v60  ;;  %v427_v60 = vld [vmem:[%s1509_s0 + $0x10] sm:$0xff] }
 0x50d   :  { %v459_v20 = vpack.c.bf16 %v428_v19, %v427_v60 }
 0x50e   :  { %v400_v14 = vpack.c.bf16 %v398_v12, %v397_v10 }
 0x50f   :  { %v473_v21 = vsel %vm92_vm0, %v459_v20, 0 }
 0x510   :  { %993 = vmatmul.msk.bf16.vlgmr.msrb.gmra.mxu3 %vm92_vm0, %v400_v14 }
 0x511   :  { %499 = vmatpush.bf16.xpose.msra.mxu0 %v473_v21 }
 0x519   :  { %500 = vmatpush.bf16.xpose.msra.mxu0 %v470_v25 }
 0x593   :  { %v420_v26 = vpop.f32.mrf.mxu3 }
 0x594   :  { %v421_v29 = vadd.f32 %v1058_v27, %v420_v26 }
 0x59b   :  { %v422_v28 = vpop.f32.mrf.mxu3 }
 0x59c   :  { %v423_v30 = vadd.f32 %v1058_v27, %v422_v28  ;;  %v1002_v27 = vld [vmem:[%s1504_s5 + $0x20] sm:$0xf]  ;;  %v1031_v28 = vld [vmem:[%s1504_s5 + $0x28] sm:$0xf0] }
 0x59e   :  { %v457_v31 = vpack.c.bf16 %v423_v30, %v421_v29  ;;  %v1003_v29 = vor.u32 %v1031_v28, %v1002_v27 }
 0x5a0   :  { %994 = vmatmul.msk.bf16.vlgmr.msra.gmra.mxu0 %vm92_vm0, %v457_v31 }
 0x61d   :  { %v502_v43 = vpop.f32.mrf.mxu0 }
 0x61e   :  { %507 = vmax.xlane.f32.xlu1 %v502_v43 }
 0x625   :  { %v504_v44 = vpop.f32.mrf.mxu0 }
 0x626   :  { %509 = vmax.xlane.f32.xlu2 %v504_v44 }
 0x637   :  { %553 = vrot.lane.b32.xlu1 %v1235_v8, %s1121_s2  ;;  %v445_v8 = vld [vmem:[%s1510_s1 + $0x20] sm:$0xff] }
 0x638   :  { %v524_v52 = vpack.c.bf16 %v446_v51, %v445_v8 }
 0x63a   :  { %535 = vmatpush.bf16.msra.mxu1 %v524_v52 }
 0x63e   :  { %536 = vmatpush.bf16.msra.mxu1 %v523_v55 }
 0x642   :  { %537 = vmatpush.bf16.msra.mxu1 %v522_v58 }
 0x691   :  { %v508_v61 = vpop.xlane.xlu1 %507 }
 0x692   :  { %v511_v62 = vsub.f32 %v502_v43, %v508_v61  ;;  %v999_v43 = vor.u32 %v1030_v42, %v998_v41 }
 0x694   :  { %v513_v63 = vmul.f32 1.442695, %v511_v62 }
 0x696   :  { %1088 = vpow2.f32 %v513_v63 }
 0x699   :  { %v510_v0 = vpop.xlane.xlu2 %509 }
 0x69a   :  { %v512_v1 = vsub.f32 %v504_v44, %v510_v0  ;;  %v1060_v0 = vld [vmem:[%s1506_s7 + $0xa] ss:$0 sm:$0xff] }
 0x69c   :  { %v1089_v2 = vpop.eup %1088  ;;  %v515_v3 = vmul.f32 1.442695, %v512_v1 }
 0x69d   :  { %517 = vadd.xlane.f32.xlu0 %v1089_v2 }
 0x69e   :  { %1090 = vpow2.f32 %v515_v3 }
 0x6a4   :  { %v1091_v5 = vpop.eup %1090 }
 0x6a5   :  { %519 = vadd.xlane.f32.xlu0 %v1091_v5  ;;  %v521_v7 = vpack.c.bf16 %v1091_v5, %v1089_v2  ;;  %v1061_v5 = vld [vmem:[%s1506_s7 + $0xb] ss:$0 sm:$0xff] }
 0x6a7   :  { %538 = vmatmul.bf16.vlgmr.msra.gmra.mxu1 %v521_v7 }
 0x6a9   :  { %v554_v9 = vpop.permute.xlu1 %553 }
 0x6aa   :  { %566 = vmatpush.bf16.msra.mxu2 %v554_v9 }
 0x6b9   :  { %551 = vrot.lane.b32.xlu0 %v1241_v11, %s1121_s2  ;;  %v1059_v11 = vld [vmem:[%s1506_s7 + $0x7] ss:$0 sm:$0xff] }
 0x710   :  { %v518_v10 = vpop.xlane.xlu0 %517 }
 0x711   :  { %1092 = vrcp.f32 %v518_v10 }
 0x717   :  { %v1093_v14 = vpop.eup %1092 }
 0x718   :  { %v520_v12 = vpop.xlane.xlu0 %519 }
 0x719   :  { %1094 = vrcp.f32 %v520_v12 }
 0x71f   :  { %v1095_v16 = vpop.eup %1094 }
 0x724   :  { %v539_v13 = vpop.f32.mrf.mxu1 }
 0x725   :  { %v546_v59 = vmul.f32 %v1093_v14, %v539_v13 }
 0x72b   :  { %v552_v15 = vpop.permute.xlu0 %551 }
 0x72c   :  { %v541_v17 = vpop.f32.mrf.mxu1  ;;  %567 = vmatpush.bf16.msra.mxu2 %v552_v15  ;;  %v1035_v15 = vld [vmem:[%s1511_s6 + $0x18] sm:$0xff] }
 0x72d   :  { %v547_v18 = vmul.f32 %v1095_v16, %v541_v17  ;;  %v1034_v16 = vld [vmem:[%s1511_s6 + $0x10] sm:$0xff]  ;;  %v1033_v17 = vld [vmem:[%s1511_s6 + $0x8] sm:$0xff] }
 0x72f   :  { %v549_v60 = vpack.c.bf16 %v547_v18, %v546_v59  ;;  %v1032_v59 = vld [vmem:[%s1511_s6] sm:$0xff] }
 0x730   :  { %713 = vmatpush.bf16.msrb.mxu2 %v1035_v15 }
 0x731   :  { %995 = vmatmul.msk.bf16.vlgmr.msra.gmra.mxu2 %vm92_vm0, %v549_v60  ;;  %v1062_v60 = vld [vmem:[%s1506_s7 + $0xe] ss:$0 sm:$0xff] }
 0x734   :  { %714 = vmatpush.bf16.msrb.mxu2 %v1034_v16 }
 0x738   :  { %715 = vmatpush.bf16.msrb.mxu2 %v1033_v17 }
 0x73c   :  { %716 = vmatpush.bf16.msrb.mxu2 %v1032_v59 }
 0x7b4   :  { %v569_v19 = vpop.f32.mrf.mxu2 }
 0x7b5   :  { %v570_v20 = vadd.f32 %v1059_v11, %v569_v19 }
 0x7b7   :  { %v574_v21 = vadd.f32 %v570_v20, %v1311_v4 }
 0x7b9   :  { %v576_v22 = vsel %vm92_vm0, %v574_v21, 0.0 }
 0x7ba   :  { %577 = vadd.xlane.f32.xlu2 %v576_v22 }
 0x7bc   :  { %v571_v23 = vpop.f32.mrf.mxu2 }
 0x7bd   :  { %v572_v24 = vadd.f32 %v1059_v11, %v571_v23 }
 0x7bf   :  { %v575_v25 = vadd.f32 %v572_v24, %v1314_v6  ;;  %v1063_v24 = vld [vmem:[%s1506_s7 + $0xf] ss:$0 sm:$0xff] }
 0x7c1   :  { %v579_v26 = vsel %vm92_vm0, %v575_v25, 0.0 }
 0x7c2   :  { %580 = vadd.xlane.f32.xlu0 %v579_v26 }
 0x7d2   :  { %647 = vrot.lane.b32.xlu2 %v1003_v29, %s1122_s4 }
 0x82d   :  { %v578_v4 = vpop.xlane.xlu2 %577 }
 0x82e   :  { %v582_v30 = vmul.f32 0.03125, %v578_v4 }
 0x830   :  { %v584_v31 = vsub.f32 %v574_v21, %v582_v30 }
 0x832   :  { %v586_v32 = vmul.f32 %v584_v31, %v584_v31 }
 0x834   :  { %v588_v6 = vsel %vm92_vm0, %v586_v32, 0.0 }
 0x835   :  { %v581_v34 = vpop.xlane.xlu0 %580  ;;  %589 = vadd.xlane.f32.xlu1 %v588_v6  ;;  %v648_v36 = vpop.permute.xlu2 %647 }
 0x836   :  { %v583_v37 = vmul.f32 0.03125, %v581_v34  ;;  %660 = vmatpush.bf16.msra.mxu3 %v648_v36 }
 0x838   :  { %v585_v38 = vsub.f32 %v575_v25, %v583_v37 }
 0x83a   :  { %v587_v39 = vmul.f32 %v585_v38, %v585_v38 }
 0x83c   :  { %v591_v40 = vsel %vm92_vm0, %v587_v39, 0.0 }
 0x83d   :  { %592 = vadd.xlane.f32.xlu2 %v591_v40 }
 0x855   :  { %645 = vrot.lane.b32.xlu2 %v999_v43, %s1122_s4 }
 0x8a8   :  { %v590_v44 = vpop.xlane.xlu1 %589 }
 0x8a9   :  { %v594_v45 = vmul.f32 0.03125, %v590_v44 }
 0x8ab   :  { %v596_v46 = vadd.f32 1e-05, %v594_v45 }
 0x8ad   :  { %1096 = vrsqrt.f32 %v596_v46  ;;  %vm604_vm3 = vweird.f32 %v596_v46 }
 0x8b0   :  { %v593_v47 = vpop.xlane.xlu2 %592 }
 0x8b1   :  { %v595_v48 = vmul.f32 0.03125, %v593_v47 }
 0x8b3   :  { %v1097_v49 = vpop.eup %1096  ;;  %v597_v50 = vadd.f32 1e-05, %v595_v48 }
 0x8b4   :  { %v599_v8 = vmul.f32 %v1097_v49, %v596_v46  ;;  %vm605_vm2 = vweird.f32 %v1097_v49 }
 0x8b5   :  { %1098 = vrsqrt.f32 %v597_v50  ;;  %vm606_vm4 = vmor %vm604_vm3, %vm605_vm2  ;;  %vm614_vm6 = vweird.f32 %v597_v50 }
 0x8b6   :  { %v600_v51 = vmul.f32 %v1097_v49, %v599_v8 }
 0x8b8   :  { %v601_v52 = vmul.f32 0.5, %v600_v51  ;;  %v646_v53 = vpop.permute.xlu2 %645 }
 0x8b9   :  { %661 = vmatpush.bf16.msra.mxu3 %v646_v53 }
 0x8ba   :  { %v602_v54 = vsub.f32 1.5, %v601_v52 }
 0x8bb   :  { %v1099_v55 = vpop.eup %1098 }
 0x8bc   :  { %v603_v56 = vmul.f32 %v1097_v49, %v602_v54  ;;  %v609_v57 = vmul.f32 %v1099_v55, %v597_v50  ;;  %vm615_vm5 = vweird.f32 %v1099_v55 }
 0x8bd   :  { %791 = vmatpush.bf16.msrb.mxu3 %v1003_v29  ;;  %vm616_vm7 = vmor %vm614_vm6, %vm615_vm5 }
 0x8be   :  { %v610_v58 = vmul.f32 %v1099_v55, %v609_v57  ;;  %v607_v61 = vsel %vm606_vm4, %v1097_v49, %v603_v56 }
 0x8bf   :  { %v618_v1 = vmul.f32 %v607_v61, %v584_v31 }
 0x8c0   :  { %v611_v62 = vmul.f32 0.5, %v610_v58 }
 0x8c1   :  { %792 = vmatpush.bf16.msrb.mxu3 %v999_v43  ;;  %v622_v7 = vmul.f32 %v1060_v0, %v618_v1 }
 0x8c2   :  { %v612_v63 = vsub.f32 1.5, %v611_v62 }
 0x8c3   :  { %v626_v12 = vadd.f32 %v1061_v5, %v622_v7 }
 0x8c4   :  { %v613_v2 = vmul.f32 %v1099_v55, %v612_v63  ;;  %v1064_v63 = vld [vmem:[%s1506_s7 + $0xc] ss:$0 sm:$0xff] }
 0x8c6   :  { %v617_v3 = vsel %vm616_vm7, %v1099_v55, %v613_v2 }
 0x8c7   :  { %v619_v9 = vmul.f32 %v617_v3, %v585_v38  ;;  %v1065_v3 = vld [vmem:[%s1506_s7 + $0xd] ss:$0 sm:$0xff] }
 0x8c9   :  { %v623_v10 = vmul.f32 %v1060_v0, %v619_v9 }
 0x8cb   :  { %v627_v13 = vadd.f32 %v1061_v5, %v623_v10 }
 0x8cd   :  { %v633_v14 = vpack.c.bf16 %v627_v13, %v626_v12 }
 0x8cf   :  { %1004 = vmatmul.msk.bf16.vlgmr.msra.gmra.mxu3 %vm92_vm0, %v633_v14  ;;  %v833_v14 = vmax.f32 %v1195_v33, 1e-05 }
 0x952   :  { %v663_v18 = vpop.f32.mrf.mxu3 }
 0x953   :  { %v664_v11 = vadd.f32 %v1062_v60, %v663_v18 }
 0x955   :  { %v668_v21 = vmax.f32 %v664_v11, 0.0 }
 0x95a   :  { %v665_v19 = vpop.f32.mrf.mxu3 }
 0x95b   :  { %v666_v20 = vadd.f32 %v1062_v60, %v665_v19 }
 0x95d   :  { %v669_v22 = vmax.f32 %v666_v20, 0.0 }
 0x95f   :  { %v679_v23 = vpack.c.bf16 %v669_v22, %v668_v21 }
 0x961   :  { %1021 = vmatmul.msk.bf16.vlgmr.msrb.gmra.mxu2 %vm705_vm8, %v679_v23 }
 0x9e4   :  { %v718_v25 = vpop.f32.mrf.mxu2 }
 0x9e5   :  { %v719_v26 = vadd.f32 %v1063_v24, %v718_v25 }
 0x9e7   :  { %v723_v27 = vadd.f32 %v719_v26, %v626_v12 }
 0x9e9   :  { %v725_v28 = vsel %vm92_vm0, %v723_v27, 0.0 }
 0x9ea   :  { %726 = vadd.xlane.f32.xlu0 %v725_v28 }
 0x9ec   :  { %v720_v29 = vpop.f32.mrf.mxu2 }
 0x9ed   :  { %v721_v4 = vadd.f32 %v1063_v24, %v720_v29 }
 0x9ef   :  { %v724_v30 = vadd.f32 %v721_v4, %v627_v13 }
 0x9f1   :  { %v728_v31 = vsel %vm92_vm0, %v724_v30, 0.0 }
 0x9f2   :  { %729 = vadd.xlane.f32.xlu1 %v728_v31 }
 0xa0b   :  { %810 = vrot.lane.b32.xlu1 %v1035_v15, %s1120_s17  ;;  %v835_v15 = vmin.f32 %v833_v14, 0.99999 }
 0xa13   :  { %806 = vrot.lane.b32.xlu1 %v1033_v17, %s1120_s17  ;;  %v834_v17 = vmax.f32 %v1197_v35, 1e-05 }
 0xa5d   :  { %v727_v32 = vpop.xlane.xlu0 %726 }
 0xa5e   :  { %v731_v6 = vmul.f32 0.03125, %v727_v32 }
 0xa60   :  { %v733_v34 = vsub.f32 %v723_v27, %v731_v6 }
 0xa62   :  { %v735_v36 = vmul.f32 %v733_v34, %v733_v34 }
 0xa64   :  { %v737_v37 = vsel %vm92_vm0, %v735_v36, 0.0 }
 0xa65   :  { %v730_v38 = vpop.xlane.xlu1 %729  ;;  %738 = vadd.xlane.f32.xlu2 %v737_v37 }
 0xa66   :  { %v732_v39 = vmul.f32 0.03125, %v730_v38 }
 0xa68   :  { %v734_v40 = vsub.f32 %v724_v30, %v732_v39  ;;  %v1123_v39 = vmov 0  }
 0xa69   :  { %1044 = vset.pattern.permute.xlu1 %v1123_v39  ;;  %1045 = vset.pattern.permute.xlu0 %v1123_v39 }
 0xa6a   :  { %v736_v41 = vmul.f32 %v734_v40, %v734_v40 }
 0xa6c   :  { %v740_v42 = vsel %vm92_vm0, %v736_v41, 0.0 }
 0xa6d   :  { %741 = vadd.xlane.f32.xlu0 %v740_v42 }
 0xa7d   :  { %v811_v46 = vpop.permute.xlu1 %810 }
 0xa7e   :  { %823 = vmatpush.bf16.msrb.mxu1 %v811_v46  ;;  %v1125_v46 = vmov 2  }
 0xa81   :  { %808 = vrot.lane.b32.xlu0 %v1034_v16, %s1120_s17  ;;  %v837_v16 = vsub.f32 1.0, %v835_v15 }
 0xa83   :  { %v850_v21 = vand.u32 2147483648, %v837_v16  ;;  %vm844_vm15 = vweird.f32 %v837_v16  ;;  %v848_v24 = vand.u32 2147483647, %v837_v16 }
 0xa85   :  { %v851_v33 = vor.u32 1.1754944e-38, %v850_v21  ;;  %vm849_vm2 = vcmp.eq.f32.partialorder %v848_v24, 8.507059e+37  ;;  %v807_v42 = vpop.permute.xlu1 %806 }
 0xa89   :  { %804 = vrot.lane.b32.xlu0 %v1032_v59, %s1120_s17  ;;  %v836_v59 = vmin.f32 %v834_v17, 0.99999 }
 0xa8b   :  { %v838_v18 = vsub.f32 1.0, %v836_v59 }
 0xa8d   :  { %v865_v4 = vand.u32 2147483648, %v838_v18  ;;  %vm859_vm3 = vweird.f32 %v838_v18  ;;  %v863_v31 = vand.u32 2147483647, %v838_v18 }
 0xa8f   :  { %v866_v32 = vor.u32 1.1754944e-38, %v865_v4  ;;  %vm864_vm6 = vcmp.eq.f32.partialorder %v863_v31, 8.507059e+37 }
 0xad8   :  { %v739_v43 = vpop.xlane.xlu2 %738 }
 0xad9   :  { %v743_v44 = vmul.f32 0.03125, %v739_v43 }
 0xadb   :  { %v745_v45 = vadd.f32 1e-05, %v743_v44  ;;  %v1124_v44 = vmov 1  }
 0xadc   :  { %1046 = vset.pattern.permute.xlu2 %v1124_v44 }
 0xadd   :  { %1100 = vrsqrt.f32 %v745_v45  ;;  %vm753_vm10 = vweird.f32 %v745_v45 }
 0xae0   :  { %v742_v47 = vpop.xlane.xlu0 %741 }
 0xae1   :  { %v744_v48 = vmul.f32 0.03125, %v742_v47 }
 0xae3   :  { %v1101_v49 = vpop.eup %1100  ;;  %v746_v50 = vadd.f32 1e-05, %v744_v48  ;;  %v1066_v48 = vld [vmem:[%s1506_s7 + $0x10] ss:$0 sm:$0xff] }
 0xae4   :  { %v748_v8 = vmul.f32 %v1101_v49, %v745_v45  ;;  %vm754_vm9 = vweird.f32 %v1101_v49 }
 0xae5   :  { %1102 = vrsqrt.f32 %v746_v50  ;;  %vm755_vm11 = vmor %vm753_vm10, %vm754_vm9  ;;  %vm763_vm13 = vweird.f32 %v746_v50 }
 0xae6   :  { %v749_v51 = vmul.f32 %v1101_v49, %v748_v8  ;;  %1104 = vrcp.f32 %v837_v16 }
 0xae7   :  { %1106 = vrcp.f32 %v838_v18 }
 0xae8   :  { %v750_v52 = vmul.f32 0.5, %v749_v51 }
 0xaea   :  { %v751_v53 = vsub.f32 1.5, %v750_v52 }
 0xaeb   :  { %v1103_v54 = vpop.eup %1102 }
 0xaec   :  { %v752_v55 = vmul.f32 %v1101_v49, %v751_v53  ;;  %v758_v56 = vmul.f32 %v1103_v54, %v746_v50  ;;  %vm764_vm12 = vweird.f32 %v1103_v54  ;;  %v1105_v60 = vpop.eup %1104 }
 0xaed   :  { %vm765_vm14 = vmor %vm763_vm13, %vm764_vm12  ;;  %v840_v11 = vmul.f32 %v1105_v60, %v837_v16  ;;  %v1107_v22 = vpop.eup %1106  ;;  %vm845_vm1 = vweird.f32 %v1105_v60 }
 0xaee   :  { %v759_v57 = vmul.f32 %v1103_v54, %v758_v56  ;;  %v756_v58 = vsel %vm755_vm11, %v1101_v49, %v752_v55  ;;  %v855_v35 = vmul.f32 %v1107_v22, %v838_v18  ;;  %vm860_vm4 = vweird.f32 %v1107_v22 }
 0xaef   :  { %v767_v0 = vmul.f32 %v756_v58, %v733_v34  ;;  %v841_v19 = vsub.f32 1.0, %v840_v11  ;;  %vm861_vm5 = vmor %vm859_vm3, %vm860_vm4  ;;  %v873_v55 = vlaneseq }
 0xaf0   :  { %v760_v61 = vmul.f32 0.5, %v759_v57  ;;  %v856_v28 = vsub.f32 1.0, %v855_v35 }
 0xaf1   :  { %v771_v5 = vmul.f32 %v1064_v63, %v767_v0  ;;  %v842_v20 = vmul.f32 %v1105_v60, %v841_v19  ;;  %v874_v57 = vand.u32 127, %v873_v55 }
 0xaf2   :  { %v761_v62 = vsub.f32 1.5, %v760_v61  ;;  %v857_v29 = vmul.f32 %v1107_v22, %v856_v28 }
 0xaf3   :  { %v775_v10 = vadd.f32 %v1065_v3, %v771_v5  ;;  %v843_v23 = vadd.f32 %v1105_v60, %v842_v20  ;;  %vm875_vm7 = vcmp.eq.s32.totalorder %v874_v57, 32  ;;  %vm888_vm9 = vcmp.eq.s32.totalorder %v874_v57, 33 }
 0xaf4   :  { %v762_v1 = vmul.f32 %v1103_v54, %v761_v62  ;;  %v858_v30 = vadd.f32 %v1107_v22, %v857_v29  ;;  %vm901_vm10 = vcmp.eq.s32.totalorder %v874_v57, 36  ;;  %vm916_vm11 = vmor %vm875_vm7, %vm888_vm9 }
 0xaf5   :  { %vm1488_vm13 = vmor %vm916_vm11, %vm901_vm10 }
 0xaf6   :  { %v766_v2 = vsel %vm765_vm14, %v1103_v54, %v762_v1  ;;  %v862_v6 = vsel %vm861_vm5, %v1107_v22, %v858_v30 }
 0xaf7   :  { %v768_v7 = vmul.f32 %v766_v2, %v734_v40  ;;  %v867_v36 = vsel %vm864_vm6, %v866_v32, %v862_v6  ;;  %v809_v40 = vpop.permute.xlu0 %808  ;;  %v1067_v2 = vld [vmem:[%s1506_s7 + $0x11] ss:$0 sm:$0xff] }
 0xaf8   :  { %v868_v38 = vmul.f32 %v867_v36, %v836_v59  ;;  %824 = vmatpush.bf16.msrb.mxu1 %v809_v40 }
 0xaf9   :  { %v772_v9 = vmul.f32 %v1064_v63, %v768_v7 }
 0xafb   :  { %v776_v12 = vadd.f32 %v1065_v3, %v772_v9 }
 0xafc   :  { %825 = vmatpush.bf16.msrb.mxu1 %v807_v42 }
 0xafd   :  { %v778_v13 = vpack.c.bf16 %v776_v12, %v775_v10 }
 0xaff   :  { %1022 = vmatmul.msk.bf16.vlgmr.msrb.gmra.mxu3 %vm92_vm0, %v778_v13  ;;  %vm846_vm0 = vmor %vm844_vm15, %vm845_vm1  ;;  %v805_v45 = vpop.permute.xlu0 %804 }
 0xb00   :  { %v847_v25 = vsel %vm846_vm0, %v1105_v60, %v843_v23  ;;  %826 = vmatpush.bf16.msrb.mxu1 %v805_v45 }
 0xb01   :  { %v852_v26 = vsel %vm849_vm2, %v851_v33, %v847_v25 }
 0xb02   :  { %v853_v27 = vmul.f32 %v852_v26, %v835_v15 }
 0xb04   :  { %1108 = vlog2.f32 %v853_v27 }
 0xb05   :  { %1110 = vlog2.f32 %v868_v38 }
 0xb0a   :  { %v1109_v34 = vpop.eup %1108 }
 0xb0b   :  { %v870_v37 = vmul.f32 0.6931472, %v1109_v34  ;;  %v1111_v41 = vpop.eup %1110 }
 0xb0c   :  { %v872_v43 = vmul.f32 0.6931472, %v1111_v41 }
 0xb0d   :  { %878 = vperm.xlu1 %1044, %v870_v37   ;;  %890 = vperm.xlu2 %1046, %v870_v37  }
 0xb0e   :  { %883 = vperm.xlu0 %1045, %v872_v43  }
 0xb15   :  { %1047 = vset.pattern.permute.xlu1 %v1124_v44 }
 0xb16   :  { %894 = vperm.xlu1 %1047, %v872_v43   ;;  %1049 = vset.pattern.permute.xlu0 %v1125_v46 }
 0xb17   :  { %907 = vperm.xlu0 %1049, %v872_v43  }
 0xb1e   :  { %1048 = vset.pattern.permute.xlu1 %v1125_v46 }
 0xb1f   :  { %903 = vperm.xlu1 %1048, %v870_v37  }
 0xb67   :  { %v891_v58 = vpop.permute.xlu2 %890 }
 0xb68   :  { %v897_v63 = vsel %vm888_vm9, %v891_v58, 0.0 }
 0xb7f   :  { %v879_v54 = vpop.permute.xlu1 %878 }
 0xb80   :  { %v884_v61 = vpop.permute.xlu0 %883  ;;  %v886_v62 = vsel %vm875_vm7, %v879_v54, 0.0 }
 0xb81   :  { %v899_v1 = vadd.f32 %v897_v63, %v886_v62  ;;  %v887_v12 = vsel %vm875_vm7, %v884_v61, 0.0 }
 0xb82   :  { %v794_v47 = vpop.f32.mrf.mxu3 }
 0xb83   :  { %v795_v49 = vadd.f32 %v1066_v48, %v794_v47 }
 0xb85   :  { %v799_v51 = vmax.f32 %v795_v49, 0.0 }
 0xb88   :  { %v895_v56 = vpop.permute.xlu1 %894 }
 0xb89   :  { %v898_v10 = vsel %vm888_vm9, %v895_v56, 0.0  ;;  %v908_v14 = vpop.permute.xlu0 %907 }
 0xb8a   :  { %v796_v50 = vpop.f32.mrf.mxu3  ;;  %v900_v15 = vadd.f32 %v898_v10, %v887_v12  ;;  %v911_v17 = vsel %vm901_vm10, %v908_v14, 0.0 }
 0xb8b   :  { %v797_v8 = vadd.f32 %v1066_v48, %v796_v50 }
 0xb8c   :  { %v913_v18 = vadd.f32 %v911_v17, %v900_v15 }
 0xb8d   :  { %v800_v52 = vmax.f32 %v797_v8, 0.0 }
 0xb8f   :  { %v802_v53 = vpack.c.bf16 %v800_v52, %v799_v51 }
 0xb91   :  { %1023 = vmatmul.msk.bf16.vlgmr.msrb.gmra.mxu1 %vm705_vm8, %v802_v53  ;;  %v904_v0 = vpop.permute.xlu1 %903 }
 0xb92   :  { %v910_v3 = vsel %vm901_vm10, %v904_v0, 0.0 }
 0xb93   :  { %v912_v7 = vadd.f32 %v910_v3, %v899_v1 }
 0xc0e   :  { %v828_v5 = vpop.f32.mrf.mxu1 }
 0xc0f   :  { %v829_v9 = vadd.f32 %v1067_v2, %v828_v5 }
 0xc11   :  { %v914_v13 = vadd.f32 %v912_v7, %v829_v9 }
 0xc13   :  { %v1024_v16 = vmul.f32 -1.442695, %v914_v13 }
 0xc15   :  { %1112 = vpow2.f32 %v1024_v16 }
 0xc16   :  { %v830_v59 = vpop.f32.mrf.mxu1 }
 0xc17   :  { %v831_v60 = vadd.f32 %v1067_v2, %v830_v59 }
 0xc19   :  { %v915_v11 = vadd.f32 %v913_v18, %v831_v60 }
 0xc1b   :  { %v1113_v19 = vpop.eup %1112  ;;  %v1025_v20 = vmul.f32 -1.442695, %v915_v11 }
 0xc1c   :  { %v924_v21 = vadd.f32 1.0, %v1113_v19 }
 0xc1d   :  { %1114 = vpow2.f32 %v1025_v20 }
 0xc1e   :  { %1116 = vrcp.f32 %v924_v21  ;;  %v937_v26 = vand.u32 2147483648, %v924_v21  ;;  %v935_v27 = vand.u32 2147483647, %v924_v21  ;;  %vm931_vm14 = vweird.f32 %v924_v21 }
 0xc20   :  { %v938_v30 = vor.u32 1.1754944e-38, %v937_v26  ;;  %vm936_vm1 = vcmp.eq.f32.partialorder %v935_v27, 8.507059e+37 }
 0xc23   :  { %v1115_v22 = vpop.eup %1114 }
 0xc24   :  { %v1117_v23 = vpop.eup %1116  ;;  %v925_v24 = vadd.f32 1.0, %v1115_v22 }
 0xc25   :  { %v927_v33 = vmul.f32 %v1117_v23, %v924_v21  ;;  %vm932_vm12 = vweird.f32 %v1117_v23 }
 0xc26   :  { %1118 = vrcp.f32 %v925_v24  ;;  %vm933_vm15 = vmor %vm931_vm14, %vm932_vm12  ;;  %v952_v37 = vand.u32 2147483648, %v925_v24  ;;  %v950_v39 = vand.u32 2147483647, %v925_v24  ;;  %vm946_vm2 = vweird.f32 %v925_v24 }
 0xc27   :  { %v928_v25 = vsub.f32 1.0, %v927_v33 }
 0xc28   :  { %v953_v41 = vor.u32 1.1754944e-38, %v952_v37  ;;  %vm951_vm4 = vcmp.eq.f32.partialorder %v950_v39, 8.507059e+37 }
 0xc29   :  { %v929_v35 = vmul.f32 %v1117_v23, %v928_v25 }
 0xc2b   :  { %v930_v29 = vadd.f32 %v1117_v23, %v929_v35 }
 0xc2c   :  { %v1119_v4 = vpop.eup %1118 }
 0xc2d   :  { %v934_v31 = vsel %vm933_vm15, %v1117_v23, %v930_v29  ;;  %v942_v32 = vmul.f32 %v1119_v4, %v925_v24  ;;  %vm947_vm0 = vweird.f32 %v1119_v4 }
 0xc2e   :  { %v939_v6 = vsel %vm936_vm1, %v938_v30, %v934_v31  ;;  %vm948_vm3 = vmor %vm946_vm2, %vm947_vm0 }
 0xc2f   :  { %v956_v34 = vsel %vm1488_vm13, %v939_v6, %v914_v13  ;;  %v943_v36 = vsub.f32 1.0, %v942_v32 }
 0xc30   :  { %958 = vst.msk [vmem:[%s1512_s8] sm:$0xff] %vm705_vm8, %v956_v34 }
 0xc31   :  { %v944_v38 = vmul.f32 %v1119_v4, %v943_v36 }
 0xc33   :  { %v945_v40 = vadd.f32 %v1119_v4, %v944_v38 }
 0xc35   :  { %v949_v42 = vsel %vm948_vm3, %v1119_v4, %v945_v40 }
 0xc36   :  { %v954_v43 = vsel %vm951_vm4, %v953_v41, %v949_v42 }
 0xc37   :  { %v957_v44 = vsel %vm1488_vm13, %v954_v43, %v915_v11 }
 0xc38   :  { %959 = vst.msk [vmem:[%s1512_s8 + $0x8] sm:$0xff] %vm705_vm8, %v957_v44 }

</bundles_post_ra>
